<compile_context>
chip_gen: v7x
topology: tpu7x:2x2x1
jax: 0.10.0
libtpu: 0.0.40
codegen_flags: <defaults>
</compile_context>

<pallas_src>
import functools

import jax
import jax.numpy as jnp
from jax import lax
from jax.experimental import pallas as pl
from jax.experimental.pallas import tpu as pltpu


def _round_up(x, m):
    return ((x + m - 1) // m) * m


def _pad2(a, rows, cols):
    out = jnp.zeros((rows, cols), jnp.float32)
    return out.at[: a.shape[0], : a.shape[1]].set(a.astype(jnp.float32))


def _gru_pack_cat(w_ih, w_hh, b_ih, b_hh, d, d_pad, n_parts):
    """Torch GRUCell weights -> transposed, lane-padded, gate-concatenated.

    Returns wih (n_parts*d_pad, 3*d_pad), whh (d_pad, 3*d_pad), biases
    (1, 3*d_pad).  Gate g (torch order r,z,n) occupies lanes
    [g*d_pad, g*d_pad+d); input part p occupies rows [p*d_pad, p*d_pad+d).
    """
    in_pad = n_parts * d_pad
    wih = jnp.zeros((in_pad, 3 * d_pad), jnp.float32)
    whh = jnp.zeros((d_pad, 3 * d_pad), jnp.float32)
    bih = jnp.zeros((1, 3 * d_pad), jnp.float32)
    bhh = jnp.zeros((1, 3 * d_pad), jnp.float32)
    b_ih_f = b_ih.reshape(-1)
    b_hh_f = b_hh.reshape(-1)
    for g in range(3):
        wgt = w_ih[g * d:(g + 1) * d, :].T                     # (n_parts*d, d)
        for pidx in range(n_parts):
            wih = wih.at[pidx * d_pad:pidx * d_pad + d,
                         g * d_pad:g * d_pad + d].set(
                wgt[pidx * d:(pidx + 1) * d, :])
        whh = whh.at[:d, g * d_pad:g * d_pad + d].set(
            w_hh[g * d:(g + 1) * d, :].T)
        bih = bih.at[0, g * d_pad:g * d_pad + d].set(b_ih_f[g * d:(g + 1) * d])
        bhh = bhh.at[0, g * d_pad:g * d_pad + d].set(b_hh_f[g * d:(g + 1) * d])
    return wih, whh, bih, bhh


# ---------------------------------------------------------------------------
# GIKT forward (eval mode)
# ---------------------------------------------------------------------------
@functools.partial(jax.jit, static_argnames=("rank_k",))
def gikt_forward(p, question_seq, correct_seq, mask_seq, *, rank_k):
    f32 = jnp.float32
    emb_q = p['embed_question'].astype(f32)
    emb_c = p['embed_concept'].astype(f32)
    emb_r = p['embed_correct'].astype(f32)
    q_table = p['q_table'].astype(f32)

    num_question, d = emb_q.shape
    num_concept = emb_c.shape[0]
    B, T = question_seq.shape
    Tm1 = T - 1

    D_PAD = _round_up(d, 128)
    B_PAD = _round_up(B, 8)
    NQ_PAD = _round_up(num_question, 8)
    NC_PAD = _round_up(num_concept, 8)
    N_ALL = NC_PAD + NQ_PAD
    s_max = min(rank_k, T - 2) + 1
    S_HIST = max(1, s_max - 1)
    S_TOT = S_HIST + 1
    T_HIST = _round_up(T, 8)

    # ---- resident (VMEM-persistent) operands, padded & pre-transposed ------
    x_init = jnp.zeros((N_ALL, D_PAD), f32)
    x_init = x_init.at[:num_concept, :d].set(emb_c)
    x_init = x_init.at[NC_PAD:NC_PAD + num_question, :d].set(emb_q)

    h1_p = _pad2(p['h1_init'], B_PAD, D_PAD)
    h2_p = _pad2(p['h2_init'], B_PAD, D_PAD)

    adj_qc = _pad2(q_table, NQ_PAD, NC_PAD)
    adj_cq = _pad2(q_table.T, NC_PAD, NQ_PAD)
    deg_q = jnp.sum(q_table, axis=1)
    deg_c = jnp.sum(q_table, axis=0)
    inv_deg_q = jnp.where(deg_q > 0, 1.0 / jnp.where(deg_q > 0, deg_q, 1.0), 0.0)
    inv_deg_c = jnp.where(deg_c > 0, 1.0 / jnp.where(deg_c > 0, deg_c, 1.0), 0.0)

    gcn_w = jnp.stack([
        _pad2(p['gcn1_w'].T, D_PAD, D_PAD),
        _pad2(p['gcn2_w'].T, D_PAD, D_PAD),
        _pad2(p['gcn3_w'].T, D_PAD, D_PAD),
        _pad2(p['mlp_agg_w'].T, D_PAD, D_PAD)])
    agg_b = _pad2(p['mlp_agg_b'], 1, D_PAD)

    g1_wih, g1_whh, g1_bih, g1_bhh = _gru_pack_cat(
        p['gru1_w_ih'], p['gru1_w_hh'], p['gru1_b_ih'], p['gru1_b_hh'],
        d, D_PAD, 2)
    g2_wih, g2_whh, g2_bih, g2_bhh = _gru_pack_cat(
        p['gru2_w_ih'], p['gru2_w_hh'], p['gru2_b_ih'], p['gru2_b_hh'],
        d, D_PAD, 1)

    qry_wt = _pad2(p['mlp_query_w'].T, D_PAD, D_PAD)
    qry_b = _pad2(p['mlp_query_b'], 1, D_PAD)
    key_wt_raw = p['mlp_key_w'].T                       # (d, d)
    key_b_raw = p['mlp_key_b'].reshape(-1)              # (d,)
    key_wt = _pad2(key_wt_raw, D_PAD, D_PAD)
    key_b = _pad2(key_b_raw[None, :], 1, D_PAD)
    ww = p['mlp_w_w'].reshape(-1)                       # (2d,)
    ww_q = _pad2(ww[:d][None, :], 1, D_PAD)
    ww_k = _pad2(ww[d:2 * d][None, :], 1, D_PAD)
    emb_cT = _pad2(emb_c.T, D_PAD, NC_PAD)
    # Q-side attention logits of every concept embedding are time-invariant:
    # tanh(MLP_key(emb_c)) . wW[:d]   (MLP_W bias cancels in the softmax)
    tmpq_c = jnp.sum(jnp.tanh(emb_c @ key_wt_raw + key_b_raw[None, :])
                     * ww[:d][None, :], axis=-1)
    tmpq_c_p = _pad2(tmpq_c[None, :], 1, NC_PAD)

    # ---- scalar-prefetch operands (SMEM) ------------------------------------
    q_cur = question_seq[:, :Tm1].T.astype(jnp.int32)             # (Tm1, B)
    m_cur = (mask_seq[:, :Tm1] != 0).T.astype(jnp.int32)          # (Tm1, B)

    # ---- per-timestep streamed operands -------------------------------------
    scale_q_l, scale_c_l, qtab_l, resp_l = [], [], [], []
    qnext_l, cmask_l, hsel_l = [], [], []
    for t in range(Tm1):
        question_t = question_seq[:, t]
        response_t = correct_seq[:, t]
        mask_f = (mask_seq[:, t] != 0).astype(f32)

        # subgraph row mask * 1/deg (mean aggregation of the per-step subgraph)
        sel_q = jnp.zeros((num_question,), f32).at[question_t].max(mask_f)
        neighbor_c = (jnp.sum(q_table * sel_q[:, None], axis=0) > 0).astype(f32)
        scale_q_l.append(_pad2((sel_q * inv_deg_q)[:, None], NQ_PAD, 1))
        scale_c_l.append(_pad2((neighbor_c * inv_deg_c)[:, None], NC_PAD, 1))

        # static-table fallback for unmasked rows (pre-masked with 1-mask)
        qtab_l.append(_pad2(emb_q[question_t] * (1.0 - mask_f)[:, None],
                            B_PAD, D_PAD))
        resp_l.append(_pad2(emb_r[response_t], B_PAD, D_PAD))

        question_next = question_seq[:, t + 1]
        qnext_l.append(_pad2(emb_q[question_next], B_PAD, D_PAD))
        cmask_l.append(_pad2(q_table[question_next], B_PAD, NC_PAD))

        # history-slot selection (top-k uses only static embeddings)
        hist_sel_t = jnp.zeros((B_PAD, S_HIST, T_HIST), f32)
        if t == 0:
            pass
        elif t <= rank_k:
            eye = jnp.eye(T_HIST, dtype=f32)[:t]
            hist_sel_t = hist_sel_t.at[:B, :t, :].set(
                jnp.broadcast_to(eye[None], (B, t, T_HIST)))
        else:
            q_vec = emb_q[question_next]
            k_mat = emb_q[question_seq[:, 0:t]]
            scores = jnp.einsum('btd,bd->bt', k_mat, q_vec)
            _, idx = lax.top_k(scores, rank_k)
            sel = jax.nn.one_hot(idx, T_HIST, dtype=f32)
            hist_sel_t = hist_sel_t.at[:B, :rank_k, :].set(sel)
        hsel_l.append(hist_sel_t)

    stack = lambda lst: jnp.stack(lst, axis=0)
    scale_q_a, scale_c_a = stack(scale_q_l), stack(scale_c_l)
    qtab_a, resp_a = stack(qtab_l), stack(resp_l)
    qnext_a, cmask_a, hsel_a = stack(qnext_l), stack(cmask_l), stack(hsel_l)

    # ---------------------------------------------------------------------
    # Fused per-timestep kernel (GCN -> GRU1 -> GRU2 -> attention readout)
    # ---------------------------------------------------------------------
    def kernel(qcur_ref, mcur_ref,
               xinit_ref, h1i_ref, h2i_ref, adj_qc_ref, adj_cq_ref,
               gcn_w_ref, agg_b_ref,
               g1_wih_ref, g1_whh_ref, g1_bih_ref, g1_bhh_ref,
               g2_wih_ref, g2_whh_ref, g2_bih_ref, g2_bhh_ref,
               qry_wt_ref, qry_b_ref, key_wt_ref, key_b_ref,
               wwq_ref, wwk_ref, emb_cT_ref, tmpq_c_ref,
               scale_q_ref, scale_c_ref, qtab_ref, resp_ref,
               qnext_ref, cmask_ref, hsel_ref,
               y_ref,
               x_ref, h1_ref, h2_ref, hist_ref, qgath_ref):
        t = pl.program_id(0)

        @pl.when(t == 0)
        def _init():
            x_ref[...] = xinit_ref[...]
            h1_ref[...] = h1i_ref[...]
            h2_ref[...] = h2i_ref[...]
            hist_ref[...] = jnp.zeros_like(hist_ref)
            qgath_ref[...] = jnp.zeros_like(qgath_ref)

        # ---- GCN: 3x SAGE (bipartite mean aggr) + tanh(MLP_AGG), one node mat
        scale_q = scale_q_ref[0]            # (NQ_PAD, 1)
        scale_c = scale_c_ref[0]            # (NC_PAD, 1)
        adj_qc_v = adj_qc_ref[...]
        adj_cq_v = adj_cq_ref[...]
        x = x_ref[...]                      # (N_ALL, D) carried across steps

        def layer_q2c(xv, w):
            xc = xv[:NC_PAD]
            xq = xv[NC_PAD:]
            aggr = jnp.dot(adj_qc_v, xc, preferred_element_type=f32) * scale_q
            xin = jnp.concatenate([xc, xq + aggr], axis=0)
            return jnp.dot(xin, w, preferred_element_type=f32)

        def layer_c2q(xv, w):
            xc = xv[:NC_PAD]
            xq = xv[NC_PAD:]
            aggr = jnp.dot(adj_cq_v, xq, preferred_element_type=f32) * scale_c
            xin = jnp.concatenate([xc + aggr, xq], axis=0)
            return jnp.dot(xin, w, preferred_element_type=f32)

        x = layer_q2c(x, gcn_w_ref[0])
        x = layer_c2q(x, gcn_w_ref[1])
        x = layer_q2c(x, gcn_w_ref[2])
        x = jnp.tanh(jnp.dot(x, gcn_w_ref[3], preferred_element_type=f32)
                     + agg_b_ref[...])
        x_ref[...] = x

        # ---- current-question embedding: gather GCN rows (masked) + fallback
        for b in range(B):
            q_b = qcur_ref[t, b]
            m_b = mcur_ref[t, b].astype(f32)
            row = x_ref[pl.ds(NC_PAD + q_b, 1), :]          # (1, D_PAD)
            qgath_ref[pl.ds(b, 1), :] = row * m_b
        emb_question = qgath_ref[...] + qtab_ref[0]          # (B_PAD, D_PAD)

        # ---- GRU1 / GRU2 (gate-concatenated weights, torch order r,z,n) -----
        gru1_in = jnp.concatenate([emb_question, resp_ref[0]], axis=1)

        def gru(xv, h, wih_r, whh_r, bih_r, bhh_r):
            gi = jnp.dot(xv, wih_r[...], preferred_element_type=f32) + bih_r[...]
            gh = jnp.dot(h, whh_r[...], preferred_element_type=f32) + bhh_r[...]
            r = jax.nn.sigmoid(gi[:, :D_PAD] + gh[:, :D_PAD])
            z = jax.nn.sigmoid(gi[:, D_PAD:2 * D_PAD] + gh[:, D_PAD:2 * D_PAD])
            n = jnp.tanh(gi[:, 2 * D_PAD:] + r * gh[:, 2 * D_PAD:])
            return (1.0 - z) * n + z * h

        h1_new = gru(gru1_in, h1_ref[...], g1_wih_ref, g1_whh_ref,
                     g1_bih_ref, g1_bhh_ref)
        h1_ref[...] = h1_new
        gru2_out = gru(h1_new, h2_ref[...], g2_wih_ref, g2_whh_ref,
                       g2_bih_ref, g2_bhh_ref)

        # ---- attention readout ("predict"), lane-dense over concepts --------
        hist_sel = hsel_ref[0]                                 # (B, S_HIST, T)
        hist_states = jnp.einsum('bst,btd->bsd', hist_sel, hist_ref[...],
                                 preferred_element_type=f32)   # (B, S_HIST, D)
        qnext_e = qnext_ref[0]                                 # (B, D)
        cmask = cmask_ref[0]                                   # (B, NC_PAD)

        q_key = jnp.tanh(jnp.dot(qnext_e, key_wt_ref[...],
                                 preferred_element_type=f32) + key_b_ref[...])
        tmp_q0 = jnp.sum(q_key * wwq_ref[...], axis=-1, keepdims=True)  # (B,1)

        og_c_l, og_q_l, tmpk_l = [], [], []
        for s in range(S_TOT):
            st_s = gru2_out if s == 0 else hist_states[:, s - 1, :]     # (B,D)
            og_c_l.append((jnp.dot(st_s, emb_cT_ref[...],
                                   preferred_element_type=f32)
                           * cmask)[:, None, :])                        # (B,1,NC)
            og_q_l.append(jnp.sum(st_s * qnext_e, axis=-1,
                                  keepdims=True)[:, None, :])           # (B,1,1)
            k_s = jnp.tanh(jnp.dot(st_s, qry_wt_ref[...],
                                   preferred_element_type=f32) + qry_b_ref[...])
            tmpk_l.append(jnp.sum(k_s * wwk_ref[...], axis=-1,
                                  keepdims=True)[:, None, :])           # (B,1,1)
        out_g_c = jnp.concatenate(og_c_l, axis=1)        # (B, S, NC_PAD)
        out_g_q = jnp.concatenate(og_q_l, axis=1)        # (B, S, 1)
        tmp_k = jnp.concatenate(tmpk_l, axis=1)          # (B, S, 1)

        # state-validity mask: at t=0 only the current state; else min(t,k)+1
        n_valid = jnp.minimum(t, rank_k) + 1
        smask = lax.broadcasted_iota(jnp.int32, (1, S_TOT, 1), 1) < n_valid
        neg = jnp.float32(-1e30)
        logit_c = jnp.where(smask, tmpq_c_ref[...][None] + tmp_k, neg)  # (B,S,NC)
        logit_q = jnp.where(smask, tmp_q0[:, None, :] + tmp_k, neg)     # (B,S,1)
        alpha_c = jax.nn.softmax(logit_c, axis=1)
        alpha_q = jax.nn.softmax(logit_q, axis=1)

        p_sum = (jnp.sum(jnp.sum(alpha_c * out_g_c, axis=2), axis=1,
                         keepdims=True)
                 + jnp.sum(jnp.sum(alpha_q * out_g_q, axis=2), axis=1,
                           keepdims=True))                              # (B,1)
        y_ref[...] = jax.nn.sigmoid(p_sum)[None]

        # ---- carry-state updates (torch skips these at t == 0) --------------
        @pl.when(t > 0)
        def _carry():
            h2_ref[...] = gru2_out
            hist_ref[:, pl.ds(t, 1), :] = gru2_out[:, None, :]

    # ---- specs ---------------------------------------------------------------
    def const_spec(shape):
        nd = len(shape)
        return pl.BlockSpec(shape, lambda t, *_: (0,) * nd)

    def step_spec(shape):
        nd = len(shape)
        return pl.BlockSpec((1,) + tuple(shape[1:]),
                            lambda t, *_: (t,) + (0,) * (nd - 1))

    grid_spec = pltpu.PrefetchScalarGridSpec(
        num_scalar_prefetch=2,
        grid=(Tm1,),
        in_specs=[
            const_spec((N_ALL, D_PAD)),
            const_spec((B_PAD, D_PAD)),
            const_spec((B_PAD, D_PAD)),
            const_spec((NQ_PAD, NC_PAD)),
            const_spec((NC_PAD, NQ_PAD)),
            const_spec((4, D_PAD, D_PAD)),
            const_spec((1, D_PAD)),
            const_spec((2 * D_PAD, 3 * D_PAD)),
            const_spec((D_PAD, 3 * D_PAD)),
            const_spec((1, 3 * D_PAD)),
            const_spec((1, 3 * D_PAD)),
            const_spec((D_PAD, 3 * D_PAD)),
            const_spec((D_PAD, 3 * D_PAD)),
            const_spec((1, 3 * D_PAD)),
            const_spec((1, 3 * D_PAD)),
            const_spec((D_PAD, D_PAD)),
            const_spec((1, D_PAD)),
            const_spec((D_PAD, D_PAD)),
            const_spec((1, D_PAD)),
            const_spec((1, D_PAD)),
            const_spec((1, D_PAD)),
            const_spec((D_PAD, NC_PAD)),
            const_spec((1, NC_PAD)),
            step_spec((Tm1, NQ_PAD, 1)),
            step_spec((Tm1, NC_PAD, 1)),
            step_spec((Tm1, B_PAD, D_PAD)),
            step_spec((Tm1, B_PAD, D_PAD)),
            step_spec((Tm1, B_PAD, D_PAD)),
            step_spec((Tm1, B_PAD, NC_PAD)),
            step_spec((Tm1, B_PAD, S_HIST, T_HIST)),
        ],
        out_specs=pl.BlockSpec((1, B_PAD, 1), lambda t, *_: (t, 0, 0)),
        scratch_shapes=[
            pltpu.VMEM((N_ALL, D_PAD), jnp.float32),          # node features x
            pltpu.VMEM((B_PAD, D_PAD), jnp.float32),           # h1
            pltpu.VMEM((B_PAD, D_PAD), jnp.float32),           # h2
            pltpu.VMEM((B_PAD, T_HIST, D_PAD), jnp.float32),   # state history
            pltpu.VMEM((B_PAD, D_PAD), jnp.float32),           # gathered q emb
        ])

    out = pl.pallas_call(
        kernel,
        out_shape=jax.ShapeDtypeStruct((Tm1, B_PAD, 1), jnp.float32),
        grid_spec=grid_spec,
        compiler_params=pltpu.CompilerParams(
            dimension_semantics=("arbitrary",),
            vmem_limit_bytes=48 * 1024 * 1024),
    )(q_cur, m_cur,
      x_init, h1_p, h2_p, adj_qc, adj_cq, gcn_w, agg_b,
      g1_wih, g1_whh, g1_bih, g1_bhh, g2_wih, g2_whh, g2_bih, g2_bhh,
      qry_wt, qry_b, key_wt, key_b, ww_q, ww_k, emb_cT, tmpq_c_p,
      scale_q_a, scale_c_a, qtab_a, resp_a, qnext_a, cmask_a, hsel_a)

    # step 0 writes y_hat[:,0]; step t>=1 writes y_hat[:,t+1]; column 1 stays 0
    y_steps = out[:, :B, 0]                               # (Tm1, B)
    y_hat = jnp.zeros((B, T), jnp.float32)
    y_hat = y_hat.at[:, 0].set(y_steps[0])
    y_hat = y_hat.at[:, 2:].set(y_steps[1:].T)
    return y_hat


# ---------------------------------------------------------------------------
# Deterministic synthetic parameters
# ---------------------------------------------------------------------------
def make_params(key, batch_size, num_question, num_concept, dim_emb, q_table):
    ks = list(jax.random.split(key, 32))

    def nxt():
        return ks.pop()

    def lin_w(out_d, in_d):
        bound = 1.0 / jnp.sqrt(in_d)
        return jax.random.uniform(nxt(), (out_d, in_d), jnp.float32, -bound, bound)

    def lin_b(out_d, in_d):
        bound = 1.0 / jnp.sqrt(in_d)
        return jax.random.uniform(nxt(), (1, out_d), jnp.float32, -bound, bound)

    def xavier(rows, cols):
        bound = jnp.sqrt(6.0 / (rows + cols))
        return jax.random.uniform(nxt(), (rows, cols), jnp.float32, -bound, bound)

    return {
        'q_table': q_table,
        'embed_question': jax.random.normal(nxt(), (num_question, dim_emb), jnp.float32),
        'embed_concept': jax.random.normal(nxt(), (num_concept, dim_emb), jnp.float32),
        'embed_correct': jax.random.normal(nxt(), (2, dim_emb), jnp.float32),
        # GRUCell 1: input 2D -> hidden D (torch layout, gates r,z,n)
        'gru1_w_ih': lin_w(3 * dim_emb, 2 * dim_emb),
        'gru1_w_hh': lin_w(3 * dim_emb, dim_emb),
        'gru1_b_ih': lin_b(3 * dim_emb, dim_emb),
        'gru1_b_hh': lin_b(3 * dim_emb, dim_emb),
        # GRUCell 2: input D -> hidden D
        'gru2_w_ih': lin_w(3 * dim_emb, dim_emb),
        'gru2_w_hh': lin_w(3 * dim_emb, dim_emb),
        'gru2_b_ih': lin_b(3 * dim_emb, dim_emb),
        'gru2_b_hh': lin_b(3 * dim_emb, dim_emb),
        # SAGEConv lin_r weights (bias=False)
        'gcn1_w': lin_w(dim_emb, dim_emb),
        'gcn2_w': lin_w(dim_emb, dim_emb),
        'gcn3_w': lin_w(dim_emb, dim_emb),
        'mlp_agg_w': lin_w(dim_emb, dim_emb),
        'mlp_agg_b': lin_b(dim_emb, dim_emb),
        'mlp_query_w': lin_w(dim_emb, dim_emb),
        'mlp_query_b': lin_b(dim_emb, dim_emb),
        'mlp_key_w': lin_w(dim_emb, dim_emb),
        'mlp_key_b': lin_b(dim_emb, dim_emb),
        'mlp_w_w': lin_w(1, 2 * dim_emb),
        'mlp_w_b': lin_b(1, 2 * dim_emb),   # constant logit bias, cancels in softmax
        'h1_init': xavier(batch_size, dim_emb),
        'h2_init': xavier(batch_size, dim_emb),
    }


if __name__ == "__main__":
    B, seq_len, dim_emb = 2, 8, 16
    num_question, num_concept, rank_k = 12, 8, 3

    # deterministic Q table: each question linked to 1-2 concepts
    q_table = jnp.zeros((num_question, num_concept), jnp.float32)
    for q in range(num_question):
        q_table = q_table.at[q, q % num_concept].set(1.0)
        q_table = q_table.at[q, (q * 3 + 1) % num_concept].set(1.0)

    key = jax.random.PRNGKey(0)
    k_param, k_q, k_c = jax.random.split(key, 3)
    params = make_params(k_param, B, num_question, num_concept, dim_emb, q_table)

    question_seq = jax.random.randint(k_q, (B, seq_len), 0, num_question)
    correct_seq = jax.random.randint(k_c, (B, seq_len), 0, 2)
    lengths = jnp.array([seq_len, seq_len - 2])
    mask_seq = (jnp.arange(seq_len)[None, :] < lengths[:, None]).astype(jnp.int32)

    y_hat = gikt_forward(params, question_seq, correct_seq, mask_seq, rank_k=rank_k)
    jax.block_until_ready(y_hat)
    assert y_hat.shape == (B, seq_len)
    assert bool(jnp.all(jnp.isfinite(y_hat)))
    print("KERNEL_OK")
</pallas_src>

<mosaic_0001>
module attributes {stable_mosaic.version = 11 : i64} {
  func.func @kernel(%arg0: i32, %arg1: memref<7x2xi32, #tpu.memory_space<smem>>, %arg2: memref<7x2xi32, #tpu.memory_space<smem>>, %arg3: memref<24x128xf32, #tpu.memory_space<vmem>>, %arg4: memref<8x128xf32, #tpu.memory_space<vmem>>, %arg5: memref<8x128xf32, #tpu.memory_space<vmem>>, %arg6: memref<16x8xf32, #tpu.memory_space<vmem>>, %arg7: memref<8x16xf32, #tpu.memory_space<vmem>>, %arg8: memref<4x128x128xf32, #tpu.memory_space<vmem>>, %arg9: memref<1x128xf32, #tpu.memory_space<vmem>>, %arg10: memref<256x384xf32, #tpu.memory_space<vmem>>, %arg11: memref<128x384xf32, #tpu.memory_space<vmem>>, %arg12: memref<1x384xf32, #tpu.memory_space<vmem>>, %arg13: memref<1x384xf32, #tpu.memory_space<vmem>>, %arg14: memref<128x384xf32, #tpu.memory_space<vmem>>, %arg15: memref<128x384xf32, #tpu.memory_space<vmem>>, %arg16: memref<1x384xf32, #tpu.memory_space<vmem>>, %arg17: memref<1x384xf32, #tpu.memory_space<vmem>>, %arg18: memref<128x128xf32, #tpu.memory_space<vmem>>, %arg19: memref<1x128xf32, #tpu.memory_space<vmem>>, %arg20: memref<128x128xf32, #tpu.memory_space<vmem>>, %arg21: memref<1x128xf32, #tpu.memory_space<vmem>>, %arg22: memref<1x128xf32, #tpu.memory_space<vmem>>, %arg23: memref<1x128xf32, #tpu.memory_space<vmem>>, %arg24: memref<128x8xf32, #tpu.memory_space<vmem>>, %arg25: memref<1x8xf32, #tpu.memory_space<vmem>>, %arg26: memref<1x16x1xf32, #tpu.memory_space<vmem>>, %arg27: memref<1x8x1xf32, #tpu.memory_space<vmem>>, %arg28: memref<1x8x128xf32, #tpu.memory_space<vmem>>, %arg29: memref<1x8x128xf32, #tpu.memory_space<vmem>>, %arg30: memref<1x8x128xf32, #tpu.memory_space<vmem>>, %arg31: memref<1x8x8xf32, #tpu.memory_space<vmem>>, %arg32: memref<1x8x3x8xf32, #tpu.memory_space<vmem>>, %arg33: memref<1x8x1xf32, #tpu.memory_space<vmem>>, %arg34: memref<24x128xf32, #tpu.memory_space<vmem>>, %arg35: memref<8x128xf32, #tpu.memory_space<vmem>>, %arg36: memref<8x128xf32, #tpu.memory_space<vmem>>, %arg37: memref<8x8x128xf32, #tpu.memory_space<vmem>>, %arg38: memref<8x128xf32, #tpu.memory_space<vmem>>) attributes {dimension_semantics = [#tpu.dimension_semantics<arbitrary>], iteration_bounds = array<i64: 7>, scalar_prefetch = 2 : i64, scratch_operands = 5 : i64, tpu.core_type = #tpu.core_type<tc>, window_params = [{pipeline_mode = #tpu.pipeline_mode<synchronous>, transform_indices = @transform_0, window_bounds = array<i64: 24, 128>}, {pipeline_mode = #tpu.pipeline_mode<synchronous>, transform_indices = @transform_1, window_bounds = array<i64: 8, 128>}, {pipeline_mode = #tpu.pipeline_mode<synchronous>, transform_indices = @transform_2, window_bounds = array<i64: 8, 128>}, {pipeline_mode = #tpu.pipeline_mode<synchronous>, transform_indices = @transform_3, window_bounds = array<i64: 16, 8>}, {pipeline_mode = #tpu.pipeline_mode<synchronous>, transform_indices = @transform_4, window_bounds = array<i64: 8, 16>}, {pipeline_mode = #tpu.pipeline_mode<synchronous>, transform_indices = @transform_5, window_bounds = array<i64: 4, 128, 128>}, {pipeline_mode = #tpu.pipeline_mode<synchronous>, transform_indices = @transform_6, window_bounds = array<i64: 1, 128>}, {pipeline_mode = #tpu.pipeline_mode<synchronous>, transform_indices = @transform_7, window_bounds = array<i64: 256, 384>}, {pipeline_mode = #tpu.pipeline_mode<synchronous>, transform_indices = @transform_8, window_bounds = array<i64: 128, 384>}, {pipeline_mode = #tpu.pipeline_mode<synchronous>, transform_indices = @transform_9, window_bounds = array<i64: 1, 384>}, {pipeline_mode = #tpu.pipeline_mode<synchronous>, transform_indices = @transform_10, window_bounds = array<i64: 1, 384>}, {pipeline_mode = #tpu.pipeline_mode<synchronous>, transform_indices = @transform_11, window_bounds = array<i64: 128, 384>}, {pipeline_mode = #tpu.pipeline_mode<synchronous>, transform_indices = @transform_12, window_bounds = array<i64: 128, 384>}, {pipeline_mode = #tpu.pipeline_mode<synchronous>, transform_indices = @transform_13, window_bounds = array<i64: 1, 384>}, {pipeline_mode = #tpu.pipeline_mode<synchronous>, transform_indices = @transform_14, window_bounds = array<i64: 1, 384>}, {pipeline_mode = #tpu.pipeline_mode<synchronous>, transform_indices = @transform_15, window_bounds = array<i64: 128, 128>}, {pipeline_mode = #tpu.pipeline_mode<synchronous>, transform_indices = @transform_16, window_bounds = array<i64: 1, 128>}, {pipeline_mode = #tpu.pipeline_mode<synchronous>, transform_indices = @transform_17, window_bounds = array<i64: 128, 128>}, {pipeline_mode = #tpu.pipeline_mode<synchronous>, transform_indices = @transform_18, window_bounds = array<i64: 1, 128>}, {pipeline_mode = #tpu.pipeline_mode<synchronous>, transform_indices = @transform_19, window_bounds = array<i64: 1, 128>}, {pipeline_mode = #tpu.pipeline_mode<synchronous>, transform_indices = @transform_20, window_bounds = array<i64: 1, 128>}, {pipeline_mode = #tpu.pipeline_mode<synchronous>, transform_indices = @transform_21, window_bounds = array<i64: 128, 8>}, {pipeline_mode = #tpu.pipeline_mode<synchronous>, transform_indices = @transform_22, window_bounds = array<i64: 1, 8>}, {transform_indices = @transform_23, window_bounds = array<i64: 1, 16, 1>}, {transform_indices = @transform_24, window_bounds = array<i64: 1, 8, 1>}, {transform_indices = @transform_25, window_bounds = array<i64: 1, 8, 128>}, {transform_indices = @transform_26, window_bounds = array<i64: 1, 8, 128>}, {transform_indices = @transform_27, window_bounds = array<i64: 1, 8, 128>}, {transform_indices = @transform_28, window_bounds = array<i64: 1, 8, 8>}, {transform_indices = @transform_29, window_bounds = array<i64: 1, 8, 3, 8>}, {transform_indices = @transform_30, window_bounds = array<i64: 1, 8, 1>}]} {
    %c0_i32 = arith.constant 0 : i32
    %0 = arith.cmpi eq, %arg0, %c0_i32 : i32
    %1 = arith.extui %0 : i1 to i32
    %c0_i32_0 = arith.constant 0 : i32
    %2 = arith.cmpi ne, %1, %c0_i32_0 : i32
    scf.if %2 {
      %c0_172 = arith.constant 0 : index
      %c0_173 = arith.constant 0 : index
      %322 = vector.load %arg3[%c0_172, %c0_173] : memref<24x128xf32, #tpu.memory_space<vmem>>, vector<24x128xf32>
      %c0_174 = arith.constant 0 : index
      %c0_175 = arith.constant 0 : index
      %323 = vector.load %arg34[%c0_174, %c0_175] : memref<24x128xf32, #tpu.memory_space<vmem>>, vector<24x128xf32>
      tpu.vector_store %arg34[%c0_174, %c0_175], %322 {strides = array<i32>} : memref<24x128xf32, #tpu.memory_space<vmem>>, vector<24x128xf32>,
      %c0_176 = arith.constant 0 : index
      %c0_177 = arith.constant 0 : index
      %324 = vector.load %arg4[%c0_176, %c0_177] : memref<8x128xf32, #tpu.memory_space<vmem>>, vector<8x128xf32>
      %c0_178 = arith.constant 0 : index
      %c0_179 = arith.constant 0 : index
      %325 = vector.load %arg35[%c0_178, %c0_179] : memref<8x128xf32, #tpu.memory_space<vmem>>, vector<8x128xf32>
      tpu.vector_store %arg35[%c0_178, %c0_179], %324 {strides = array<i32>} : memref<8x128xf32, #tpu.memory_space<vmem>>, vector<8x128xf32>,
      %c0_180 = arith.constant 0 : index
      %c0_181 = arith.constant 0 : index
      %326 = vector.load %arg5[%c0_180, %c0_181] : memref<8x128xf32, #tpu.memory_space<vmem>>, vector<8x128xf32>
      %c0_182 = arith.constant 0 : index
      %c0_183 = arith.constant 0 : index
      %327 = vector.load %arg36[%c0_182, %c0_183] : memref<8x128xf32, #tpu.memory_space<vmem>>, vector<8x128xf32>
      tpu.vector_store %arg36[%c0_182, %c0_183], %326 {strides = array<i32>} : memref<8x128xf32, #tpu.memory_space<vmem>>, vector<8x128xf32>,
      %cst_184 = arith.constant 0.000000e+00 : f32
      %328 = vector.broadcast %cst_184 : f32 to vector<8x8x128xf32>
      %c0_185 = arith.constant 0 : index
      %c0_186 = arith.constant 0 : index
      %c0_187 = arith.constant 0 : index
      %329 = vector.load %arg37[%c0_185, %c0_186, %c0_187] : memref<8x8x128xf32, #tpu.memory_space<vmem>>, vector<8x8x128xf32>
      tpu.vector_store %arg37[%c0_185, %c0_186, %c0_187], %328 {strides = array<i32>} : memref<8x8x128xf32, #tpu.memory_space<vmem>>, vector<8x8x128xf32>,
      %cst_188 = arith.constant 0.000000e+00 : f32
      %330 = vector.broadcast %cst_188 : f32 to vector<8x128xf32>
      %c0_189 = arith.constant 0 : index
      %c0_190 = arith.constant 0 : index
      %331 = vector.load %arg38[%c0_189, %c0_190] : memref<8x128xf32, #tpu.memory_space<vmem>>, vector<8x128xf32>
      tpu.vector_store %arg38[%c0_189, %c0_190], %330 {strides = array<i32>} : memref<8x128xf32, #tpu.memory_space<vmem>>, vector<8x128xf32>,
    } else {
    }
    %c0 = arith.constant 0 : index
    %c0_1 = arith.constant 0 : index
    %c0_2 = arith.constant 0 : index
    %3 = vector.load %arg26[%c0, %c0_1, %c0_2] : memref<1x16x1xf32, #tpu.memory_space<vmem>>, vector<1x16x1xf32>
    %4 = vector.shape_cast %3 : vector<1x16x1xf32> to vector<16x1xf32>
    %c0_3 = arith.constant 0 : index
    %c0_4 = arith.constant 0 : index
    %c0_5 = arith.constant 0 : index
    %5 = vector.load %arg27[%c0_3, %c0_4, %c0_5] : memref<1x8x1xf32, #tpu.memory_space<vmem>>, vector<1x8x1xf32>
    %6 = vector.shape_cast %5 : vector<1x8x1xf32> to vector<8x1xf32>
    %c0_6 = arith.constant 0 : index
    %c0_7 = arith.constant 0 : index
    %7 = vector.load %arg6[%c0_6, %c0_7] : memref<16x8xf32, #tpu.memory_space<vmem>>, vector<16x8xf32>
    %c0_8 = arith.constant 0 : index
    %c0_9 = arith.constant 0 : index
    %8 = vector.load %arg7[%c0_8, %c0_9] : memref<8x16xf32, #tpu.memory_space<vmem>>, vector<8x16xf32>
    %c0_10 = arith.constant 0 : index
    %c0_11 = arith.constant 0 : index
    %9 = vector.load %arg34[%c0_10, %c0_11] : memref<24x128xf32, #tpu.memory_space<vmem>>, vector<24x128xf32>
    %c0_12 = arith.constant 0 : index
    %c0_13 = arith.constant 0 : index
    %c0_14 = arith.constant 0 : index
    %10 = vector.load %arg8[%c0_12, %c0_13, %c0_14] : memref<4x128x128xf32, #tpu.memory_space<vmem>>, vector<1x128x128xf32>
    %11 = vector.shape_cast %10 : vector<1x128x128xf32> to vector<128x128xf32>
    %12 = vector.extract_strided_slice %9 {offsets = [0, 0], sizes = [8, 128], strides = [1, 1]} : vector<24x128xf32> to vector<8x128xf32>
    %13 = vector.extract_strided_slice %9 {offsets = [8, 0], sizes = [16, 128], strides = [1, 1]} : vector<24x128xf32> to vector<16x128xf32>
    %cst = arith.constant dense<0.000000e+00> : vector<16x128xf32>
    %14 = tpu.matmul %7, %12, %cst {dimension_numbers = #tpu.dot_dimension_numbers<[1], [0], [0], [1], [0, 0, 1, 1], [], []>} : vector<16x8xf32>, vector<8x128xf32>, vector<16x128xf32> -> vector<16x128xf32>
    %15 = vector.broadcast %4 : vector<16x1xf32> to vector<16x128xf32>
    %16 = arith.mulf %14, %15 : vector<16x128xf32>
    %17 = arith.addf %13, %16 : vector<16x128xf32>
    %18 = tpu.concatenate %12, %17 in 0 : vector<8x128xf32>, vector<16x128xf32> -> vector<24x128xf32>
    %cst_15 = arith.constant dense<0.000000e+00> : vector<24x128xf32>
    %19 = tpu.matmul %18, %11, %cst_15 {dimension_numbers = #tpu.dot_dimension_numbers<[1], [0], [0], [1], [0, 0, 1, 1], [], []>} : vector<24x128xf32>, vector<128x128xf32>, vector<24x128xf32> -> vector<24x128xf32>
    %c1 = arith.constant 1 : index
    %c0_16 = arith.constant 0 : index
    %c0_17 = arith.constant 0 : index
    %20 = vector.load %arg8[%c1, %c0_16, %c0_17] : memref<4x128x128xf32, #tpu.memory_space<vmem>>, vector<1x128x128xf32>
    %21 = vector.shape_cast %20 : vector<1x128x128xf32> to vector<128x128xf32>
    %22 = vector.extract_strided_slice %19 {offsets = [0, 0], sizes = [8, 128], strides = [1, 1]} : vector<24x128xf32> to vector<8x128xf32>
    %23 = vector.extract_strided_slice %19 {offsets = [8, 0], sizes = [16, 128], strides = [1, 1]} : vector<24x128xf32> to vector<16x128xf32>
    %cst_18 = arith.constant dense<0.000000e+00> : vector<8x128xf32>
    %24 = tpu.matmul %8, %23, %cst_18 {dimension_numbers = #tpu.dot_dimension_numbers<[1], [0], [0], [1], [0, 0, 1, 1], [], []>} : vector<8x16xf32>, vector<16x128xf32>, vector<8x128xf32> -> vector<8x128xf32>
    %25 = vector.broadcast %6 : vector<8x1xf32> to vector<8x128xf32>
    %26 = arith.mulf %24, %25 : vector<8x128xf32>
    %27 = arith.addf %22, %26 : vector<8x128xf32>
    %28 = tpu.concatenate %27, %23 in 0 : vector<8x128xf32>, vector<16x128xf32> -> vector<24x128xf32>
    %cst_19 = arith.constant dense<0.000000e+00> : vector<24x128xf32>
    %29 = tpu.matmul %28, %21, %cst_19 {dimension_numbers = #tpu.dot_dimension_numbers<[1], [0], [0], [1], [0, 0, 1, 1], [], []>} : vector<24x128xf32>, vector<128x128xf32>, vector<24x128xf32> -> vector<24x128xf32>
    %c2 = arith.constant 2 : index
    %c0_20 = arith.constant 0 : index
    %c0_21 = arith.constant 0 : index
    %30 = vector.load %arg8[%c2, %c0_20, %c0_21] : memref<4x128x128xf32, #tpu.memory_space<vmem>>, vector<1x128x128xf32>
    %31 = vector.shape_cast %30 : vector<1x128x128xf32> to vector<128x128xf32>
    %32 = vector.extract_strided_slice %29 {offsets = [0, 0], sizes = [8, 128], strides = [1, 1]} : vector<24x128xf32> to vector<8x128xf32>
    %33 = vector.extract_strided_slice %29 {offsets = [8, 0], sizes = [16, 128], strides = [1, 1]} : vector<24x128xf32> to vector<16x128xf32>
    %cst_22 = arith.constant dense<0.000000e+00> : vector<16x128xf32>
    %34 = tpu.matmul %7, %32, %cst_22 {dimension_numbers = #tpu.dot_dimension_numbers<[1], [0], [0], [1], [0, 0, 1, 1], [], []>} : vector<16x8xf32>, vector<8x128xf32>, vector<16x128xf32> -> vector<16x128xf32>
    %35 = vector.broadcast %4 : vector<16x1xf32> to vector<16x128xf32>
    %36 = arith.mulf %34, %35 : vector<16x128xf32>
    %37 = arith.addf %33, %36 : vector<16x128xf32>
    %38 = tpu.concatenate %32, %37 in 0 : vector<8x128xf32>, vector<16x128xf32> -> vector<24x128xf32>
    %cst_23 = arith.constant dense<0.000000e+00> : vector<24x128xf32>
    %39 = tpu.matmul %38, %31, %cst_23 {dimension_numbers = #tpu.dot_dimension_numbers<[1], [0], [0], [1], [0, 0, 1, 1], [], []>} : vector<24x128xf32>, vector<128x128xf32>, vector<24x128xf32> -> vector<24x128xf32>
    %c3 = arith.constant 3 : index
    %c0_24 = arith.constant 0 : index
    %c0_25 = arith.constant 0 : index
    %40 = vector.load %arg8[%c3, %c0_24, %c0_25] : memref<4x128x128xf32, #tpu.memory_space<vmem>>, vector<1x128x128xf32>
    %41 = vector.shape_cast %40 : vector<1x128x128xf32> to vector<128x128xf32>
    %cst_26 = arith.constant dense<0.000000e+00> : vector<24x128xf32>
    %42 = tpu.matmul %39, %41, %cst_26 {dimension_numbers = #tpu.dot_dimension_numbers<[1], [0], [0], [1], [0, 0, 1, 1], [], []>} : vector<24x128xf32>, vector<128x128xf32>, vector<24x128xf32> -> vector<24x128xf32>
    %c0_27 = arith.constant 0 : index
    %c0_28 = arith.constant 0 : index
    %43 = vector.load %arg9[%c0_27, %c0_28] : memref<1x128xf32, #tpu.memory_space<vmem>>, vector<1x128xf32>
    %44 = vector.broadcast %43 : vector<1x128xf32> to vector<24x128xf32>
    %45 = arith.addf %42, %44 : vector<24x128xf32>
    %46 = math.tanh %45 : vector<24x128xf32>
    %c0_29 = arith.constant 0 : index
    %c0_30 = arith.constant 0 : index
    %47 = vector.load %arg34[%c0_29, %c0_30] : memref<24x128xf32, #tpu.memory_space<vmem>>, vector<24x128xf32>
    tpu.vector_store %arg34[%c0_29, %c0_30], %46 {strides = array<i32>} : memref<24x128xf32, #tpu.memory_space<vmem>>, vector<24x128xf32>,
    %48 = arith.index_cast %arg0 : i32 to index
    %c0_31 = arith.constant 0 : index
    %49 = memref.load %arg1[%48, %c0_31] : memref<7x2xi32, #tpu.memory_space<smem>>
    %50 = arith.index_cast %arg0 : i32 to index
    %c0_32 = arith.constant 0 : index
    %51 = memref.load %arg2[%50, %c0_32] : memref<7x2xi32, #tpu.memory_space<smem>>
    %52 = arith.sitofp %51 : i32 to f32
    %c8_i32 = arith.constant 8 : i32
    %53 = arith.addi %c8_i32, %49 : i32
    %54 = arith.index_cast %53 : i32 to index
    %c0_33 = arith.constant 0 : index
    %55 = vector.load %arg34[%54, %c0_33] : memref<24x128xf32, #tpu.memory_space<vmem>>, vector<1x128xf32>
    %56 = vector.broadcast %52 : f32 to vector<1x128xf32>
    %57 = arith.mulf %55, %56 : vector<1x128xf32>
    %c0_34 = arith.constant 0 : index
    %c0_35 = arith.constant 0 : index
    %58 = vector.load %arg38[%c0_34, %c0_35] : memref<8x128xf32, #tpu.memory_space<vmem>>, vector<1x128xf32>
    tpu.vector_store %arg38[%c0_34, %c0_35], %57 {strides = array<i32>} : memref<8x128xf32, #tpu.memory_space<vmem>>, vector<1x128xf32>,
    %59 = arith.index_cast %arg0 : i32 to index
    %c1_36 = arith.constant 1 : index
    %60 = memref.load %arg1[%59, %c1_36] : memref<7x2xi32, #tpu.memory_space<smem>>
    %61 = arith.index_cast %arg0 : i32 to index
    %c1_37 = arith.constant 1 : index
    %62 = memref.load %arg2[%61, %c1_37] : memref<7x2xi32, #tpu.memory_space<smem>>
    %63 = arith.sitofp %62 : i32 to f32
    %c8_i32_38 = arith.constant 8 : i32
    %64 = arith.addi %c8_i32_38, %60 : i32
    %65 = arith.index_cast %64 : i32 to index
    %c0_39 = arith.constant 0 : index
    %66 = vector.load %arg34[%65, %c0_39] : memref<24x128xf32, #tpu.memory_space<vmem>>, vector<1x128xf32>
    %67 = vector.broadcast %63 : f32 to vector<1x128xf32>
    %68 = arith.mulf %66, %67 : vector<1x128xf32>
    %c1_40 = arith.constant 1 : index
    %c0_41 = arith.constant 0 : index
    %69 = vector.load %arg38[%c1_40, %c0_41] : memref<8x128xf32, #tpu.memory_space<vmem>>, vector<1x128xf32>
    tpu.vector_store %arg38[%c1_40, %c0_41], %68 {strides = array<i32>} : memref<8x128xf32, #tpu.memory_space<vmem>>, vector<1x128xf32>,
    %c0_42 = arith.constant 0 : index
    %c0_43 = arith.constant 0 : index
    %70 = vector.load %arg38[%c0_42, %c0_43] : memref<8x128xf32, #tpu.memory_space<vmem>>, vector<8x128xf32>
    %c0_44 = arith.constant 0 : index
    %c0_45 = arith.constant 0 : index
    %c0_46 = arith.constant 0 : index
    %71 = vector.load %arg28[%c0_44, %c0_45, %c0_46] : memref<1x8x128xf32, #tpu.memory_space<vmem>>, vector<1x8x128xf32>
    %72 = vector.shape_cast %71 : vector<1x8x128xf32> to vector<8x128xf32>
    %73 = arith.addf %70, %72 : vector<8x128xf32>
    %c0_47 = arith.constant 0 : index
    %c0_48 = arith.constant 0 : index
    %c0_49 = arith.constant 0 : index
    %74 = vector.load %arg29[%c0_47, %c0_48, %c0_49] : memref<1x8x128xf32, #tpu.memory_space<vmem>>, vector<1x8x128xf32>
    %75 = vector.shape_cast %74 : vector<1x8x128xf32> to vector<8x128xf32>
    %76 = tpu.concatenate %73, %75 in 1 : vector<8x128xf32>, vector<8x128xf32> -> vector<8x256xf32>
    %c0_50 = arith.constant 0 : index
    %c0_51 = arith.constant 0 : index
    %77 = vector.load %arg35[%c0_50, %c0_51] : memref<8x128xf32, #tpu.memory_space<vmem>>, vector<8x128xf32>
    %c0_52 = arith.constant 0 : index
    %c0_53 = arith.constant 0 : index
    %78 = vector.load %arg10[%c0_52, %c0_53] : memref<256x384xf32, #tpu.memory_space<vmem>>, vector<256x384xf32>
    %cst_54 = arith.constant dense<0.000000e+00> : vector<8x384xf32>
    %79 = tpu.matmul %76, %78, %cst_54 {dimension_numbers = #tpu.dot_dimension_numbers<[1], [0], [0], [1], [0, 0, 1, 1], [], []>} : vector<8x256xf32>, vector<256x384xf32>, vector<8x384xf32> -> vector<8x384xf32>
    %c0_55 = arith.constant 0 : index
    %c0_56 = arith.constant 0 : index
    %80 = vector.load %arg12[%c0_55, %c0_56] : memref<1x384xf32, #tpu.memory_space<vmem>>, vector<1x384xf32>
    %81 = vector.broadcast %80 : vector<1x384xf32> to vector<8x384xf32>
    %82 = arith.addf %79, %81 : vector<8x384xf32>
    %c0_57 = arith.constant 0 : index
    %c0_58 = arith.constant 0 : index
    %83 = vector.load %arg11[%c0_57, %c0_58] : memref<128x384xf32, #tpu.memory_space<vmem>>, vector<128x384xf32>
    %cst_59 = arith.constant dense<0.000000e+00> : vector<8x384xf32>
    %84 = tpu.matmul %77, %83, %cst_59 {dimension_numbers = #tpu.dot_dimension_numbers<[1], [0], [0], [1], [0, 0, 1, 1], [], []>} : vector<8x128xf32>, vector<128x384xf32>, vector<8x384xf32> -> vector<8x384xf32>
    %c0_60 = arith.constant 0 : index
    %c0_61 = arith.constant 0 : index
    %85 = vector.load %arg13[%c0_60, %c0_61] : memref<1x384xf32, #tpu.memory_space<vmem>>, vector<1x384xf32>
    %86 = vector.broadcast %85 : vector<1x384xf32> to vector<8x384xf32>
    %87 = arith.addf %84, %86 : vector<8x384xf32>
    %88 = vector.extract_strided_slice %82 {offsets = [0, 0], sizes = [8, 128], strides = [1, 1]} : vector<8x384xf32> to vector<8x128xf32>
    %89 = vector.extract_strided_slice %87 {offsets = [0, 0], sizes = [8, 128], strides = [1, 1]} : vector<8x384xf32> to vector<8x128xf32>
    %90 = arith.addf %88, %89 : vector<8x128xf32>
    %91 = arith.negf %90 : vector<8x128xf32>
    %92 = math.exp %91 : vector<8x128xf32>
    %cst_62 = arith.constant 1.000000e+00 : f32
    %93 = vector.broadcast %cst_62 : f32 to vector<8x128xf32>
    %94 = arith.addf %93, %92 : vector<8x128xf32>
    %95 = arith.divf %93, %94 : vector<8x128xf32>
    %96 = vector.extract_strided_slice %82 {offsets = [0, 128], sizes = [8, 128], strides = [1, 1]} : vector<8x384xf32> to vector<8x128xf32>
    %97 = vector.extract_strided_slice %87 {offsets = [0, 128], sizes = [8, 128], strides = [1, 1]} : vector<8x384xf32> to vector<8x128xf32>
    %98 = arith.addf %96, %97 : vector<8x128xf32>
    %99 = arith.negf %98 : vector<8x128xf32>
    %100 = math.exp %99 : vector<8x128xf32>
    %cst_63 = arith.constant 1.000000e+00 : f32
    %101 = vector.broadcast %cst_63 : f32 to vector<8x128xf32>
    %102 = arith.addf %101, %100 : vector<8x128xf32>
    %103 = arith.divf %101, %102 : vector<8x128xf32>
    %104 = vector.extract_strided_slice %82 {offsets = [0, 256], sizes = [8, 128], strides = [1, 1]} : vector<8x384xf32> to vector<8x128xf32>
    %105 = vector.extract_strided_slice %87 {offsets = [0, 256], sizes = [8, 128], strides = [1, 1]} : vector<8x384xf32> to vector<8x128xf32>
    %106 = arith.mulf %95, %105 : vector<8x128xf32>
    %107 = arith.addf %104, %106 : vector<8x128xf32>
    %108 = math.tanh %107 : vector<8x128xf32>
    %cst_64 = arith.constant 1.000000e+00 : f32
    %109 = vector.broadcast %cst_64 : f32 to vector<8x128xf32>
    %110 = arith.subf %109, %103 : vector<8x128xf32>
    %111 = arith.mulf %110, %108 : vector<8x128xf32>
    %112 = arith.mulf %103, %77 : vector<8x128xf32>
    %113 = arith.addf %111, %112 : vector<8x128xf32>
    %c0_65 = arith.constant 0 : index
    %c0_66 = arith.constant 0 : index
    %114 = vector.load %arg35[%c0_65, %c0_66] : memref<8x128xf32, #tpu.memory_space<vmem>>, vector<8x128xf32>
    tpu.vector_store %arg35[%c0_65, %c0_66], %113 {strides = array<i32>} : memref<8x128xf32, #tpu.memory_space<vmem>>, vector<8x128xf32>,
    %c0_67 = arith.constant 0 : index
    %c0_68 = arith.constant 0 : index
    %115 = vector.load %arg36[%c0_67, %c0_68] : memref<8x128xf32, #tpu.memory_space<vmem>>, vector<8x128xf32>
    %c0_69 = arith.constant 0 : index
    %c0_70 = arith.constant 0 : index
    %116 = vector.load %arg14[%c0_69, %c0_70] : memref<128x384xf32, #tpu.memory_space<vmem>>, vector<128x384xf32>
    %cst_71 = arith.constant dense<0.000000e+00> : vector<8x384xf32>
    %117 = tpu.matmul %113, %116, %cst_71 {dimension_numbers = #tpu.dot_dimension_numbers<[1], [0], [0], [1], [0, 0, 1, 1], [], []>} : vector<8x128xf32>, vector<128x384xf32>, vector<8x384xf32> -> vector<8x384xf32>
    %c0_72 = arith.constant 0 : index
    %c0_73 = arith.constant 0 : index
    %118 = vector.load %arg16[%c0_72, %c0_73] : memref<1x384xf32, #tpu.memory_space<vmem>>, vector<1x384xf32>
    %119 = vector.broadcast %118 : vector<1x384xf32> to vector<8x384xf32>
    %120 = arith.addf %117, %119 : vector<8x384xf32>
    %c0_74 = arith.constant 0 : index
    %c0_75 = arith.constant 0 : index
    %121 = vector.load %arg15[%c0_74, %c0_75] : memref<128x384xf32, #tpu.memory_space<vmem>>, vector<128x384xf32>
    %cst_76 = arith.constant dense<0.000000e+00> : vector<8x384xf32>
    %122 = tpu.matmul %115, %121, %cst_76 {dimension_numbers = #tpu.dot_dimension_numbers<[1], [0], [0], [1], [0, 0, 1, 1], [], []>} : vector<8x128xf32>, vector<128x384xf32>, vector<8x384xf32> -> vector<8x384xf32>
    %c0_77 = arith.constant 0 : index
    %c0_78 = arith.constant 0 : index
    %123 = vector.load %arg17[%c0_77, %c0_78] : memref<1x384xf32, #tpu.memory_space<vmem>>, vector<1x384xf32>
    %124 = vector.broadcast %123 : vector<1x384xf32> to vector<8x384xf32>
    %125 = arith.addf %122, %124 : vector<8x384xf32>
    %126 = vector.extract_strided_slice %120 {offsets = [0, 0], sizes = [8, 128], strides = [1, 1]} : vector<8x384xf32> to vector<8x128xf32>
    %127 = vector.extract_strided_slice %125 {offsets = [0, 0], sizes = [8, 128], strides = [1, 1]} : vector<8x384xf32> to vector<8x128xf32>
    %128 = arith.addf %126, %127 : vector<8x128xf32>
    %129 = arith.negf %128 : vector<8x128xf32>
    %130 = math.exp %129 : vector<8x128xf32>
    %cst_79 = arith.constant 1.000000e+00 : f32
    %131 = vector.broadcast %cst_79 : f32 to vector<8x128xf32>
    %132 = arith.addf %131, %130 : vector<8x128xf32>
    %133 = arith.divf %131, %132 : vector<8x128xf32>
    %134 = vector.extract_strided_slice %120 {offsets = [0, 128], sizes = [8, 128], strides = [1, 1]} : vector<8x384xf32> to vector<8x128xf32>
    %135 = vector.extract_strided_slice %125 {offsets = [0, 128], sizes = [8, 128], strides = [1, 1]} : vector<8x384xf32> to vector<8x128xf32>
    %136 = arith.addf %134, %135 : vector<8x128xf32>
    %137 = arith.negf %136 : vector<8x128xf32>
    %138 = math.exp %137 : vector<8x128xf32>
    %cst_80 = arith.constant 1.000000e+00 : f32
    %139 = vector.broadcast %cst_80 : f32 to vector<8x128xf32>
    %140 = arith.addf %139, %138 : vector<8x128xf32>
    %141 = arith.divf %139, %140 : vector<8x128xf32>
    %142 = vector.extract_strided_slice %120 {offsets = [0, 256], sizes = [8, 128], strides = [1, 1]} : vector<8x384xf32> to vector<8x128xf32>
    %143 = vector.extract_strided_slice %125 {offsets = [0, 256], sizes = [8, 128], strides = [1, 1]} : vector<8x384xf32> to vector<8x128xf32>
    %144 = arith.mulf %133, %143 : vector<8x128xf32>
    %145 = arith.addf %142, %144 : vector<8x128xf32>
    %146 = math.tanh %145 : vector<8x128xf32>
    %cst_81 = arith.constant 1.000000e+00 : f32
    %147 = vector.broadcast %cst_81 : f32 to vector<8x128xf32>
    %148 = arith.subf %147, %141 : vector<8x128xf32>
    %149 = arith.mulf %148, %146 : vector<8x128xf32>
    %150 = arith.mulf %141, %115 : vector<8x128xf32>
    %151 = arith.addf %149, %150 : vector<8x128xf32>
    %c0_82 = arith.constant 0 : index
    %c0_83 = arith.constant 0 : index
    %c0_84 = arith.constant 0 : index
    %c0_85 = arith.constant 0 : index
    %152 = vector.load %arg32[%c0_82, %c0_83, %c0_84, %c0_85] : memref<1x8x3x8xf32, #tpu.memory_space<vmem>>, vector<1x8x3x8xf32>
    %153 = vector.shape_cast %152 : vector<1x8x3x8xf32> to vector<8x3x8xf32>
    %c0_86 = arith.constant 0 : index
    %c0_87 = arith.constant 0 : index
    %c0_88 = arith.constant 0 : index
    %154 = vector.load %arg37[%c0_86, %c0_87, %c0_88] : memref<8x8x128xf32, #tpu.memory_space<vmem>>, vector<8x8x128xf32>
    "tpu.trace_start"() <{level = 10 : i32, message = "bst,btd->bsd"}> : () -> ()
    %cst_89 = arith.constant dense<0.000000e+00> : vector<8x3x128xf32>
    %155 = tpu.matmul %153, %154, %cst_89 {dimension_numbers = #tpu.dot_dimension_numbers<[2], [1], [1], [2], [0, 0, 0, 1, 1, 2], [0], [0]>} : vector<8x3x8xf32>, vector<8x8x128xf32>, vector<8x3x128xf32> -> vector<8x3x128xf32>
    "tpu.trace_stop"() : () -> ()
    %c0_90 = arith.constant 0 : index
    %c0_91 = arith.constant 0 : index
    %c0_92 = arith.constant 0 : index
    %156 = vector.load %arg30[%c0_90, %c0_91, %c0_92] : memref<1x8x128xf32, #tpu.memory_space<vmem>>, vector<1x8x128xf32>
    %157 = vector.shape_cast %156 : vector<1x8x128xf32> to vector<8x128xf32>
    %c0_93 = arith.constant 0 : index
    %c0_94 = arith.constant 0 : index
    %c0_95 = arith.constant 0 : index
    %158 = vector.load %arg31[%c0_93, %c0_94, %c0_95] : memref<1x8x8xf32, #tpu.memory_space<vmem>>, vector<1x8x8xf32>
    %159 = vector.shape_cast %158 : vector<1x8x8xf32> to vector<8x8xf32>
    %c0_96 = arith.constant 0 : index
    %c0_97 = arith.constant 0 : index
    %160 = vector.load %arg20[%c0_96, %c0_97] : memref<128x128xf32, #tpu.memory_space<vmem>>, vector<128x128xf32>
    %cst_98 = arith.constant dense<0.000000e+00> : vector<8x128xf32>
    %161 = tpu.matmul %157, %160, %cst_98 {dimension_numbers = #tpu.dot_dimension_numbers<[1], [0], [0], [1], [0, 0, 1, 1], [], []>} : vector<8x128xf32>, vector<128x128xf32>, vector<8x128xf32> -> vector<8x128xf32>
    %c0_99 = arith.constant 0 : index
    %c0_100 = arith.constant 0 : index
    %162 = vector.load %arg21[%c0_99, %c0_100] : memref<1x128xf32, #tpu.memory_space<vmem>>, vector<1x128xf32>
    %163 = vector.broadcast %162 : vector<1x128xf32> to vector<8x128xf32>
    %164 = arith.addf %161, %163 : vector<8x128xf32>
    %165 = math.tanh %164 : vector<8x128xf32>
    %c0_101 = arith.constant 0 : index
    %c0_102 = arith.constant 0 : index
    %166 = vector.load %arg22[%c0_101, %c0_102] : memref<1x128xf32, #tpu.memory_space<vmem>>, vector<1x128xf32>
    %167 = vector.broadcast %166 : vector<1x128xf32> to vector<8x128xf32>
    %168 = arith.mulf %165, %167 : vector<8x128xf32>
    %cst_103 = arith.constant dense<0.000000e+00> : vector<8xf32>
    %169 = vector.multi_reduction <add>, %168, %cst_103 [1] : vector<8x128xf32> to vector<8xf32>
    %170 = vector.shape_cast %169 : vector<8xf32> to vector<8x1xf32>
    %c0_104 = arith.constant 0 : index
    %c0_105 = arith.constant 0 : index
    %171 = vector.load %arg24[%c0_104, %c0_105] : memref<128x8xf32, #tpu.memory_space<vmem>>, vector<128x8xf32>
    %cst_106 = arith.constant dense<0.000000e+00> : vector<8x8xf32>
    %172 = tpu.matmul %151, %171, %cst_106 {dimension_numbers = #tpu.dot_dimension_numbers<[1], [0], [0], [1], [0, 0, 1, 1], [], []>} : vector<8x128xf32>, vector<128x8xf32>, vector<8x8xf32> -> vector<8x8xf32>
    %173 = arith.mulf %172, %159 : vector<8x8xf32>
    %174 = vector.shape_cast %173 : vector<8x8xf32> to vector<8x1x8xf32>
    %175 = arith.mulf %151, %157 : vector<8x128xf32>
    %cst_107 = arith.constant dense<0.000000e+00> : vector<8xf32>
    %176 = vector.multi_reduction <add>, %175, %cst_107 [1] : vector<8x128xf32> to vector<8xf32>
    %177 = vector.shape_cast %176 : vector<8xf32> to vector<8x1xf32>
    %178 = vector.shape_cast %177 : vector<8x1xf32> to vector<8x1x1xf32>
    %c0_108 = arith.constant 0 : index
    %c0_109 = arith.constant 0 : index
    %179 = vector.load %arg18[%c0_108, %c0_109] : memref<128x128xf32, #tpu.memory_space<vmem>>, vector<128x128xf32>
    %cst_110 = arith.constant dense<0.000000e+00> : vector<8x128xf32>
    %180 = tpu.matmul %151, %179, %cst_110 {dimension_numbers = #tpu.dot_dimension_numbers<[1], [0], [0], [1], [0, 0, 1, 1], [], []>} : vector<8x128xf32>, vector<128x128xf32>, vector<8x128xf32> -> vector<8x128xf32>
    %c0_111 = arith.constant 0 : index
    %c0_112 = arith.constant 0 : index
    %181 = vector.load %arg19[%c0_111, %c0_112] : memref<1x128xf32, #tpu.memory_space<vmem>>, vector<1x128xf32>
    %182 = vector.broadcast %181 : vector<1x128xf32> to vector<8x128xf32>
    %183 = arith.addf %180, %182 : vector<8x128xf32>
    %184 = math.tanh %183 : vector<8x128xf32>
    %c0_113 = arith.constant 0 : index
    %c0_114 = arith.constant 0 : index
    %185 = vector.load %arg23[%c0_113, %c0_114] : memref<1x128xf32, #tpu.memory_space<vmem>>, vector<1x128xf32>
    %186 = vector.broadcast %185 : vector<1x128xf32> to vector<8x128xf32>
    %187 = arith.mulf %184, %186 : vector<8x128xf32>
    %cst_115 = arith.constant dense<0.000000e+00> : vector<8xf32>
    %188 = vector.multi_reduction <add>, %187, %cst_115 [1] : vector<8x128xf32> to vector<8xf32>
    %189 = vector.shape_cast %188 : vector<8xf32> to vector<8x1xf32>
    %190 = vector.shape_cast %189 : vector<8x1xf32> to vector<8x1x1xf32>
    %191 = vector.extract_strided_slice %155 {offsets = [0, 0, 0], sizes = [8, 1, 128], strides = [1, 1, 1]} : vector<8x3x128xf32> to vector<8x1x128xf32>
    %192 = vector.shape_cast %191 : vector<8x1x128xf32> to vector<8x128xf32>
    %c0_116 = arith.constant 0 : index
    %c0_117 = arith.constant 0 : index
    %193 = vector.load %arg24[%c0_116, %c0_117] : memref<128x8xf32, #tpu.memory_space<vmem>>, vector<128x8xf32>
    %cst_118 = arith.constant dense<0.000000e+00> : vector<8x8xf32>
    %194 = tpu.matmul %192, %193, %cst_118 {dimension_numbers = #tpu.dot_dimension_numbers<[1], [0], [0], [1], [0, 0, 1, 1], [], []>} : vector<8x128xf32>, vector<128x8xf32>, vector<8x8xf32> -> vector<8x8xf32>
    %195 = arith.mulf %194, %159 : vector<8x8xf32>
    %196 = vector.shape_cast %195 : vector<8x8xf32> to vector<8x1x8xf32>
    %197 = arith.mulf %192, %157 : vector<8x128xf32>
    %cst_119 = arith.constant dense<0.000000e+00> : vector<8xf32>
    %198 = vector.multi_reduction <add>, %197, %cst_119 [1] : vector<8x128xf32> to vector<8xf32>
    %199 = vector.shape_cast %198 : vector<8xf32> to vector<8x1xf32>
    %200 = vector.shape_cast %199 : vector<8x1xf32> to vector<8x1x1xf32>
    %c0_120 = arith.constant 0 : index
    %c0_121 = arith.constant 0 : index
    %201 = vector.load %arg18[%c0_120, %c0_121] : memref<128x128xf32, #tpu.memory_space<vmem>>, vector<128x128xf32>
    %cst_122 = arith.constant dense<0.000000e+00> : vector<8x128xf32>
    %202 = tpu.matmul %192, %201, %cst_122 {dimension_numbers = #tpu.dot_dimension_numbers<[1], [0], [0], [1], [0, 0, 1, 1], [], []>} : vector<8x128xf32>, vector<128x128xf32>, vector<8x128xf32> -> vector<8x128xf32>
    %c0_123 = arith.constant 0 : index
    %c0_124 = arith.constant 0 : index
    %203 = vector.load %arg19[%c0_123, %c0_124] : memref<1x128xf32, #tpu.memory_space<vmem>>, vector<1x128xf32>
    %204 = vector.broadcast %203 : vector<1x128xf32> to vector<8x128xf32>
    %205 = arith.addf %202, %204 : vector<8x128xf32>
    %206 = math.tanh %205 : vector<8x128xf32>
    %c0_125 = arith.constant 0 : index
    %c0_126 = arith.constant 0 : index
    %207 = vector.load %arg23[%c0_125, %c0_126] : memref<1x128xf32, #tpu.memory_space<vmem>>, vector<1x128xf32>
    %208 = vector.broadcast %207 : vector<1x128xf32> to vector<8x128xf32>
    %209 = arith.mulf %206, %208 : vector<8x128xf32>
    %cst_127 = arith.constant dense<0.000000e+00> : vector<8xf32>
    %210 = vector.multi_reduction <add>, %209, %cst_127 [1] : vector<8x128xf32> to vector<8xf32>
    %211 = vector.shape_cast %210 : vector<8xf32> to vector<8x1xf32>
    %212 = vector.shape_cast %211 : vector<8x1xf32> to vector<8x1x1xf32>
    %213 = vector.extract_strided_slice %155 {offsets = [0, 1, 0], sizes = [8, 1, 128], strides = [1, 1, 1]} : vector<8x3x128xf32> to vector<8x1x128xf32>
    %214 = vector.shape_cast %213 : vector<8x1x128xf32> to vector<8x128xf32>
    %c0_128 = arith.constant 0 : index
    %c0_129 = arith.constant 0 : index
    %215 = vector.load %arg24[%c0_128, %c0_129] : memref<128x8xf32, #tpu.memory_space<vmem>>, vector<128x8xf32>
    %cst_130 = arith.constant dense<0.000000e+00> : vector<8x8xf32>
    %216 = tpu.matmul %214, %215, %cst_130 {dimension_numbers = #tpu.dot_dimension_numbers<[1], [0], [0], [1], [0, 0, 1, 1], [], []>} : vector<8x128xf32>, vector<128x8xf32>, vector<8x8xf32> -> vector<8x8xf32>
    %217 = arith.mulf %216, %159 : vector<8x8xf32>
    %218 = vector.shape_cast %217 : vector<8x8xf32> to vector<8x1x8xf32>
    %219 = arith.mulf %214, %157 : vector<8x128xf32>
    %cst_131 = arith.constant dense<0.000000e+00> : vector<8xf32>
    %220 = vector.multi_reduction <add>, %219, %cst_131 [1] : vector<8x128xf32> to vector<8xf32>
    %221 = vector.shape_cast %220 : vector<8xf32> to vector<8x1xf32>
    %222 = vector.shape_cast %221 : vector<8x1xf32> to vector<8x1x1xf32>
    %c0_132 = arith.constant 0 : index
    %c0_133 = arith.constant 0 : index
    %223 = vector.load %arg18[%c0_132, %c0_133] : memref<128x128xf32, #tpu.memory_space<vmem>>, vector<128x128xf32>
    %cst_134 = arith.constant dense<0.000000e+00> : vector<8x128xf32>
    %224 = tpu.matmul %214, %223, %cst_134 {dimension_numbers = #tpu.dot_dimension_numbers<[1], [0], [0], [1], [0, 0, 1, 1], [], []>} : vector<8x128xf32>, vector<128x128xf32>, vector<8x128xf32> -> vector<8x128xf32>
    %c0_135 = arith.constant 0 : index
    %c0_136 = arith.constant 0 : index
    %225 = vector.load %arg19[%c0_135, %c0_136] : memref<1x128xf32, #tpu.memory_space<vmem>>, vector<1x128xf32>
    %226 = vector.broadcast %225 : vector<1x128xf32> to vector<8x128xf32>
    %227 = arith.addf %224, %226 : vector<8x128xf32>
    %228 = math.tanh %227 : vector<8x128xf32>
    %c0_137 = arith.constant 0 : index
    %c0_138 = arith.constant 0 : index
    %229 = vector.load %arg23[%c0_137, %c0_138] : memref<1x128xf32, #tpu.memory_space<vmem>>, vector<1x128xf32>
    %230 = vector.broadcast %229 : vector<1x128xf32> to vector<8x128xf32>
    %231 = arith.mulf %228, %230 : vector<8x128xf32>
    %cst_139 = arith.constant dense<0.000000e+00> : vector<8xf32>
    %232 = vector.multi_reduction <add>, %231, %cst_139 [1] : vector<8x128xf32> to vector<8xf32>
    %233 = vector.shape_cast %232 : vector<8xf32> to vector<8x1xf32>
    %234 = vector.shape_cast %233 : vector<8x1xf32> to vector<8x1x1xf32>
    %235 = vector.extract_strided_slice %155 {offsets = [0, 2, 0], sizes = [8, 1, 128], strides = [1, 1, 1]} : vector<8x3x128xf32> to vector<8x1x128xf32>
    %236 = vector.shape_cast %235 : vector<8x1x128xf32> to vector<8x128xf32>
    %c0_140 = arith.constant 0 : index
    %c0_141 = arith.constant 0 : index
    %237 = vector.load %arg24[%c0_140, %c0_141] : memref<128x8xf32, #tpu.memory_space<vmem>>, vector<128x8xf32>
    %cst_142 = arith.constant dense<0.000000e+00> : vector<8x8xf32>
    %238 = tpu.matmul %236, %237, %cst_142 {dimension_numbers = #tpu.dot_dimension_numbers<[1], [0], [0], [1], [0, 0, 1, 1], [], []>} : vector<8x128xf32>, vector<128x8xf32>, vector<8x8xf32> -> vector<8x8xf32>
    %239 = arith.mulf %238, %159 : vector<8x8xf32>
    %240 = vector.shape_cast %239 : vector<8x8xf32> to vector<8x1x8xf32>
    %241 = arith.mulf %236, %157 : vector<8x128xf32>
    %cst_143 = arith.constant dense<0.000000e+00> : vector<8xf32>
    %242 = vector.multi_reduction <add>, %241, %cst_143 [1] : vector<8x128xf32> to vector<8xf32>
    %243 = vector.shape_cast %242 : vector<8xf32> to vector<8x1xf32>
    %244 = vector.shape_cast %243 : vector<8x1xf32> to vector<8x1x1xf32>
    %c0_144 = arith.constant 0 : index
    %c0_145 = arith.constant 0 : index
    %245 = vector.load %arg18[%c0_144, %c0_145] : memref<128x128xf32, #tpu.memory_space<vmem>>, vector<128x128xf32>
    %cst_146 = arith.constant dense<0.000000e+00> : vector<8x128xf32>
    %246 = tpu.matmul %236, %245, %cst_146 {dimension_numbers = #tpu.dot_dimension_numbers<[1], [0], [0], [1], [0, 0, 1, 1], [], []>} : vector<8x128xf32>, vector<128x128xf32>, vector<8x128xf32> -> vector<8x128xf32>
    %c0_147 = arith.constant 0 : index
    %c0_148 = arith.constant 0 : index
    %247 = vector.load %arg19[%c0_147, %c0_148] : memref<1x128xf32, #tpu.memory_space<vmem>>, vector<1x128xf32>
    %248 = vector.broadcast %247 : vector<1x128xf32> to vector<8x128xf32>
    %249 = arith.addf %246, %248 : vector<8x128xf32>
    %250 = math.tanh %249 : vector<8x128xf32>
    %c0_149 = arith.constant 0 : index
    %c0_150 = arith.constant 0 : index
    %251 = vector.load %arg23[%c0_149, %c0_150] : memref<1x128xf32, #tpu.memory_space<vmem>>, vector<1x128xf32>
    %252 = vector.broadcast %251 : vector<1x128xf32> to vector<8x128xf32>
    %253 = arith.mulf %250, %252 : vector<8x128xf32>
    %cst_151 = arith.constant dense<0.000000e+00> : vector<8xf32>
    %254 = vector.multi_reduction <add>, %253, %cst_151 [1] : vector<8x128xf32> to vector<8xf32>
    %255 = vector.shape_cast %254 : vector<8xf32> to vector<8x1xf32>
    %256 = vector.shape_cast %255 : vector<8x1xf32> to vector<8x1x1xf32>
    %257 = tpu.concatenate %174, %196, %218, %240 in 1 : vector<8x1x8xf32>, vector<8x1x8xf32>, vector<8x1x8xf32>, vector<8x1x8xf32> -> vector<8x4x8xf32>
    %258 = tpu.concatenate %178, %200, %222, %244 in 1 : vector<8x1x1xf32>, vector<8x1x1xf32>, vector<8x1x1xf32>, vector<8x1x1xf32> -> vector<8x4x1xf32>
    %259 = tpu.concatenate %190, %212, %234, %256 in 1 : vector<8x1x1xf32>, vector<8x1x1xf32>, vector<8x1x1xf32>, vector<8x1x1xf32> -> vector<8x4x1xf32>
    %c3_i32 = arith.constant 3 : i32
    %260 = arith.minsi %arg0, %c3_i32 : i32
    %c1_i32 = arith.constant 1 : i32
    %261 = arith.addi %260, %c1_i32 : i32
    %262 = tpu.iota {dimensions = array<i32: 1>} : vector<1x4x1xi32>
    %263 = vector.broadcast %261 : i32 to vector<1x4x1xi32>
    %264 = arith.cmpi slt, %262, %263 : vector<1x4x1xi32>
    %c0_152 = arith.constant 0 : index
    %c0_153 = arith.constant 0 : index
    %265 = vector.load %arg25[%c0_152, %c0_153] : memref<1x8xf32, #tpu.memory_space<vmem>>, vector<1x8xf32>
    %266 = vector.shape_cast %265 : vector<1x8xf32> to vector<1x1x8xf32>
    %267 = vector.broadcast %266 : vector<1x1x8xf32> to vector<8x4x8xf32>
    %268 = vector.broadcast %259 : vector<8x4x1xf32> to vector<8x4x8xf32>
    %269 = arith.addf %267, %268 : vector<8x4x8xf32>
    %cst_154 = arith.constant -1.000000e+30 : f32
    %270 = vector.shape_cast %264 : vector<1x4x1xi1> to vector<1x4x1xi1>
    %271 = vector.broadcast %270 : vector<1x4x1xi1> to vector<8x4x8xi1>
    %272 = vector.broadcast %cst_154 : f32 to vector<8x4x8xf32>
    %273 = arith.select %271, %269, %272 : vector<8x4x8xi1>, vector<8x4x8xf32>
    %274 = vector.shape_cast %170 : vector<8x1xf32> to vector<8x1x1xf32>
    %275 = vector.broadcast %274 : vector<8x1x1xf32> to vector<8x4x1xf32>
    %276 = arith.addf %275, %259 : vector<8x4x1xf32>
    %cst_155 = arith.constant -1.000000e+30 : f32
    %277 = vector.shape_cast %264 : vector<1x4x1xi1> to vector<1x4x1xi1>
    %278 = vector.broadcast %277 : vector<1x4x1xi1> to vector<8x4x1xi1>
    %279 = vector.broadcast %cst_155 : f32 to vector<8x4x1xf32>
    %280 = arith.select %278, %276, %279 : vector<8x4x1xi1>, vector<8x4x1xf32>
    %cst_156 = arith.constant dense<0xFF800000> : vector<8x8xf32>
    %281 = vector.multi_reduction <maximumf>, %273, %cst_156 [1] : vector<8x4x8xf32> to vector<8x8xf32>
    %cst_157 = arith.constant 0xFF800000 : f32
    %282 = vector.broadcast %cst_157 : f32 to vector<8x8xf32>
    %283 = arith.maximumf %282, %281 : vector<8x8xf32>
    %284 = vector.shape_cast %283 : vector<8x8xf32> to vector<8x1x8xf32>
    %285 = vector.broadcast %284 : vector<8x1x8xf32> to vector<8x4x8xf32>
    %286 = arith.subf %273, %285 : vector<8x4x8xf32>
    %287 = math.exp %286 : vector<8x4x8xf32>
    %cst_158 = arith.constant dense<0.000000e+00> : vector<8x8xf32>
    %288 = vector.multi_reduction <add>, %287, %cst_158 [1] : vector<8x4x8xf32> to vector<8x8xf32>
    %289 = vector.shape_cast %288 : vector<8x8xf32> to vector<8x1x8xf32>
    %290 = vector.broadcast %289 : vector<8x1x8xf32> to vector<8x4x8xf32>
    %291 = arith.divf %287, %290 : vector<8x4x8xf32>
    %cst_159 = arith.constant dense<0xFF800000> : vector<8x1xf32>
    %292 = vector.multi_reduction <maximumf>, %280, %cst_159 [1] : vector<8x4x1xf32> to vector<8x1xf32>
    %cst_160 = arith.constant 0xFF800000 : f32
    %293 = vector.broadcast %cst_160 : f32 to vector<8x1xf32>
    %294 = arith.maximumf %293, %292 : vector<8x1xf32>
    %295 = vector.shape_cast %294 : vector<8x1xf32> to vector<8x1x1xf32>
    %296 = vector.broadcast %295 : vector<8x1x1xf32> to vector<8x4x1xf32>
    %297 = arith.subf %280, %296 : vector<8x4x1xf32>
    %298 = math.exp %297 : vector<8x4x1xf32>
    %cst_161 = arith.constant dense<0.000000e+00> : vector<8x1xf32>
    %299 = vector.multi_reduction <add>, %298, %cst_161 [1] : vector<8x4x1xf32> to vector<8x1xf32>
    %300 = vector.shape_cast %299 : vector<8x1xf32> to vector<8x1x1xf32>
    %301 = vector.broadcast %300 : vector<8x1x1xf32> to vector<8x4x1xf32>
    %302 = arith.divf %298, %301 : vector<8x4x1xf32>
    %303 = arith.mulf %291, %257 : vector<8x4x8xf32>
    %cst_162 = arith.constant dense<0.000000e+00> : vector<8x4xf32>
    %304 = vector.multi_reduction <add>, %303, %cst_162 [2] : vector<8x4x8xf32> to vector<8x4xf32>
    %cst_163 = arith.constant dense<0.000000e+00> : vector<8xf32>
    %305 = vector.multi_reduction <add>, %304, %cst_163 [1] : vector<8x4xf32> to vector<8xf32>
    %306 = vector.shape_cast %305 : vector<8xf32> to vector<8x1xf32>
    %307 = arith.mulf %302, %258 : vector<8x4x1xf32>
    %cst_164 = arith.constant dense<0.000000e+00> : vector<8x4xf32>
    %308 = vector.multi_reduction <add>, %307, %cst_164 [2] : vector<8x4x1xf32> to vector<8x4xf32>
    %cst_165 = arith.constant dense<0.000000e+00> : vector<8xf32>
    %309 = vector.multi_reduction <add>, %308, %cst_165 [1] : vector<8x4xf32> to vector<8xf32>
    %310 = vector.shape_cast %309 : vector<8xf32> to vector<8x1xf32>
    %311 = arith.addf %306, %310 : vector<8x1xf32>
    %312 = arith.negf %311 : vector<8x1xf32>
    %313 = math.exp %312 : vector<8x1xf32>
    %cst_166 = arith.constant 1.000000e+00 : f32
    %314 = vector.broadcast %cst_166 : f32 to vector<8x1xf32>
    %315 = arith.addf %314, %313 : vector<8x1xf32>
    %316 = arith.divf %314, %315 : vector<8x1xf32>
    %317 = vector.shape_cast %316 : vector<8x1xf32> to vector<1x8x1xf32>
    %c0_167 = arith.constant 0 : index
    %c0_168 = arith.constant 0 : index
    %c0_169 = arith.constant 0 : index
    %318 = vector.load %arg33[%c0_167, %c0_168, %c0_169] : memref<1x8x1xf32, #tpu.memory_space<vmem>>, vector<1x8x1xf32>
    tpu.vector_store %arg33[%c0_167, %c0_168, %c0_169], %317 {strides = array<i32>} : memref<1x8x1xf32, #tpu.memory_space<vmem>>, vector<1x8x1xf32>,
    %c0_i32_170 = arith.constant 0 : i32
    %319 = arith.cmpi sgt, %arg0, %c0_i32_170 : i32
    %320 = arith.extui %319 : i1 to i32
    %c0_i32_171 = arith.constant 0 : i32
    %321 = arith.cmpi ne, %320, %c0_i32_171 : i32
    scf.if %321 {
      %c0_172 = arith.constant 0 : index
      %c0_173 = arith.constant 0 : index
      %322 = vector.load %arg36[%c0_172, %c0_173] : memref<8x128xf32, #tpu.memory_space<vmem>>, vector<8x128xf32>
      tpu.vector_store %arg36[%c0_172, %c0_173], %151 {strides = array<i32>} : memref<8x128xf32, #tpu.memory_space<vmem>>, vector<8x128xf32>,
      %323 = vector.shape_cast %151 : vector<8x128xf32> to vector<8x1x128xf32>
      %c0_174 = arith.constant 0 : index
      %324 = arith.index_cast %arg0 : i32 to index
      %c0_175 = arith.constant 0 : index
      %325 = vector.load %arg37[%c0_174, %324, %c0_175] : memref<8x8x128xf32, #tpu.memory_space<vmem>>, vector<8x1x128xf32>
      tpu.vector_store %arg37[%c0_174, %324, %c0_175], %323 {strides = array<i32>} : memref<8x8x128xf32, #tpu.memory_space<vmem>>, vector<8x1x128xf32>,
    } else {
    }
    return
  }
  func.func @transform_0(%arg0: i32, %arg1: memref<7x2xi32, #tpu.memory_space<smem>>, %arg2: memref<7x2xi32, #tpu.memory_space<smem>>) -> (i32, i32) {
    %c0_i32 = arith.constant 0 : i32
    %c0_i32_0 = arith.constant 0 : i32
    %c0_i32_1 = arith.constant 0 : i32
    return %c0_i32, %c0_i32_0 : i32, i32
  }
  func.func @transform_1(%arg0: i32, %arg1: memref<7x2xi32, #tpu.memory_space<smem>>, %arg2: memref<7x2xi32, #tpu.memory_space<smem>>) -> (i32, i32) {
    %c0_i32 = arith.constant 0 : i32
    %c0_i32_0 = arith.constant 0 : i32
    %c0_i32_1 = arith.constant 0 : i32
    return %c0_i32, %c0_i32_0 : i32, i32
  }
  func.func @transform_2(%arg0: i32, %arg1: memref<7x2xi32, #tpu.memory_space<smem>>, %arg2: memref<7x2xi32, #tpu.memory_space<smem>>) -> (i32, i32) {
    %c0_i32 = arith.constant 0 : i32
    %c0_i32_0 = arith.constant 0 : i32
    %c0_i32_1 = arith.constant 0 : i32
    return %c0_i32, %c0_i32_0 : i32, i32
  }
  func.func @transform_3(%arg0: i32, %arg1: memref<7x2xi32, #tpu.memory_space<smem>>, %arg2: memref<7x2xi32, #tpu.memory_space<smem>>) -> (i32, i32) {
    %c0_i32 = arith.constant 0 : i32
    %c0_i32_0 = arith.constant 0 : i32
    %c0_i32_1 = arith.constant 0 : i32
    return %c0_i32, %c0_i32_0 : i32, i32
  }
  func.func @transform_4(%arg0: i32, %arg1: memref<7x2xi32, #tpu.memory_space<smem>>, %arg2: memref<7x2xi32, #tpu.memory_space<smem>>) -> (i32, i32) {
    %c0_i32 = arith.constant 0 : i32
    %c0_i32_0 = arith.constant 0 : i32
    %c0_i32_1 = arith.constant 0 : i32
    return %c0_i32, %c0_i32_0 : i32, i32
  }
  func.func @transform_5(%arg0: i32, %arg1: memref<7x2xi32, #tpu.memory_space<smem>>, %arg2: memref<7x2xi32, #tpu.memory_space<smem>>) -> (i32, i32, i32) {
    %c0_i32 = arith.constant 0 : i32
    %c0_i32_0 = arith.constant 0 : i32
    %c0_i32_1 = arith.constant 0 : i32
    %c0_i32_2 = arith.constant 0 : i32
    return %c0_i32, %c0_i32_0, %c0_i32_1 : i32, i32, i32
  }
  func.func @transform_6(%arg0: i32, %arg1: memref<7x2xi32, #tpu.memory_space<smem>>, %arg2: memref<7x2xi32, #tpu.memory_space<smem>>) -> (i32, i32) {
    %c0_i32 = arith.constant 0 : i32
    %c0_i32_0 = arith.constant 0 : i32
    %c0_i32_1 = arith.constant 0 : i32
    return %c0_i32, %c0_i32_0 : i32, i32
  }
  func.func @transform_7(%arg0: i32, %arg1: memref<7x2xi32, #tpu.memory_space<smem>>, %arg2: memref<7x2xi32, #tpu.memory_space<smem>>) -> (i32, i32) {
    %c0_i32 = arith.constant 0 : i32
    %c0_i32_0 = arith.constant 0 : i32
    %c0_i32_1 = arith.constant 0 : i32
    return %c0_i32, %c0_i32_0 : i32, i32
  }
  func.func @transform_8(%arg0: i32, %arg1: memref<7x2xi32, #tpu.memory_space<smem>>, %arg2: memref<7x2xi32, #tpu.memory_space<smem>>) -> (i32, i32) {
    %c0_i32 = arith.constant 0 : i32
    %c0_i32_0 = arith.constant 0 : i32
    %c0_i32_1 = arith.constant 0 : i32
    return %c0_i32, %c0_i32_0 : i32, i32
  }
  func.func @transform_9(%arg0: i32, %arg1: memref<7x2xi32, #tpu.memory_space<smem>>, %arg2: memref<7x2xi32, #tpu.memory_space<smem>>) -> (i32, i32) {
    %c0_i32 = arith.constant 0 : i32
    %c0_i32_0 = arith.constant 0 : i32
    %c0_i32_1 = arith.constant 0 : i32
    return %c0_i32, %c0_i32_0 : i32, i32
  }
  func.func @transform_10(%arg0: i32, %arg1: memref<7x2xi32, #tpu.memory_space<smem>>, %arg2: memref<7x2xi32, #tpu.memory_space<smem>>) -> (i32, i32) {
    %c0_i32 = arith.constant 0 : i32
    %c0_i32_0 = arith.constant 0 : i32
    %c0_i32_1 = arith.constant 0 : i32
    return %c0_i32, %c0_i32_0 : i32, i32
  }
  func.func @transform_11(%arg0: i32, %arg1: memref<7x2xi32, #tpu.memory_space<smem>>, %arg2: memref<7x2xi32, #tpu.memory_space<smem>>) -> (i32, i32) {
    %c0_i32 = arith.constant 0 : i32
    %c0_i32_0 = arith.constant 0 : i32
    %c0_i32_1 = arith.constant 0 : i32
    return %c0_i32, %c0_i32_0 : i32, i32
  }
  func.func @transform_12(%arg0: i32, %arg1: memref<7x2xi32, #tpu.memory_space<smem>>, %arg2: memref<7x2xi32, #tpu.memory_space<smem>>) -> (i32, i32) {
    %c0_i32 = arith.constant 0 : i32
    %c0_i32_0 = arith.constant 0 : i32
    %c0_i32_1 = arith.constant 0 : i32
    return %c0_i32, %c0_i32_0 : i32, i32
  }
  func.func @transform_13(%arg0: i32, %arg1: memref<7x2xi32, #tpu.memory_space<smem>>, %arg2: memref<7x2xi32, #tpu.memory_space<smem>>) -> (i32, i32) {
    %c0_i32 = arith.constant 0 : i32
    %c0_i32_0 = arith.constant 0 : i32
    %c0_i32_1 = arith.constant 0 : i32
    return %c0_i32, %c0_i32_0 : i32, i32
  }
  func.func @transform_14(%arg0: i32, %arg1: memref<7x2xi32, #tpu.memory_space<smem>>, %arg2: memref<7x2xi32, #tpu.memory_space<smem>>) -> (i32, i32) {
    %c0_i32 = arith.constant 0 : i32
    %c0_i32_0 = arith.constant 0 : i32
    %c0_i32_1 = arith.constant 0 : i32
    return %c0_i32, %c0_i32_0 : i32, i32
  }
  func.func @transform_15(%arg0: i32, %arg1: memref<7x2xi32, #tpu.memory_space<smem>>, %arg2: memref<7x2xi32, #tpu.memory_space<smem>>) -> (i32, i32) {
    %c0_i32 = arith.constant 0 : i32
    %c0_i32_0 = arith.constant 0 : i32
    %c0_i32_1 = arith.constant 0 : i32
    return %c0_i32, %c0_i32_0 : i32, i32
  }
  func.func @transform_16(%arg0: i32, %arg1: memref<7x2xi32, #tpu.memory_space<smem>>, %arg2: memref<7x2xi32, #tpu.memory_space<smem>>) -> (i32, i32) {
    %c0_i32 = arith.constant 0 : i32
    %c0_i32_0 = arith.constant 0 : i32
    %c0_i32_1 = arith.constant 0 : i32
    return %c0_i32, %c0_i32_0 : i32, i32
  }
  func.func @transform_17(%arg0: i32, %arg1: memref<7x2xi32, #tpu.memory_space<smem>>, %arg2: memref<7x2xi32, #tpu.memory_space<smem>>) -> (i32, i32) {
    %c0_i32 = arith.constant 0 : i32
    %c0_i32_0 = arith.constant 0 : i32
    %c0_i32_1 = arith.constant 0 : i32
    return %c0_i32, %c0_i32_0 : i32, i32
  }
  func.func @transform_18(%arg0: i32, %arg1: memref<7x2xi32, #tpu.memory_space<smem>>, %arg2: memref<7x2xi32, #tpu.memory_space<smem>>) -> (i32, i32) {
    %c0_i32 = arith.constant 0 : i32
    %c0_i32_0 = arith.constant 0 : i32
    %c0_i32_1 = arith.constant 0 : i32
    return %c0_i32, %c0_i32_0 : i32, i32
  }
  func.func @transform_19(%arg0: i32, %arg1: memref<7x2xi32, #tpu.memory_space<smem>>, %arg2: memref<7x2xi32, #tpu.memory_space<smem>>) -> (i32, i32) {
    %c0_i32 = arith.constant 0 : i32
    %c0_i32_0 = arith.constant 0 : i32
    %c0_i32_1 = arith.constant 0 : i32
    return %c0_i32, %c0_i32_0 : i32, i32
  }
  func.func @transform_20(%arg0: i32, %arg1: memref<7x2xi32, #tpu.memory_space<smem>>, %arg2: memref<7x2xi32, #tpu.memory_space<smem>>) -> (i32, i32) {
    %c0_i32 = arith.constant 0 : i32
    %c0_i32_0 = arith.constant 0 : i32
    %c0_i32_1 = arith.constant 0 : i32
    return %c0_i32, %c0_i32_0 : i32, i32
  }
  func.func @transform_21(%arg0: i32, %arg1: memref<7x2xi32, #tpu.memory_space<smem>>, %arg2: memref<7x2xi32, #tpu.memory_space<smem>>) -> (i32, i32) {
    %c0_i32 = arith.constant 0 : i32
    %c0_i32_0 = arith.constant 0 : i32
    %c0_i32_1 = arith.constant 0 : i32
    return %c0_i32, %c0_i32_0 : i32, i32
  }
  func.func @transform_22(%arg0: i32, %arg1: memref<7x2xi32, #tpu.memory_space<smem>>, %arg2: memref<7x2xi32, #tpu.memory_space<smem>>) -> (i32, i32) {
    %c0_i32 = arith.constant 0 : i32
    %c0_i32_0 = arith.constant 0 : i32
    %c0_i32_1 = arith.constant 0 : i32
    return %c0_i32, %c0_i32_0 : i32, i32
  }
  func.func @transform_23(%arg0: i32, %arg1: memref<7x2xi32, #tpu.memory_space<smem>>, %arg2: memref<7x2xi32, #tpu.memory_space<smem>>) -> (i32, i32, i32) {
    %c0_i32 = arith.constant 0 : i32
    %c0_i32_0 = arith.constant 0 : i32
    %c0_i32_1 = arith.constant 0 : i32
    return %arg0, %c0_i32, %c0_i32_0 : i32, i32, i32
  }
  func.func @transform_24(%arg0: i32, %arg1: memref<7x2xi32, #tpu.memory_space<smem>>, %arg2: memref<7x2xi32, #tpu.memory_space<smem>>) -> (i32, i32, i32) {
    %c0_i32 = arith.constant 0 : i32
    %c0_i32_0 = arith.constant 0 : i32
    %c0_i32_1 = arith.constant 0 : i32
    return %arg0, %c0_i32, %c0_i32_0 : i32, i32, i32
  }
  func.func @transform_25(%arg0: i32, %arg1: memref<7x2xi32, #tpu.memory_space<smem>>, %arg2: memref<7x2xi32, #tpu.memory_space<smem>>) -> (i32, i32, i32) {
    %c0_i32 = arith.constant 0 : i32
    %c0_i32_0 = arith.constant 0 : i32
    %c0_i32_1 = arith.constant 0 : i32
    return %arg0, %c0_i32, %c0_i32_0 : i32, i32, i32
  }
  func.func @transform_26(%arg0: i32, %arg1: memref<7x2xi32, #tpu.memory_space<smem>>, %arg2: memref<7x2xi32, #tpu.memory_space<smem>>) -> (i32, i32, i32) {
    %c0_i32 = arith.constant 0 : i32
    %c0_i32_0 = arith.constant 0 : i32
    %c0_i32_1 = arith.constant 0 : i32
    return %arg0, %c0_i32, %c0_i32_0 : i32, i32, i32
  }
  func.func @transform_27(%arg0: i32, %arg1: memref<7x2xi32, #tpu.memory_space<smem>>, %arg2: memref<7x2xi32, #tpu.memory_space<smem>>) -> (i32, i32, i32) {
    %c0_i32 = arith.constant 0 : i32
    %c0_i32_0 = arith.constant 0 : i32
    %c0_i32_1 = arith.constant 0 : i32
    return %arg0, %c0_i32, %c0_i32_0 : i32, i32, i32
  }
  func.func @transform_28(%arg0: i32, %arg1: memref<7x2xi32, #tpu.memory_space<smem>>, %arg2: memref<7x2xi32, #tpu.memory_space<smem>>) -> (i32, i32, i32) {
    %c0_i32 = arith.constant 0 : i32
    %c0_i32_0 = arith.constant 0 : i32
    %c0_i32_1 = arith.constant 0 : i32
    return %arg0, %c0_i32, %c0_i32_0 : i32, i32, i32
  }
  func.func @transform_29(%arg0: i32, %arg1: memref<7x2xi32, #tpu.memory_space<smem>>, %arg2: memref<7x2xi32, #tpu.memory_space<smem>>) -> (i32, i32, i32, i32) {
    %c0_i32 = arith.constant 0 : i32
    %c0_i32_0 = arith.constant 0 : i32
    %c0_i32_1 = arith.constant 0 : i32
    %c0_i32_2 = arith.constant 0 : i32
    return %arg0, %c0_i32, %c0_i32_0, %c0_i32_1 : i32, i32, i32, i32
  }
  func.func @transform_30(%arg0: i32, %arg1: memref<7x2xi32, #tpu.memory_space<smem>>, %arg2: memref<7x2xi32, #tpu.memory_space<smem>>) -> (i32, i32, i32) {
    %c0_i32 = arith.constant 0 : i32
    %c0_i32_0 = arith.constant 0 : i32
    %c0_i32_1 = arith.constant 0 : i32
    return %arg0, %c0_i32, %c0_i32_0 : i32, i32, i32
  }
}

</mosaic_0001>

<bundles_post_ra>
// kernel: gikt_forward.1
= control target key start
LH: loop header
LB: loop body
LE: loop exit
PB: predicated region body
PF: predicated region fallthrough
CT: control target
= control target key end

     0   :  { %s7653_s6 = smov 2   ;;  %s7654_s10 = smov 3   ;;  %s9446_s0 = inlined_call_operand.smem [shape: u32[33], index: -1, kind: input, shape index: {}] }
   0x1   :  { %s7701_s5 = sld [smem:[%s9446_s0]]   ;;  %s7655_s14 = smov 4  }
   0x2   :  { %s7706_s9 = sld [smem:[%s9446_s0 + %s7653_s6]]   ;;  %s7656_s18 = smov 5  }
   0x3   :  { %s7711_s13 = sld [smem:[%s9446_s0 + %s7654_s10]]   ;;  %s7657_s22 = smov 6  }
   0x4   :  { %s7716_s17 = sld [smem:[%s9446_s0 + %s7655_s14]]   ;;  %s7658_s26 = smov 7  }
   0x5   :  { %s7721_s21 = sld [smem:[%s9446_s0 + %s7656_s18]]   ;;  %s7659_s30 = smov 8  }
   0x6   :  { %s7726_s25 = sld [smem:[%s9446_s0 + %s7657_s22]]   ;;  %s7660_s4 = smov 9  }
   0x7   :  { %s7731_s29 = sld [smem:[%s9446_s0 + %s7658_s26]]   ;;  %s7661_s10 = smov 10  }
   0x8   :  { %s7736_s3 = sld [smem:[%s9446_s0 + %s7659_s30]]   ;;  %s7662_s15 = smov 11  }
   0x9   :  { %s7741_s8 = sld [smem:[%s9446_s0 + %s7660_s4]]   ;;  %s7663_s20 = smov 12  }
   0xa   :  { %s7746_s14 = sld [smem:[%s9446_s0 + %s7661_s10]]   ;;  %s7664_s26 = smov 13  }
   0xb   :  { %s7751_s19 = sld [smem:[%s9446_s0 + %s7662_s15]]   ;;  %s7665_s1 = smov 14  }
   0xc   :  { %s7756_s24 = sld [smem:[%s9446_s0 + %s7663_s20]]   ;;  %s7666_s7 = smov 15  }
   0xd   :  { %s7761_s30 = sld [smem:[%s9446_s0 + %s7664_s26]]   ;;  %s7667_s15 = smov 16  }
   0xe   :  { %s7766_s6 = sld [smem:[%s9446_s0 + %s7665_s1]]   ;;  %s7668_s22 = smov 17  }
   0xf   :  { %s7771_s12 = sld [smem:[%s9446_s0 + %s7666_s7]]   ;;  %s7669_s28 = smov 18  }
  0x10   :  { %s7776_s20 = sld [smem:[%s9446_s0 + %s7667_s15]]   ;;  %s7670_s7 = smov 19  }
  0x11   :  { %9465 = sst [smem:[#allocation11_spill]] %s7751_s19  ;;  %s7671_s15 = smov 20  }
  0x12   :  { %9466 = sst [smem:[#allocation12_spill]] %s7756_s24 }
  0x13   :  { %9467 = sst [smem:[#allocation13_spill]] %s7761_s30 }
  0x14   :  { %9468 = sst [smem:[#allocation14_spill]] %s7766_s6 }
  0x15   :  { %9469 = sst [smem:[#allocation15_spill]] %s7771_s12 }
  0x16   :  { %9470 = sst [smem:[#allocation16_spill]] %s7776_s20 }
  0x17   :  { %s7781_s27 = sld [smem:[%s9446_s0 + %s7668_s22]]   ;;  %s7672_s22 = smov 21  }
  0x18   :  { %s7786_s4 = sld [smem:[%s9446_s0 + %s7669_s28]]   ;;  %s7673_s28 = smov 22  }
  0x19   :  { %s7791_s12 = sld [smem:[%s9446_s0 + %s7670_s7]]   ;;  %s7674_s7 = smov 23  }
  0x1a   :  { %s7796_s20 = sld [smem:[%s9446_s0 + %s7671_s15]]   ;;  %s7675_s15 = smov 24  }
  0x1d   :  { %9471 = sst [smem:[#allocation17_spill]] %s7781_s27 }
  0x1e   :  { %9472 = sst [smem:[#allocation18_spill]] %s7786_s4 }
  0x1f   :  { %9473 = sst [smem:[#allocation19_spill]] %s7791_s12 }
  0x20   :  { %9474 = sst [smem:[#allocation20_spill]] %s7796_s20 }
  0x21   :  { %s7801_s27 = sld [smem:[%s9446_s0 + %s7672_s22]]   ;;  %s7676_s22 = smov 25  }
  0x22   :  { %s7806_s4 = sld [smem:[%s9446_s0 + %s7673_s28]]   ;;  %s7677_s28 = smov 26  }
  0x23   :  { %s7811_s12 = sld [smem:[%s9446_s0 + %s7674_s7]]   ;;  %s7678_s7 = smov 27  }
  0x24   :  { %s7816_s20 = sld [smem:[%s9446_s0 + %s7675_s15]]   ;;  %s7679_s15 = smov 28  }
  0x25   :  { %s7821_s1 = sld [smem:[%s9446_s0 + %s7676_s22]]   ;;  %s7680_s22 = smov 29  }
  0x26   :  { %s7826_s10 = sld [smem:[%s9446_s0 + %s7677_s28]]  }
  0x27   :  { %9475 = sst [smem:[#allocation21_spill]] %s7801_s27  ;;  %s7681_s27 = smov 30  }
  0x28   :  { %9476 = sst [smem:[#allocation22_spill]] %s7806_s4  ;;  %s7682_s4 = smov 31  }
  0x29   :  { %9477 = sst [smem:[#allocation23_spill]] %s7811_s12  ;;  %s70_s12 = sshll.u32 %s7701_s5, 4  ;;  %s71_s12 = int_to_ptr.vmem [resolvable:$true] %s70_s12 }
  0x2a   :  { %9478 = sst [smem:[#allocation24_spill]] %s7816_s20  ;;  %s7683_s20 = smov 32  }
  0x2b   :  { %9479 = sst [smem:[#allocation25_spill]] %s7821_s1  ;;  %p7624_p1 = scmp.lt.s32.totalorder %s71_s12, %s71_s12 }
  0x2c   :  { %s7831_s16 = sld [smem:[%s9446_s0 + %s7678_s7]]  }
  0x2d   :  { %s7836_s23 = sld [smem:[%s9446_s0 + %s7679_s15]]  }
  0x2e   :  { %s7841_s19 = sld [smem:[%s9446_s0 + %s7680_s22]]   ;;  %s7619_s22 = scalar_lea.vmem %s71_s12, 128 }
  0x2f   :  { %s7846_s24 = sld [smem:[%s9446_s0 + %s7681_s27]]   ;;  %p7620_p0 = scmp.ne.s32.totalorder %s71_s12, %s7619_s22 }
  0x30   :  { %s7851_s6 = sld [smem:[%s9446_s0 + %s7682_s4]]   ;;  %p7625_p2 = scmp.lt.s32.totalorder %s7619_s22, %s7619_s22 }
  0x31   :  { %s7856_s30 = sld [smem:[%s9446_s0 + %s7683_s20]]  }
  0x32   :  { %p7626_p3 = por %p7625_p2, %p7624_p1 }
  0x34   :  { %p7627_p4 = pnand %p7626_p3, %p7620_p0 }
  0x36   :  { %7630 = shalt.err (!%p7627_p4)  }
  0x37   :  { %s7684_s26 = smov [#allocation8]   ;;  %s7685_s27 = smov 1  }
  0x38   :  { %73 = dma.vmem_to_smem %s71_s12, 128, %s7684_s26, [#allocation7] }
  0x39   :  { %s5753_s4 = sld [smem:[%s9446_s0 + %s7685_s27]]  }
  0x3f   :  { %s74_s7 = sshll.u32 %s5753_s4, 4  ;;  %s75_s7 = int_to_ptr.vmem [resolvable:$true] %s74_s7 }
  0x40   :  { %s7631_s11 = scalar_lea.vmem %s75_s7, 128  ;;  %p7636_p6 = scmp.lt.s32.totalorder %s75_s7, %s75_s7 }
  0x41   :  { %p7632_p5 = scmp.ne.s32.totalorder %s75_s7, %s7631_s11  ;;  %p7637_p7 = scmp.lt.s32.totalorder %s7631_s11, %s7631_s11 }
  0x43   :  { %p7638_p8 = por %p7637_p7, %p7636_p6 }
  0x45   :  { %p7639_p9 = pnand %p7638_p8, %p7632_p5 }
  0x47   :  { %7642 = shalt.err (!%p7639_p9)  }
  0x48   :  { %s7686_s5 = smov [#allocation9]  }
  0x49   :  { %77 = dma.vmem_to_smem %s75_s7, 128, %s7686_s5, [#allocation7] }
  0x4a   :  { %7647 = dma.done.wait [#allocation7], 256 }
  0x4b   :  { %7648 = vsyncadd [#allocation7], 4294967040 }
  0x4c   :  { %79 = sfence }
  0x4d   :  { %s7862_s20 = smov 0  }
  0x4e LB: > { %s7868_s0 = sadd.s32 4294967295, %s7651_s20   ;;  %p5789_p10 = scmp.ge.s32.totalorder %s7651_s20, 1  ;;  %s7651_s20 = sphi %s7862_s20, %s85_s20  }
  0x4f   : > { %p912_p11 = scmp.lt.s32.totalorder %s7651_s20, 8 }
  0x51   : > { %p913_p12 = pnand %p5789_p10, %p912_p11 }
  0x53   : > { %916 = sbr.rel (%p913_p12) target bundleno = 3284 (0xcd4), region = 140 }
  0x5a   : > { %s9480_s1 = sld [smem:[#allocation25_spill]]  ;;  %p1014_p13 = scmp.lt.s32.totalorder %s7868_s0, 6 }
  0x5b   : > { %p5800_p0 = scmp.ne.s32.totalorder %s7868_s0, 0 }
  0x5c   : > { %s1015_s15 = scalar_select %p1014_p13, %s7868_s0, 6 }
  0x5d   : > { %1051 = sbr.rel (%p5800_p0) target bundleno = 101 (0x65), region = 144  ;;  %v1052_v0 = vld [vmem:[%s7706_s9] sm:$0xff] (!%p5800_p0)  ;;  %v1053_v1 = vld [vmem:[%s7706_s9 + $0x8] sm:$0xff] (!%p5800_p0)  ;;  %v1054_v2 = vld [vmem:[%s7706_s9 + $0x10] sm:$0xff] (!%p5800_p0)  ;;  %v7687_v5 = vmov (!%p5800_p0), 0.0  }
  0x5e   : > { %s5884_s18 = sshll.u32 %s1015_s15, 4  ;;  %s7874_s12 = sshll.u32 %s1015_s15, 3  ;;  %1055 = vst [vmem:[#allocation2] sm:$0xff] (!%p5800_p0), %v1052_v0  ;;  %1056 = vst [vmem:[#allocation2 + $0x8] sm:$0xff] (!%p5800_p0), %v1053_v1  ;;  %v1058_v3 = vld [vmem:[%s7711_s13] sm:$0xff] (!%p5800_p0) }
  0x5f   : > { %s1022_s26 = scalar_lea.vmem %s7826_s10, %s7874_s12  ;;  %s1030_s28 = scalar_lea.vmem %s7836_s23, %s7874_s12  ;;  %1057 = vst [vmem:[#allocation2 + $0x10] sm:$0xff] (!%p5800_p0), %v1054_v2  ;;  %v1060_v4 = vld [vmem:[%s7716_s17] sm:$0xff] (!%p5800_p0)  ;;  %1062 = vst [vmem:[#allocation5] sm:$0xff] (!%p5800_p0), %v7687_v5 }
  0x60   : > { %s7877_s22 = scalar_lea.vmem %s9480_s1, %s5884_s18  ;;  %s7887_s2 = scalar_lea.vmem %s7841_s19, %s7874_s12  ;;  %1063 = vst [vmem:[#allocation5 + $0x8] sm:$0xff] (!%p5800_p0), %v7687_v5  ;;  %1064 = vst [vmem:[#allocation5 + $0x10] sm:$0xff] (!%p5800_p0), %v7687_v5 }
  0x61   : > { %s5885_s7 = sshll.u32 %s1015_s15, 5  ;;  %1065 = vst [vmem:[#allocation5 + $0x18] sm:$0xff] (!%p5800_p0), %v7687_v5  ;;  %1066 = vst [vmem:[#allocation5 + $0x20] sm:$0xff] (!%p5800_p0), %v7687_v5 }
  0x62   : > { %s7894_s5 = scalar_lea.vmem %s7851_s6, %s5885_s7  ;;  %1067 = vst [vmem:[#allocation5 + $0x28] sm:$0xff] (!%p5800_p0), %v7687_v5  ;;  %1068 = vst [vmem:[#allocation5 + $0x30] sm:$0xff] (!%p5800_p0), %v7687_v5 }
  0x63   : > { %1069 = vst [vmem:[#allocation5 + $0x38] sm:$0xff] (!%p5800_p0), %v7687_v5  ;;  %1070 = vst [vmem:[#allocation6] sm:$0xff] (!%p5800_p0), %v7687_v5 }
  0x64   : > { %1059 = vst [vmem:[#allocation3] sm:$0xff] %v1058_v3  ;;  %1061 = vst [vmem:[#allocation4] sm:$0xff] %v1060_v4 }
  0x65 PF: > { %v7903_v7 = vld [vmem:[%s7721_s21] sm:$0xff]  ;;  %vm1096_vm0 = vcmask 64512   ;;  %v7906_v8 = vld [vmem:[%s7721_s21 + $0x8] sm:$0xff]  ;;  %v7688_v11 = vmov 0   ;;  %v1082_v13 = vld [vmem:[%s7731_s29 + $0x10] sm:$0xff]  ;;  %v9455_v17 = vmov 0.0|0.0  }
  0x66   : > { %v1077_v6 = vld [vmem:[#allocation2] sm:$0xff]  ;;  %6234 = vmatprep.mubr.msk.f32.mxu0 %vm1096_vm0, %v7903_v7  ;;  %7512 = vset.pattern.permute.xlu0 %v7688_v11  ;;  %v1081_v12 = vld [vmem:[%s7731_s29 + $0x8] sm:$0xff]  ;;  %v1083_v14 = vld [vmem:[%s7731_s29 + $0x18] sm:$0xff]  ;;  %vm7690_vm1 = vmmov 0   ;;  %v9453_v37 = vmov 0.0   ;;  %vm1289_vm2 = vcmask 130048  }
  0x67   : > { %6232 = vmatprep.subr.mxu0 %v1077_v6  ;;  %v1071_v9 = vld [vmem:[%s7877_s22] sm:$0xff]  ;;  %v1072_v16 = vld [vmem:[%s7877_s22 + $0x8] sm:$0xff]  ;;  %6873 = vmatprep.subr.bf16.mxu1 %v9455_v17  ;;  %v6877_v18 = vpack.c.bf16 %v1083_v14, %v1082_v13  ;;  %v1086_v22 = vld [vmem:[%s7731_s29 + $0x30] sm:$0xff]  ;;  %s5855_s15 = sshll.u32 %s7868_s0, 7  ;;  %vm3726_vm3 = vcmask 1041409   ;;  %vm3729_vm4 = vcmask 1042434  }
  0x68   : > { %v1080_v10 = vld [vmem:[%s7731_s29] sm:$0xff]  ;;  %6233 = vmatpush3.msra.mxu0 %v1077_v6  ;;  %1180 = vperm.xlu0 %7512, %v1071_v9   ;;  %v1085_v20 = vld [vmem:[%s7731_s29 + $0x28] sm:$0xff]  ;;  %v1087_v23 = vld [vmem:[%s7731_s29 + $0x38] sm:$0xff]  ;;  %s1746_s18 = sadd.s32 1, %s5855_s15  ;;  %s1738_s22 = sld [smem:[#allocation9 + %s5855_s15]]  ;;  %vm3732_vm5 = vcmask 1043459  }
  0x69   : > { %6235 = vmatmul.mubr.msk.f32.vlgmr.msra.gmra.mrb[0].mxu0 %vm1096_vm0, %v7906_v8  ;;  %v6874_v15 = vpack.c.bf16 %v1081_v12, %v1080_v10  ;;  %6897 = vmatprep.subr.bf16.mxu0 %v9455_v17  ;;  %v1084_v19 = vld [vmem:[%s7731_s29 + $0x20] sm:$0xff]  ;;  %v6883_v24 = vpack.c.bf16 %v1087_v23, %v1086_v22  ;;  %v1089_v26 = vld [vmem:[%s7731_s29 + $0x48] sm:$0xff]  ;;  %v1090_v28 = vld [vmem:[%s7731_s29 + $0x50] sm:$0xff]  ;;  %s1747_s7 = sld [smem:[#allocation8 + %s1746_s18]]  ;;  %vm3735_vm6 = vcmask 1044484   ;;  %vm3738_vm7 = vcmask 1045509  }
  0x6a   : > { %7513 = vset.pattern.permute.xlu1 %v7688_v11  ;;  %v6880_v21 = vpack.c.bf16 %v1085_v20, %v1084_v19  ;;  %v1088_v25 = vld [vmem:[%s7731_s29 + $0x40] sm:$0xff]  ;;  %v1091_v29 = vld [vmem:[%s7731_s29 + $0x58] sm:$0xff]  ;;  %v1093_v32 = vld [vmem:[%s7731_s29 + $0x68] sm:$0xff]  ;;  %6269 = vmatprep.mubr.msk.f32.mxu1 %vm7690_vm1, %v9453_v37  ;;  %vm3741_vm8 = vcmask 1046534   ;;  %vm3744_vm9 = vcmask 1047559   ;;  %vm4244_vm10 = vcmask 1040384  }
  0x6b   : > { %6875 = vmatpush3.bf16.msra.mxu1 %v6874_v15  ;;  %v6886_v27 = vpack.c.bf16 %v1089_v26, %v1088_v25  ;;  %v6889_v30 = vpack.c.bf16 %v1091_v29, %v1090_v28  ;;  %v1092_v31 = vld [vmem:[%s7731_s29 + $0x60] sm:$0xff]  ;;  %v1094_v34 = vld [vmem:[%s7731_s29 + $0x70] sm:$0xff]  ;;  %v1095_v35 = vld [vmem:[%s7731_s29 + $0x78] sm:$0xff]  ;;  %6282 = vmatprep.mubr.msk.f32.mxu0 %vm7690_vm1, %v9453_v37  ;;  %vm4576_vm11 = vcmask 1041408   ;;  %vm4873_vm12 = vcmask 1042432   ;;  %p4930_p1 = scmp.lt.s32.totalorder %s7868_s0, 3 }
  0x6c   : > { %6876 = vmatprep.subr.bf16.mxu1 %v9455_v17  ;;  %1185 = vperm.xlu0 %7512, %v1072_v16   ;;  %v6892_v33 = vpack.c.bf16 %v1093_v32, %v1092_v31  ;;  %v6895_v36 = vpack.c.bf16 %v1095_v35, %v1094_v34  ;;  %v1078_v41 = vld [vmem:[#allocation2 + $0x8] sm:$0xff]  ;;  %v1079_v46 = vld [vmem:[#allocation2 + $0x10] sm:$0xff]  ;;  %v1073_v50 = vld [vmem:[%s1022_s26] sm:$0xff]  ;;  %s1748_s26 = sld [smem:[#allocation9 + %s1746_s18]]  ;;  %vm5212_vm14 = vcmask 3072   ;;  %vm4240_vm15 = vcmask 1047553  }
  0x6d   : > { %1365 = vperm.xlu1 %7513, %v1073_v50   ;;  %v5803_v54 = vld [vmem:[%s7731_s29 + $0x80] sm:$0xff]  ;;  %v5804_v55 = vld [vmem:[%s7731_s29 + $0x88] sm:$0xff]  ;;  %v5805_v60 = vld [vmem:[%s7731_s29 + $0x90] sm:$0xff]  ;;  %s9487_s18 = sld [smem:[#allocation19_spill]]  ;;  %p5876_p2 = scmp.le.s32.totalorder %s7868_s0, 0 }
  0x6e   : > { %v1076_v58 = vld [vmem:[%s7726_s25] sm:$0xff]  ;;  %v6901_v59 = vpack.c.bf16 %v5804_v55, %v5803_v54  ;;  %v5806_v61 = vld [vmem:[%s7731_s29 + $0x98] sm:$0xff]  ;;  %v5808_v0 = vld [vmem:[%s7731_s29 + $0xa8] sm:$0xff]  ;;  %s1739_s11 = scvt.s32.f32 %s1738_s22  ;;  %s9489_s22 = sld [smem:[#allocation17_spill]] }
  0x6f   : > { %6878 = vmatpush3.bf16.msra.mxu1 %v6877_v18  ;;  %v6904_v62 = vpack.c.bf16 %v5806_v61, %v5805_v60  ;;  %v5807_v63 = vld [vmem:[%s7731_s29 + $0xa0] sm:$0xff]  ;;  %v5809_v2 = vld [vmem:[%s7731_s29 + $0xb0] sm:$0xff]  ;;  %v5810_v3 = vld [vmem:[%s7731_s29 + $0xb8] sm:$0xff]  ;;  %s5690_s1 = scalar_lea.vmem [#allocation2], %s1747_s7  ;;  %s9499_s7 = sld [smem:[#allocation18_spill]] }
  0x70   : > { %6879 = vmatprep.subr.bf16.mxu1 %v9455_v17  ;;  %v6907_v1 = vpack.c.bf16 %v5808_v0, %v5807_v63  ;;  %v6910_v4 = vpack.c.bf16 %v5810_v3, %v5809_v2  ;;  %v5811_v5 = vld [vmem:[%s7731_s29 + $0xc0] sm:$0xff]  ;;  %v5813_v10 = vld [vmem:[%s7731_s29 + $0xd0] sm:$0xff]  ;;  %v5814_v11 = vld [vmem:[%s7731_s29 + $0xd8] sm:$0xff] }
  0x71   : > { %v6916_v12 = vpack.c.bf16 %v5814_v11, %v5813_v10  ;;  %v5815_v13 = vld [vmem:[%s7731_s29 + $0xe0] sm:$0xff]  ;;  %v5816_v14 = vld [vmem:[%s7731_s29 + $0xe8] sm:$0xff]  ;;  %v5817_v16 = vld [vmem:[%s7731_s29 + $0xf0] sm:$0xff] }
  0x72   : > { %v6919_v15 = vpack.c.bf16 %v5816_v14, %v5815_v13  ;;  %v5818_v18 = vld [vmem:[%s7731_s29 + $0xf8] sm:$0xff]  ;;  %v5820_v25 = vld [vmem:[%s7731_s29 + $0x100] sm:$0xff]  ;;  %v5821_v26 = vld [vmem:[%s7731_s29 + $0x108] sm:$0xff]  ;;  %s1749_s4 = scvt.s32.f32 %s1748_s26  ;;  %s9490_s26 = sld [smem:[#allocation16_spill]] }
  0x73   : > { %6881 = vmatpush3.bf16.msra.mxu1 %v6880_v21  ;;  %v6922_v19 = vpack.c.bf16 %v5818_v18, %v5817_v16  ;;  %v6925_v28 = vpack.c.bf16 %v5821_v26, %v5820_v25  ;;  %v5823_v31 = vld [vmem:[%s7731_s29 + $0x118] sm:$0xff]  ;;  %v5824_v34 = vld [vmem:[%s7731_s29 + $0x120] sm:$0xff]  ;;  %v5825_v35 = vld [vmem:[%s7731_s29 + $0x128] sm:$0xff] }
  0x74   : > { %6882 = vmatprep.subr.bf16.mxu1 %v9455_v17  ;;  %v5832_v50 = vld [vmem:[%s7731_s29 + $0x160] sm:$0xff]  ;;  %v5835_v54 = vld [vmem:[%s7731_s29 + $0x178] sm:$0xff]  ;;  %v5843_v63 = vld [vmem:[%s7731_s29 + $0x1a8] sm:$0xff] }
  0x75   : > { %v5841_v60 = vld [vmem:[%s7731_s29 + $0x198] sm:$0xff]  ;;  %v5851_v13 = vld [vmem:[%s7731_s29 + $0x1e8] sm:$0xff]  ;;  %v1765_v26 = vld [vmem:[%s7741_s8 + $0x20] sm:$0xff] }
  0x76   : > { %v5845_v2 = vld [vmem:[%s7731_s29 + $0x1b8] sm:$0xff] }
  0x77   : > { %6884 = vmatpush3.bf16.msra.mxu1 %v6883_v24  ;;  %v5849_v10 = vld [vmem:[%s7731_s29 + $0x1d8] sm:$0xff] }
  0x78   : > { %6885 = vmatprep.subr.bf16.mxu1 %v9455_v17  ;;  %v5853_v16 = vld [vmem:[%s7731_s29 + $0x1f8] sm:$0xff] }
  0x7b   : > { %6887 = vmatpush3.bf16.msra.mxu1 %v6886_v27 }
  0x7c   : > { %6888 = vmatprep.subr.bf16.mxu1 %v9455_v17 }
  0x7f   : > { %6890 = vmatpush3.bf16.msra.mxu1 %v6889_v30  ;;  %v5822_v30 = vld [vmem:[%s7731_s29 + $0x110] sm:$0xff] }
  0x80   : > { %6891 = vmatprep.subr.bf16.mxu1 %v9455_v17 }
  0x83   : > { %6893 = vmatpush3.bf16.msra.mxu1 %v6892_v33 }
  0x84   : > { %6894 = vmatprep.subr.bf16.mxu1 %v9455_v17 }
  0x87   : > { %6896 = vmatpush3.bf16.msra.mxu1 %v6895_v36 }
  0x88   : > { %6948 = vmatprep.subr.bf16.mxu1 %v9455_v17 }
  0x8a   : > { %6270 = vmatmul.mubr.f32.vlgmr.msra.gmra.mrb[0].mxu1 %v1077_v6  ;;  %v5812_v6 = vld [vmem:[%s7731_s29 + $0xc8] sm:$0xff] }
  0x8b   : > { %6272 = vmatprep.mubr.msk.f32.mxu1 %vm7690_vm1, %v9453_v37  ;;  %v6913_v9 = vpack.c.bf16 %v5812_v6, %v5811_v5  ;;  %v5847_v5 = vld [vmem:[%s7731_s29 + $0x1c8] sm:$0xff] }
  0xe7   : > { %v7946_v38 = vpop.permute.xlu0 %1180 }
  0xeb   : > { %v7948_v40 = vpop.permute.xlu0 %1185 }
  0xec   : > { %v1366_v20 = vpop.permute.xlu1 %1365 }
 0x13c   : > { %v6236_v39 = vpop.f32.mrb[0].mxu0 }
 0x13d   : > { %v1169_v42 = vpop.f32.mrb[1].mxu0  ;;  %v1189_v44 = vmul.f32 %v6236_v39, %v7948_v40 }
 0x13e   : > { %v1188_v43 = vmul.f32 %v7946_v38, %v1169_v42  ;;  %v5827_v42 = vld [vmem:[%s7731_s29 + $0x138] sm:$0xff] }
 0x13f   : > { %v1191_v47 = vadd.f32 %v1189_v44, %v1079_v46  ;;  %v5828_v44 = vld [vmem:[%s7731_s29 + $0x140] sm:$0xff] }
 0x140   : > { %v1190_v45 = vadd.f32 %v1188_v43, %v1078_v41  ;;  %v5826_v41 = vld [vmem:[%s7731_s29 + $0x130] sm:$0xff] }
 0x141   : > { %v6934_v43 = vpack.c.bf16 %v5827_v42, %v5826_v41  ;;  %v1773_v41 = vld [vmem:[%s7741_s8 + $0x60] sm:$0xff]  ;;  %v1776_v42 = vld [vmem:[%s7741_s8 + $0x78] sm:$0xff] }
 0x142   : > { %6273 = vmatmul.mubr.f32.gmra.mrb[2].mxu1 %v1190_v45  ;;  %v5829_v45 = vld [vmem:[%s7731_s29 + $0x148] sm:$0xff] }
 0x143   : > { %6275 = vmatprep.mubr.msk.f32.mxu1 %vm7690_vm1, %v9453_v37  ;;  %v6937_v46 = vpack.c.bf16 %v5829_v45, %v5828_v44  ;;  %v1783_v44 = vld [vmem:[%s7741_s8 + $0xb0] sm:$0xff]  ;;  %v6982_v45 = vpack.c.bf16 %v1776_v42, %v1773_v41  ;;  %v1769_v41 = vld [vmem:[%s7741_s8 + $0x40] sm:$0xff]  ;;  %v1772_v42 = vld [vmem:[%s7741_s8 + $0x58] sm:$0xff] }
 0x146   : > { %6276 = vmatmul.mubr.f32.gmra.mrb[4].mxu1 %v1191_v47  ;;  %v5830_v47 = vld [vmem:[%s7731_s29 + $0x150] sm:$0xff] }
 0x147   : > { %6404 = vmatprep.mubr.msk.f32.mxu1 %vm7690_vm1, %v9453_v37 }
 0x15d   : > { %v1258_v48 = vpop.f32.mrb[0].mxu1 }
 0x15e   : > { %v6271_v49 = vpop.f32.mrb[1].mxu1 }
 0x215   : > { %v1263_v51 = vpop.f32.mrb[2].mxu1 }
 0x216   : > { %v6274_v52 = vpop.f32.mrb[3].mxu1 }
 0x219   : > { %v1268_v53 = vpop.f32.mrb[4].mxu1 }
 0x21a   : > { %v6898_v56 = vpack.c.bf16 %v1268_v53, %v1263_v51  ;;  %v6277_v57 = vpop.f32.mrb[5].mxu1 }
 0x21b   : > { %v5839_v57 = vld [vmem:[%s7731_s29 + $0x188] sm:$0xff] }
 0x21c   : > { %6899 = vmatpush3.bf16.msra.mxu0 %v6898_v56  ;;  %v5838_v56 = vld [vmem:[%s7731_s29 + $0x180] sm:$0xff] }
 0x21d   : > { %6900 = vmatprep.subr.bf16.mxu0 %v9455_v17 }
 0x21f   : > { %6283 = vmatmul.mubr.msk.f32.vlgmr.msra.gmra.mrb[2].mxu0 %vm1289_vm2, %v1076_v58  ;;  %v6949_v58 = vpack.c.bf16 %v5839_v57, %v5838_v56  ;;  %v1795_v56 = vld [vmem:[%s7741_s8 + $0x110] sm:$0xff]  ;;  %vm5447_vm2 = vcmask 31744  }
 0x220   : > { %6902 = vmatpush3.bf16.msra.mxu0 %v6901_v59  ;;  %6317 = vmatprep.mubr.msk.f32.mxu0 %vm7690_vm1, %v9453_v37  ;;  %v5840_v59 = vld [vmem:[%s7731_s29 + $0x190] sm:$0xff] }
 0x221   : > { %6903 = vmatprep.subr.bf16.mxu0 %v9455_v17  ;;  %6950 = vmatpush3.bf16.msra.mxu1 %v6949_v58  ;;  %v6952_v61 = vpack.c.bf16 %v5841_v60, %v5840_v59  ;;  %v1791_v59 = vld [vmem:[%s7741_s8 + $0xf0] sm:$0xff]  ;;  %v1794_v60 = vld [vmem:[%s7741_s8 + $0x108] sm:$0xff] }
 0x222   : > { %6951 = vmatprep.subr.bf16.mxu1 %v9455_v17 }
 0x224   : > { %6905 = vmatpush3.bf16.msra.mxu0 %v6904_v62  ;;  %v5842_v62 = vld [vmem:[%s7731_s29 + $0x1a0] sm:$0xff] }
 0x225   : > { %6906 = vmatprep.subr.bf16.mxu0 %v9455_v17  ;;  %6953 = vmatpush3.bf16.msra.mxu1 %v6952_v61  ;;  %v6955_v0 = vpack.c.bf16 %v5843_v63, %v5842_v62  ;;  %v1798_v61 = vld [vmem:[%s7741_s8 + $0x128] sm:$0xff]  ;;  %v1801_v62 = vld [vmem:[%s7741_s8 + $0x140] sm:$0xff]  ;;  %v6994_v63 = vpack.c.bf16 %v1794_v60, %v1791_v59  ;;  %v1827_v60 = vld [vmem:[%s7741_s8 + $0x210] sm:$0xff] }
 0x226   : > { %6954 = vmatprep.subr.bf16.mxu1 %v9455_v17 }
 0x228   : > { %6908 = vmatpush3.bf16.msra.mxu0 %v6907_v1  ;;  %v5844_v1 = vld [vmem:[%s7731_s29 + $0x1b0] sm:$0xff] }
 0x229   : > { %6909 = vmatprep.subr.bf16.mxu0 %v9455_v17  ;;  %6956 = vmatpush3.bf16.msra.mxu1 %v6955_v0  ;;  %v6958_v3 = vpack.c.bf16 %v5845_v2, %v5844_v1  ;;  %v6996_v0 = vpack.c.bf16 %v1801_v62, %v1798_v61  ;;  %v1797_v1 = vld [vmem:[%s7741_s8 + $0x120] sm:$0xff]  ;;  %v1800_v2 = vld [vmem:[%s7741_s8 + $0x138] sm:$0xff]  ;;  %v1830_v61 = vld [vmem:[%s7741_s8 + $0x228] sm:$0xff] }
 0x22a   : > { %6957 = vmatprep.subr.bf16.mxu1 %v9455_v17  ;;  %v1829_v62 = vld [vmem:[%s7741_s8 + $0x220] sm:$0xff] }
 0x22c   : > { %6911 = vmatpush3.bf16.msra.mxu0 %v6910_v4  ;;  %v5846_v4 = vld [vmem:[%s7731_s29 + $0x1c0] sm:$0xff] }
 0x22d   : > { %6912 = vmatprep.subr.bf16.mxu0 %v9455_v17  ;;  %6959 = vmatpush3.bf16.msra.mxu1 %v6958_v3  ;;  %v6961_v6 = vpack.c.bf16 %v5847_v5, %v5846_v4  ;;  %v6998_v3 = vpack.c.bf16 %v1800_v2, %v1797_v1  ;;  %v1781_v1 = vld [vmem:[%s7741_s8 + $0xa0] sm:$0xff]  ;;  %v1784_v2 = vld [vmem:[%s7741_s8 + $0xb8] sm:$0xff] }
 0x22e   : > { %6960 = vmatprep.subr.bf16.mxu1 %v9455_v17 }
 0x230   : > { %6914 = vmatpush3.bf16.msra.mxu0 %v6913_v9  ;;  %v5848_v9 = vld [vmem:[%s7731_s29 + $0x1d0] sm:$0xff] }
 0x231   : > { %6915 = vmatprep.subr.bf16.mxu0 %v9455_v17  ;;  %6962 = vmatpush3.bf16.msra.mxu1 %v6961_v6  ;;  %v6964_v11 = vpack.c.bf16 %v5849_v10, %v5848_v9  ;;  %v8088_v10 = vld [vmem:[%s7736_s3] ss:$0 sm:$0xff] }
 0x232   : > { %6963 = vmatprep.subr.bf16.mxu1 %v9455_v17 }
 0x234   : > { %6917 = vmatpush3.bf16.msra.mxu0 %v6916_v12  ;;  %v5850_v12 = vld [vmem:[%s7731_s29 + $0x1e0] sm:$0xff] }
 0x235   : > { %6918 = vmatprep.subr.bf16.mxu0 %v9455_v17  ;;  %6965 = vmatpush3.bf16.msra.mxu1 %v6964_v11  ;;  %v6967_v14 = vpack.c.bf16 %v5851_v13, %v5850_v12 }
 0x236   : > { %6966 = vmatprep.subr.bf16.mxu1 %v9455_v17 }
 0x238   : > { %6920 = vmatpush3.bf16.msra.mxu0 %v6919_v15  ;;  %v5852_v15 = vld [vmem:[%s7731_s29 + $0x1f0] sm:$0xff] }
 0x239   : > { %6921 = vmatprep.subr.bf16.mxu0 %v9455_v17  ;;  %6968 = vmatpush3.bf16.msra.mxu1 %v6967_v14  ;;  %v6970_v18 = vpack.c.bf16 %v5853_v16, %v5852_v15  ;;  %v1804_v15 = vld [vmem:[%s7741_s8 + $0x158] sm:$0xff]  ;;  %v1807_v16 = vld [vmem:[%s7741_s8 + $0x170] sm:$0xff] }
 0x23a   : > { %6969 = vmatprep.subr.bf16.mxu1 %v9455_v17 }
 0x23c   : > { %6923 = vmatpush3.bf16.msra.mxu0 %v6922_v19 }
 0x23d   : > { %6971 = vmatpush3.bf16.msra.mxu1 %v6970_v18  ;;  %v7000_v18 = vpack.c.bf16 %v1807_v16, %v1804_v15  ;;  %v1838_v15 = vld [vmem:[%s7741_s8 + $0x268] sm:$0xff]  ;;  %v1787_v16 = vld [vmem:[%s7741_s8 + $0xd0] sm:$0xff] }
 0x2f2   : > { %v1359_v21 = vpop.f32.mrb[2].mxu0 }
 0x2f3   : > { %v1368_v22 = vmul.f32 %v1366_v20, %v1359_v21  ;;  %v6284_v23 = vpop.f32.mrb[3].mxu0 }
 0x2f5   : > { %v1369_v24 = vadd.f32 %v1368_v22, %v1258_v48  ;;  %v5831_v48 = vld [vmem:[%s7731_s29 + $0x158] sm:$0xff] }
 0x2f6   : > { %v6940_v49 = vpack.c.bf16 %v5831_v48, %v5830_v47  ;;  %v1779_v47 = vld [vmem:[%s7741_s8 + $0x90] sm:$0xff]  ;;  %v1782_v48 = vld [vmem:[%s7741_s8 + $0xa8] sm:$0xff] }
 0x2f7   : > { %6318 = vmatmul.mubr.f32.vlgmr.msra.gmra.mrb[4].mxu0 %v1369_v24 }
 0x2f8   : > { %6320 = vmatprep.mubr.msk.f32.mxu0 %vm7690_vm1, %v9453_v37 }
 0x2fb   : > { %6321 = vmatmul.mubr.f32.gmra.mrb[6].mxu0 %v1263_v51  ;;  %v5833_v51 = vld [vmem:[%s7731_s29 + $0x168] sm:$0xff] }
 0x2fc   : > { %6323 = vmatprep.mubr.msk.f32.mxu0 %vm7690_vm1, %v9453_v37  ;;  %v6943_v52 = vpack.c.bf16 %v5833_v51, %v5832_v50  ;;  %v1789_v50 = vld [vmem:[%s7741_s8 + $0xe0] sm:$0xff]  ;;  %v6986_v51 = vpack.c.bf16 %v1782_v48, %v1779_v47 }
 0x2fd   : > { %v1821_v48 = vld [vmem:[%s7741_s8 + $0x1e0] sm:$0xff] }
 0x2ff   : > { %6324 = vmatmul.mubr.f32.gmra.mrb[8].mxu0 %v1268_v53  ;;  %v5834_v53 = vld [vmem:[%s7731_s29 + $0x170] sm:$0xff] }
 0x300   : > { %6328 = vmatprep.mubr.msk.f32.mxu0 %vm1096_vm0, %v7903_v7  ;;  %v6928_v7 = vpack.c.bf16 %v5823_v31, %v5822_v30  ;;  %v6946_v55 = vpack.c.bf16 %v5835_v54, %v5834_v53  ;;  %v1768_v30 = vld [vmem:[%s7741_s8 + $0x38] sm:$0xff]  ;;  %v1771_v31 = vld [vmem:[%s7741_s8 + $0x50] sm:$0xff]  ;;  %v1785_v53 = vld [vmem:[%s7741_s8 + $0xc0] sm:$0xff] }
 0x301   : > { %v1788_v54 = vld [vmem:[%s7741_s8 + $0xd8] sm:$0xff] }
 0x302   : > { %v6990_v57 = vpack.c.bf16 %v1788_v54, %v1785_v53  ;;  %v1775_v53 = vld [vmem:[%s7741_s8 + $0x70] sm:$0xff]  ;;  %v1778_v54 = vld [vmem:[%s7741_s8 + $0x88] sm:$0xff] }
 0x3ca   : > { %v1436_v27 = vpop.f32.mrb[4].mxu0 }
 0x3cb   : > { %v6319_v29 = vpop.f32.mrb[5].mxu0  ;;  %6326 = vmatprep.subr.mxu0 %v1436_v27 }
 0x3cc   : > { %6327 = vmatpush3.msra.mxu0 %v1436_v27  ;;  %v1764_v29 = vld [vmem:[%s7741_s8 + $0x18] sm:$0xff] }
 0x3cd   : > { %6329 = vmatmul.mubr.msk.f32.vlgmr.msra.gmra.mrb[10].mxu0 %vm1096_vm0, %v7906_v8  ;;  %6924 = vmatprep.subr.bf16.mxu0 %v9455_v17  ;;  %v6931_v8 = vpack.c.bf16 %v5825_v35, %v5824_v34  ;;  %v1770_v34 = vld [vmem:[%s7741_s8 + $0x48] sm:$0xff] }
 0x3ce   : > { %v7999_v32 = vpop.f32.mrb[6].mxu0  ;;  %6926 = vmatpush3.bf16.msra.mxu0 %v6925_v28  ;;  %6363 = vmatprep.mubr.msk.f32.mxu0 %vm7690_vm1, %v9453_v37  ;;  %v1774_v35 = vld [vmem:[%s7741_s8 + $0x68] sm:$0xff] }
 0x3cf   : > { %v6322_v33 = vpop.f32.mrb[7].mxu0  ;;  %6927 = vmatprep.subr.bf16.mxu0 %v9455_v17 }
 0x3d0   : > { %v1767_v33 = vld [vmem:[%s7741_s8 + $0x30] sm:$0xff] }
 0x3d2   : > { %v8006_v36 = vpop.f32.mrb[8].mxu0  ;;  %6929 = vmatpush3.bf16.msra.mxu0 %v6928_v7  ;;  %v6976_v7 = vpack.c.bf16 %v1771_v31, %v1768_v30 }
 0x3d3   : > { %v6325_v39 = vpop.f32.mrb[9].mxu0  ;;  %6930 = vmatprep.subr.bf16.mxu0 %v9455_v17 }
 0x3d6   : > { %6932 = vmatpush3.bf16.msra.mxu0 %v6931_v8  ;;  %v6978_v8 = vpack.c.bf16 %v1770_v34, %v1767_v33  ;;  %v1815_v34 = vld [vmem:[%s7741_s8 + $0x1b0] sm:$0xff] }
 0x3d7   : > { %6933 = vmatprep.subr.bf16.mxu0 %v9455_v17 }
 0x3da   : > { %6935 = vmatpush3.bf16.msra.mxu0 %v6934_v43  ;;  %v1780_v43 = vld [vmem:[%s7741_s8 + $0x98] sm:$0xff] }
 0x3db   : > { %6936 = vmatprep.subr.bf16.mxu0 %v9455_v17 }
 0x3de   : > { %6938 = vmatpush3.bf16.msra.mxu0 %v6937_v46  ;;  %v6984_v46 = vpack.c.bf16 %v1783_v44, %v1780_v43  ;;  %v7042_v44 = vpack.c.bf16 %v1772_v42, %v1769_v41  ;;  %v1802_v41 = vld [vmem:[%s7741_s8 + $0x148] sm:$0xff] }
 0x3df   : > { %6939 = vmatprep.subr.bf16.mxu0 %v9455_v17 }
 0x3e2   : > { %6941 = vmatpush3.bf16.msra.mxu0 %v6940_v49  ;;  %v1786_v49 = vld [vmem:[%s7741_s8 + $0xc8] sm:$0xff] }
 0x3e3   : > { %6942 = vmatprep.subr.bf16.mxu0 %v9455_v17 }
 0x3e6   : > { %6944 = vmatpush3.bf16.msra.mxu0 %v6943_v52  ;;  %v6988_v52 = vpack.c.bf16 %v1789_v50, %v1786_v49  ;;  %v1824_v49 = vld [vmem:[%s7741_s8 + $0x1f8] sm:$0xff]  ;;  %v1823_v50 = vld [vmem:[%s7741_s8 + $0x1f0] sm:$0xff] }
 0x3e7   : > { %6945 = vmatprep.subr.bf16.mxu0 %v9455_v17 }
 0x3ea   : > { %6947 = vmatpush3.bf16.msra.mxu0 %v6946_v55  ;;  %v1792_v55 = vld [vmem:[%s7741_s8 + $0xf8] sm:$0xff] }
 0x3eb   : > { %v6992_v58 = vpack.c.bf16 %v1795_v56, %v1792_v55  ;;  %v7046_v56 = vpack.c.bf16 %v1778_v54, %v1775_v53  ;;  %v1805_v53 = vld [vmem:[%s7741_s8 + $0x160] sm:$0xff]  ;;  %v1808_v54 = vld [vmem:[%s7741_s8 + $0x178] sm:$0xff] }
 0x3ed   : > { %6364 = vmatmul.mubr.f32.vlgmr.msra.gmra.mrb[12].mxu0 %v1436_v27  ;;  %v1761_v27 = vld [vmem:[%s7741_s8] sm:$0xff] }
 0x3ee   : > { %6366 = vmatprep.mubr.msk.f32.mxu0 %vm7690_vm1, %v9453_v37 }
 0x4a0   : > { %v6330_v19 = vpop.f32.mrb[10].mxu0 }
 0x4a1   : > { %v1543_v20 = vmul.f32 %v6330_v19, %v7948_v40  ;;  %v1533_v21 = vpop.f32.mrb[11].mxu0  ;;  %v1803_v19 = vld [vmem:[%s7741_s8 + $0x150] sm:$0xff] }
 0x4a2   : > { %v1542_v22 = vmul.f32 %v1533_v21, %v7946_v38  ;;  %v1762_v38 = vld [vmem:[%s7741_s8 + $0x8] sm:$0xff] }
 0x4a3   : > { %v1545_v23 = vadd.f32 %v1543_v20, %v8006_v36  ;;  %v6972_v28 = vpack.c.bf16 %v1765_v26, %v1762_v38  ;;  %v1777_v36 = vld [vmem:[%s7741_s8 + $0x80] sm:$0xff]  ;;  %v1806_v20 = vld [vmem:[%s7741_s8 + $0x168] sm:$0xff]  ;;  %v1811_v38 = vld [vmem:[%s7741_s8 + $0x190] sm:$0xff] }
 0x4a4   : > { %v1544_v24 = vadd.f32 %v1542_v22, %v7999_v32  ;;  %v6974_v32 = vpack.c.bf16 %v1764_v29, %v1761_v27  ;;  %v6980_v39 = vpack.c.bf16 %v1777_v36, %v1774_v35  ;;  %v7002_v21 = vpack.c.bf16 %v1806_v20, %v1803_v19  ;;  %v1810_v22 = vld [vmem:[%s7741_s8 + $0x188] sm:$0xff]  ;;  %v1817_v36 = vld [vmem:[%s7741_s8 + $0x1c0] sm:$0xff] }
 0x4a5   : > { %6973 = vmatprep.subr.bf16.mxu0 %v6972_v28  ;;  %v1814_v27 = vld [vmem:[%s7741_s8 + $0x1a8] sm:$0xff]  ;;  %v1763_v28 = vld [vmem:[%s7741_s8 + $0x10] sm:$0xff] }
 0x4a6   : > { %6367 = vmatmul.mubr.f32.gmra.mrb[14].mxu0 %v1544_v24  ;;  %v1766_v29 = vld [vmem:[%s7741_s8 + $0x28] sm:$0xff]  ;;  %v7036_v30 = vpack.c.bf16 %v1814_v27, %v1811_v38  ;;  %v1793_v27 = vld [vmem:[%s7741_s8 + $0x100] sm:$0xff] }
 0x4a7   : > { %6369 = vmatprep.mubr.msk.f32.mxu0 %vm7690_vm1, %v9453_v37  ;;  %6975 = vmatpush1.bf16.msra.mxu0 %v6974_v32  ;;  %v7038_v31 = vpack.c.bf16 %v1766_v29, %v1763_v28  ;;  %v1816_v32 = vld [vmem:[%s7741_s8 + $0x1b8] sm:$0xff]  ;;  %v1818_v35 = vld [vmem:[%s7741_s8 + $0x1c8] sm:$0xff] }
 0x4a8   : > { %6977 = vmatprep.subr.bf16.mxu0 %v6976_v7  ;;  %v1819_v7 = vld [vmem:[%s7741_s8 + $0x1d0] sm:$0xff]  ;;  %7037 = vmatprep.subr.bf16.mxu1 %v7036_v30  ;;  %v1796_v28 = vld [vmem:[%s7741_s8 + $0x118] sm:$0xff] }
 0x4a9   : > { %v7008_v33 = vpack.c.bf16 %v1819_v7, %v1816_v32  ;;  %v7058_v30 = vpack.c.bf16 %v1796_v28, %v1793_v27  ;;  %v1849_v32 = vld [vmem:[%s7741_s8 + $0x2c0] sm:$0xff]  ;;  %v2028_v27 = vld [vmem:[%s7746_s14 + $0x68] sm:$0xff] }
 0x4aa   : > { %6370 = vmatmul.mubr.f32.gmra.mrb[16].mxu0 %v1545_v23  ;;  %v1813_v23 = vld [vmem:[%s7741_s8 + $0x1a0] sm:$0xff] }
 0x4ab   : > { %6979 = vmatpush1.bf16.msra.mxu0 %v6978_v8  ;;  %v7004_v24 = vpack.c.bf16 %v1813_v23, %v1810_v22  ;;  %v7010_v8 = vpack.c.bf16 %v1818_v35, %v1815_v34  ;;  %v1843_v22 = vld [vmem:[%s7741_s8 + $0x290] sm:$0xff]  ;;  %v1848_v34 = vld [vmem:[%s7741_s8 + $0x2b8] sm:$0xff]  ;;  %v2031_v28 = vld [vmem:[%s7746_s14 + $0x80] sm:$0xff] }
 0x4ac   : > { %6981 = vmatprep.subr.bf16.mxu0 %v6980_v39  ;;  %v1820_v39 = vld [vmem:[%s7741_s8 + $0x1d8] sm:$0xff]  ;;  %v1847_v35 = vld [vmem:[%s7741_s8 + $0x2b0] sm:$0xff] }
 0x4ad   : > { %v7040_v43 = vpack.c.bf16 %v1820_v39, %v1817_v36  ;;  %v1799_v39 = vld [vmem:[%s7741_s8 + $0x130] sm:$0xff] }
 0x4af   : > { %6983 = vmatpush1.bf16.msra.mxu0 %v6982_v45  ;;  %v1822_v45 = vld [vmem:[%s7741_s8 + $0x1e8] sm:$0xff] }
 0x4b0   : > { %6985 = vmatprep.subr.bf16.mxu0 %v6984_v46  ;;  %v1825_v46 = vld [vmem:[%s7741_s8 + $0x200] sm:$0xff] }
 0x4b1   : > { %v7012_v47 = vpack.c.bf16 %v1825_v46, %v1822_v45  ;;  %v1855_v45 = vld [vmem:[%s7741_s8 + $0x2f0] sm:$0xff] }
 0x4b2   : > { %v1851_v46 = vld [vmem:[%s7741_s8 + $0x2d0] sm:$0xff] }
 0x4b3   : > { %6987 = vmatpush1.bf16.msra.mxu0 %v6986_v51  ;;  %v7014_v51 = vpack.c.bf16 %v1824_v49, %v1821_v48  ;;  %v1854_v48 = vld [vmem:[%s7741_s8 + $0x2e8] sm:$0xff]  ;;  %v1853_v49 = vld [vmem:[%s7741_s8 + $0x2e0] sm:$0xff] }
 0x4b4   : > { %6989 = vmatprep.subr.bf16.mxu0 %v6988_v52  ;;  %v1826_v52 = vld [vmem:[%s7741_s8 + $0x208] sm:$0xff] }
 0x4b5   : > { %v7044_v55 = vpack.c.bf16 %v1826_v52, %v1823_v50  ;;  %v1856_v50 = vld [vmem:[%s7741_s8 + $0x2f8] sm:$0xff] }
 0x4b6   : > { %v7064_v52 = vpack.c.bf16 %v1856_v50, %v1853_v49  ;;  %v2039_v49 = vld [vmem:[%s7746_s14 + $0xc0] sm:$0xff] }
 0x4b7   : > { %6991 = vmatpush1.bf16.msra.mxu0 %v6990_v57  ;;  %v1828_v57 = vld [vmem:[%s7741_s8 + $0x218] sm:$0xff] }
 0x4b8   : > { %6993 = vmatprep.subr.bf16.mxu0 %v6992_v58  ;;  %v1831_v58 = vld [vmem:[%s7741_s8 + $0x230] sm:$0xff] }
 0x4b9   : > { %v7016_v59 = vpack.c.bf16 %v1831_v58, %v1828_v57  ;;  %v2016_v57 = vld [vmem:[%s7746_s14 + $0x8] sm:$0xff]  ;;  %v2019_v58 = vld [vmem:[%s7746_s14 + $0x20] sm:$0xff] }
 0x4bb   : > { %6995 = vmatpush1.bf16.msra.mxu0 %v6994_v63  ;;  %v7018_v63 = vpack.c.bf16 %v1830_v61, %v1827_v60 }
 0x4bc   : > { %6997 = vmatprep.subr.bf16.mxu0 %v6996_v0  ;;  %v1832_v0 = vld [vmem:[%s7741_s8 + $0x238] sm:$0xff] }
 0x4bf   : > { %6999 = vmatpush1.bf16.msra.mxu0 %v6998_v3  ;;  %v7048_v3 = vpack.c.bf16 %v1832_v0, %v1829_v62 }
 0x4c0   : > { %v1612_v25 = vpop.f32.mrb[12].mxu0  ;;  %7001 = vmatprep.subr.bf16.mxu0 %v7000_v18  ;;  %v1790_v18 = vld [vmem:[%s7741_s8 + $0xe8] sm:$0xff] }
 0x4c1   : > { %v6365_v40 = vpop.f32.mrb[13].mxu0  ;;  %6405 = vmatmul.mubr.f32.vlgmr.msra.gmra.mrb[6].mxu1 %v1612_v25  ;;  %v1809_v25 = vld [vmem:[%s7741_s8 + $0x180] sm:$0xff]  ;;  %v7054_v20 = vpack.c.bf16 %v1790_v18, %v1787_v16  ;;  %v2022_v18 = vld [vmem:[%s7746_s14 + $0x38] sm:$0xff] }
 0x4c2   : > { %6407 = vmatprep.mubr.msk.f32.mxu1 %vm7690_vm1, %v9453_v37  ;;  %v1812_v40 = vld [vmem:[%s7741_s8 + $0x198] sm:$0xff]  ;;  %7039 = vmatpush3.bf16.msra.mxu1 %v7038_v31  ;;  %v1846_v31 = vld [vmem:[%s7741_s8 + $0x2a8] sm:$0xff] }
 0x4c3   : > { %7003 = vmatpush1.bf16.msra.mxu0 %v7002_v21  ;;  %v7006_v26 = vpack.c.bf16 %v1812_v40, %v1809_v25  ;;  %7041 = vmatprep.subr.bf16.mxu1 %v7040_v43  ;;  %v1840_v21 = vld [vmem:[%s7741_s8 + $0x278] sm:$0xff]  ;;  %v1842_v25 = vld [vmem:[%s7741_s8 + $0x288] sm:$0xff]  ;;  %v1841_v40 = vld [vmem:[%s7741_s8 + $0x280] sm:$0xff]  ;;  %v7028_v7 = vpack.c.bf16 %v1849_v32, %v1846_v31  ;;  %v7062_v43 = vpack.c.bf16 %v1802_v41, %v1799_v39 }
 0x4c4   : > { %7005 = vmatprep.subr.bf16.mxu0 %v7004_v24  ;;  %v7024_v23 = vpack.c.bf16 %v1843_v22, %v1840_v21  ;;  %v1839_v24 = vld [vmem:[%s7741_s8 + $0x270] sm:$0xff]  ;;  %v7076_v32 = vpack.c.bf16 %v2031_v28, %v2028_v27 }
 0x4c5   : > { %v7026_v38 = vpack.c.bf16 %v1842_v25, %v1839_v24  ;;  %v2021_v22 = vld [vmem:[%s7746_s14 + $0x30] sm:$0xff] }
 0x4c6   : > { %7043 = vmatpush3.bf16.msra.mxu1 %v7042_v44  ;;  %v1852_v44 = vld [vmem:[%s7741_s8 + $0x2d8] sm:$0xff]  ;;  %v2033_v39 = vld [vmem:[%s7746_s14 + $0x90] sm:$0xff] }
 0x4c7   : > { %7007 = vmatpush1.bf16.msra.mxu0 %v7006_v26  ;;  %7045 = vmatprep.subr.bf16.mxu1 %v7044_v55  ;;  %v1844_v26 = vld [vmem:[%s7741_s8 + $0x298] sm:$0xff]  ;;  %v1759_v55 = vld [vmem:[%s1030_s28] sm:$0xff]  ;;  %s1737_s28 = sld [smem:[#allocation8 + %s5855_s15]] }
 0x4c8   : > { %7009 = vmatprep.subr.bf16.mxu0 %v7008_v33  ;;  %v7056_v29 = vpack.c.bf16 %v1844_v26, %v1841_v40  ;;  %v1845_v33 = vld [vmem:[%s7741_s8 + $0x2a0] sm:$0xff]  ;;  %1938 = vmatprep.mubr.f32.mxu0 %v1759_v55  ;;  %v2024_v40 = vld [vmem:[%s7746_s14 + $0x48] sm:$0xff]  ;;  %v2026_v26 = vld [vmem:[%s7746_s14 + $0x58] sm:$0xff]  ;;  %s9485_s15 = sld [smem:[#allocation11_spill]] }
 0x4c9   : > { %v7030_v36 = vpack.c.bf16 %v1848_v34, %v1845_v33  ;;  %v2029_v33 = vld [vmem:[%s7746_s14 + $0x70] sm:$0xff]  ;;  %v2032_v34 = vld [vmem:[%s7746_s14 + $0x88] sm:$0xff] }
 0x4ca   : > { %7047 = vmatpush3.bf16.msra.mxu1 %v7046_v56  ;;  %v7066_v56 = vpack.c.bf16 %v1808_v54, %v1805_v53  ;;  %v7107_v41 = vpack.c.bf16 %v2032_v34, %v2029_v33  ;;  %v2041_v53 = vld [vmem:[%s7746_s14 + $0xd0] sm:$0xff]  ;;  %v2044_v54 = vld [vmem:[%s7746_s14 + $0xe8] sm:$0xff] }
 0x4cb   : > { %7011 = vmatpush1.bf16.msra.mxu0 %v7010_v8  ;;  %7049 = vmatprep.subr.bf16.mxu1 %v7048_v3  ;;  %v1850_v8 = vld [vmem:[%s7741_s8 + $0x2c8] sm:$0xff] }
 0x4cc   : > { %7013 = vmatprep.subr.bf16.mxu0 %v7012_v47  ;;  %v7060_v42 = vpack.c.bf16 %v1850_v8, %v1847_v35  ;;  %v7032_v47 = vpack.c.bf16 %v1855_v45, %v1852_v44  ;;  %v2034_v35 = vld [vmem:[%s7746_s14 + $0x98] sm:$0xff]  ;;  %v2035_v44 = vld [vmem:[%s7746_s14 + $0xa0] sm:$0xff] }
 0x4cd   : > { %s5688_s27 = scalar_lea.vmem [#allocation2], %s1737_s28  ;;  %v2038_v45 = vld [vmem:[%s7746_s14 + $0xb8] sm:$0xff]  ;;  %s9491_s28 = sld [smem:[#allocation15_spill]] }
 0x4ce   : > { %v7110_v50 = vpack.c.bf16 %v2038_v45, %v2035_v44 }
 0x4cf   : > { %7015 = vmatpush1.bf16.msra.mxu0 %v7014_v51  ;;  %v7034_v51 = vpack.c.bf16 %v1854_v48, %v1851_v46  ;;  %v2040_v46 = vld [vmem:[%s7746_s14 + $0xc8] sm:$0xff] }
 0x4d0   : > { %7017 = vmatprep.subr.bf16.mxu0 %v7016_v59  ;;  %v7068_v59 = vpack.c.bf16 %v2019_v58, %v2016_v57  ;;  %v2045_v58 = vld [vmem:[%s7746_s14 + $0xf0] sm:$0xff] }
 0x4d3   : > { %7019 = vmatpush1.bf16.msra.mxu0 %v7018_v63 }
 0x579   : > { %v1617_v4 = vpop.f32.mrb[14].mxu0 }
 0x57a   : > { %v6368_v5 = vpop.f32.mrb[15].mxu0  ;;  %6408 = vmatmul.mubr.f32.gmra.mrb[8].mxu1 %v1617_v4  ;;  %v7050_v4 = vpack.c.bf16 %v1784_v2, %v1781_v1 }
 0x57b   : > { %6410 = vmatprep.mubr.msk.f32.mxu1 %vm7690_vm1, %v9453_v37  ;;  %v1834_v5 = vld [vmem:[%s7741_s8 + $0x248] sm:$0xff] }
 0x57c   : > { %7051 = vmatpush3.bf16.msra.mxu1 %v7050_v4  ;;  %v1753_v4 = vstv %s1749_s4  ;;  %s9484_s4 = sld [smem:[#allocation12_spill]] }
 0x57d   : > { %v1622_v6 = vpop.f32.mrb[16].mxu0 }
 0x57e   : > { %v6371_v9 = vpop.f32.mrb[17].mxu0  ;;  %6411 = vmatmul.mubr.f32.gmra.mrb[10].mxu1 %v1622_v6  ;;  %v1837_v6 = vld [vmem:[%s7741_s8 + $0x260] sm:$0xff] }
 0x57f   : > { %v7020_v9 = vpack.c.bf16 %v1837_v6, %v1834_v5  ;;  %2009 = vmatprep.mubr.f32.mxu1 %v1759_v55  ;;  %v2046_v55 = vld [vmem:[%s7746_s14 + $0xf8] sm:$0xff] }
 0x581   : > { %7021 = vmatprep.subr.bf16.mxu0 %v7020_v9 }
 0x594   : > { %v1716_v11 = vpop.f32.mrb[6].mxu1 }
 0x595   : > { %v1717_v12 = vadd.f32 %v8088_v10, %v1716_v11  ;;  %v6406_v13 = vpop.f32.mrb[7].mxu1  ;;  %v1833_v11 = vld [vmem:[%s7741_s8 + $0x240] sm:$0xff] }
 0x596   : > { %v1835_v13 = vld [vmem:[%s7741_s8 + $0x250] sm:$0xff] }
 0x597   : > { %7514 = vtanh.f32 %v1717_v12  ;;  %v1836_v12 = vld [vmem:[%s7741_s8 + $0x258] sm:$0xff]  ;;  %v7052_v19 = vpack.c.bf16 %v1838_v15, %v1835_v13  ;;  %v2020_v15 = vld [vmem:[%s7746_s14 + $0x28] sm:$0xff] }
 0x598   : > { %v2018_v13 = vld [vmem:[%s7746_s14 + $0x18] sm:$0xff] }
 0x599   : > { %7053 = vmatprep.subr.bf16.mxu1 %v7052_v19  ;;  %v2025_v19 = vld [vmem:[%s7746_s14 + $0x50] sm:$0xff] }
 0x59a   : > { %7055 = vmatpush3.bf16.msra.mxu1 %v7054_v20  ;;  %v7072_v25 = vpack.c.bf16 %v2025_v19, %v2022_v18  ;;  %v2060_v18 = vld [vmem:[%s7746_s14 + $0x168] sm:$0xff]  ;;  %v2059_v19 = vld [vmem:[%s7746_s14 + $0x160] sm:$0xff] }
 0x59b   : > { %7057 = vmatprep.subr.bf16.mxu1 %v7056_v29  ;;  %v7074_v29 = vpack.c.bf16 %v2024_v40, %v2021_v22 }
 0x59e   : > { %7059 = vmatpush3.bf16.msra.mxu1 %v7058_v30  ;;  %v2027_v30 = vld [vmem:[%s7746_s14 + $0x60] sm:$0xff] }
 0x59f   : > { %7061 = vmatprep.subr.bf16.mxu1 %v7060_v42 }
 0x5a1   : > { %v7515_v14 = vpop.eup %7514 }
 0x5a2   : > { %1733 = vst [vmem:[#allocation2] sm:$0xff] %v7515_v14  ;;  %v7022_v14 = vpack.c.bf16 %v1836_v12, %v1833_v11  ;;  %7063 = vmatpush3.bf16.msra.mxu1 %v7062_v43  ;;  %v2015_v12 = vld [vmem:[%s7746_s14] sm:$0xff]  ;;  %v2036_v43 = vld [vmem:[%s7746_s14 + $0xa8] sm:$0xff] }
 0x5a3   : > { %7065 = vmatprep.subr.bf16.mxu1 %v7064_v52  ;;  %v7070_v21 = vpack.c.bf16 %v2018_v13, %v2015_v12  ;;  %v7082_v48 = vpack.c.bf16 %v2036_v43, %v2033_v39  ;;  %v2042_v52 = vld [vmem:[%s7746_s14 + $0xd8] sm:$0xff]  ;;  %v2061_v12 = vld [vmem:[%s7746_s14 + $0x170] sm:$0xff] }
 0x5a4   : > { %7023 = vmatpush1.bf16.msra.mxu0 %v7022_v14  ;;  %v2017_v14 = vld [vmem:[%s7746_s14 + $0x10] sm:$0xff]  ;;  %v7086_v57 = vpack.c.bf16 %v2042_v52, %v2039_v49 }
 0x5a5   : > { %7025 = vmatprep.subr.bf16.mxu0 %v7024_v23  ;;  %v7101_v23 = vpack.c.bf16 %v2020_v15, %v2017_v14  ;;  %v2057_v14 = vld [vmem:[%s7746_s14 + $0x150] sm:$0xff] }
 0x5a6   : > { %7067 = vmatpush3.bf16.msra.mxu1 %v7066_v56  ;;  %v2049_v56 = vld [vmem:[%s7746_s14 + $0x110] sm:$0xff] }
 0x5a7   : > { %7100 = vmatprep.subr.bf16.mxu1 %v9455_v17 }
 0x5a8   : > { %7027 = vmatpush1.bf16.msra.mxu0 %v7026_v38  ;;  %v2023_v38 = vld [vmem:[%s7746_s14 + $0x40] sm:$0xff] }
 0x5a9   : > { %7029 = vmatprep.subr.bf16.mxu0 %v7028_v7  ;;  %v7104_v31 = vpack.c.bf16 %v2026_v26, %v2023_v38  ;;  %v2030_v7 = vld [vmem:[%s7746_s14 + $0x78] sm:$0xff] }
 0x5aa   : > { %v7078_v8 = vpack.c.bf16 %v2030_v7, %v2027_v30 }
 0x5ac   : > { %7031 = vmatpush1.bf16.msra.mxu0 %v7030_v36  ;;  %v2037_v36 = vld [vmem:[%s7746_s14 + $0xb0] sm:$0xff] }
 0x5ad   : > { %7033 = vmatprep.subr.bf16.mxu0 %v7032_v47  ;;  %v7080_v42 = vpack.c.bf16 %v2037_v36, %v2034_v35  ;;  %v2043_v47 = vld [vmem:[%s7746_s14 + $0xe0] sm:$0xff] }
 0x5b0   : > { %7035 = vmatpush1.bf16.msra.mxu0 %v7034_v51  ;;  %v7084_v51 = vpack.c.bf16 %v2043_v47, %v2040_v46 }
 0x5b1   : > { %7069 = vmatprep.subr.bf16.mxu0 %v7068_v59  ;;  %v7113_v59 = vpack.c.bf16 %v2044_v54, %v2041_v53 }
 0x64d   : > { %v1721_v60 = vpop.f32.mrb[8].mxu1 }
 0x64e   : > { %v1722_v61 = vadd.f32 %v8088_v10, %v1721_v60  ;;  %v6409_v62 = vpop.f32.mrb[9].mxu1  ;;  %v7088_v60 = vpack.c.bf16 %v2049_v56, %v2046_v55 }
 0x64f   : > { %v2047_v62 = vld [vmem:[%s7746_s14 + $0x100] sm:$0xff] }
 0x650   : > { %7516 = vtanh.f32 %v1722_v61  ;;  %v2048_v61 = vld [vmem:[%s7746_s14 + $0x108] sm:$0xff] }
 0x651   : > { %v1726_v63 = vpop.f32.mrb[10].mxu1 }
 0x652   : > { %v1727_v0 = vadd.f32 %v8088_v10, %v1726_v63  ;;  %v6412_v1 = vpop.f32.mrb[11].mxu1  ;;  %v1743_v10 = vstv %s1739_s11  ;;  %s9481_s11 = scalar_lea.vmem %s7831_s16, %s7874_s12  ;;  %v2050_v63 = vld [vmem:[%s7746_s14 + $0x118] sm:$0xff] }
 0x653   : > { %v1757_v16 = vld [vmem:[%s9481_s11] sm:$0xff]  ;;  %s9500_s11 = sld [smem:[#allocation22_spill]] }
 0x654   : > { %7518 = vtanh.f32 %v1727_v0  ;;  %v2052_v0 = vld [vmem:[%s7746_s14 + $0x128] sm:$0xff]  ;;  %v2055_v1 = vld [vmem:[%s7746_s14 + $0x140] sm:$0xff] }
 0x65a   : > { %v7517_v2 = vpop.eup %7516 }
 0x65b   : > { %1734 = vst [vmem:[#allocation2 + $0x8] sm:$0xff] %v7517_v2  ;;  %v7090_v2 = vpack.c.bf16 %v2048_v61, %v2045_v58 }
 0x65e   : > { %v7519_v3 = vpop.eup %7518 }
 0x65f   : > { %1735 = vst [vmem:[#allocation2 + $0x10] sm:$0xff] %v7519_v3  ;;  %v2051_v3 = vld [vmem:[%s7746_s14 + $0x120] sm:$0xff] }
 0x666   : > { %v5856_v5 = vld [vmem:[%s5688_s27 + $0x8] sm:$0x1]  ;;  %s9483_s27 = sld [smem:[#allocation14_spill]] }
 0x667   : > { %v5857_v6 = vld [vmem:[%s5690_s1 + $0x8] sm:$0x1]  ;;  %v1744_v9 = vmul.f32 %v5856_v5, %v1743_v10  ;;  %v7116_v10 = vpack.c.bf16 %v2050_v63, %v2047_v62  ;;  %v2054_v5 = vld [vmem:[%s7746_s14 + $0x138] sm:$0xff]  ;;  %s9482_s1 = sld [smem:[#allocation13_spill]] }
 0x668   : > { %v1754_v11 = vmul.f32 %v5857_v6, %v1753_v4  ;;  %v7092_v4 = vpack.c.bf16 %v2055_v1, %v2052_v0  ;;  %v2053_v6 = vld [vmem:[%s7746_s14 + $0x130] sm:$0xff]  ;;  %v7094_v13 = vpack.c.bf16 %v2054_v5, %v2051_v3 }
 0x669   : > { %1745 = vst [vmem:[#allocation6] sm:$0x1] %v1744_v9  ;;  %v2056_v9 = vld [vmem:[%s7746_s14 + $0x148] sm:$0xff] }
 0x66a   : > { %1755 = vst [vmem:[#allocation6 + $0x1] sm:$0x1] %v1754_v11  ;;  %v2058_v11 = vld [vmem:[%s7746_s14 + $0x158] sm:$0xff]  ;;  %v7119_v15 = vpack.c.bf16 %v2056_v9, %v2053_v6 }
 0x66d   : > { %v2244_v38 = vld [vmem:[%s9482_s1] sm:$0xff]  ;;  %v2247_v26 = vld [vmem:[%s9482_s1 + $0x18] sm:$0xff]  ;;  %v2246_v28 = vld [vmem:[%s9482_s1 + $0x10] sm:$0xff] }
 0x66e   : > { %v7126_v27 = vpack.c.bf16 %v2247_v26, %v2244_v38  ;;  %v2250_v33 = vld [vmem:[%s9482_s1 + $0x30] sm:$0xff]  ;;  %v2253_v34 = vld [vmem:[%s9482_s1 + $0x48] sm:$0xff]  ;;  %v2252_v36 = vld [vmem:[%s9482_s1 + $0x40] sm:$0xff] }
 0x66f   : > { %v7130_v35 = vpack.c.bf16 %v2253_v34, %v2250_v33  ;;  %v2256_v43 = vld [vmem:[%s9482_s1 + $0x60] sm:$0xff]  ;;  %v2259_v45 = vld [vmem:[%s9482_s1 + $0x78] sm:$0xff]  ;;  %v2258_v46 = vld [vmem:[%s9482_s1 + $0x70] sm:$0xff] }
 0x670   : > { %v2261_v47 = vld [vmem:[%s9482_s1 + $0x88] sm:$0xff]  ;;  %v2262_v53 = vld [vmem:[%s9482_s1 + $0x90] sm:$0xff]  ;;  %v2264_v56 = vld [vmem:[%s9482_s1 + $0xa0] sm:$0xff] }
 0x671   : > { %v1756_v20 = vld [vmem:[#allocation6] sm:$0xff]  ;;  %v7163_v49 = vpack.c.bf16 %v2261_v47, %v2258_v46  ;;  %v2268_v62 = vld [vmem:[%s9482_s1 + $0xc0] sm:$0xff]  ;;  %v2271_v63 = vld [vmem:[%s9482_s1 + $0xd8] sm:$0xff] }
 0x672   : > { %v1758_v24 = vadd.f32 %v1757_v16, %v1756_v20  ;;  %v7096_v16 = vpack.c.bf16 %v2061_v12, %v2058_v11  ;;  %v2062_v20 = vld [vmem:[%s7746_s14 + $0x178] sm:$0xff]  ;;  %v2265_v54 = vld [vmem:[%s9482_s1 + $0xa8] sm:$0xff]  ;;  %v7142_v0 = vpack.c.bf16 %v2271_v63, %v2268_v62  ;;  %v2270_v1 = vld [vmem:[%s9482_s1 + $0xd0] sm:$0xff] }
 0x673   : > { %v7122_v22 = vpack.c.bf16 %v2062_v20, %v2059_v19  ;;  %v7138_v55 = vpack.c.bf16 %v2265_v54, %v2262_v53  ;;  %v2274_v6 = vld [vmem:[%s9482_s1 + $0xf0] sm:$0xff]  ;;  %v2277_v9 = vld [vmem:[%s9482_s1 + $0x108] sm:$0xff]  ;;  %v2276_v11 = vld [vmem:[%s9482_s1 + $0x100] sm:$0xff] }
 0x674   : > { %1939 = vmatmul.mubr.f32.vlgmr.msra.gmra.mrb[18].mxu0 %v1758_v24  ;;  %2010 = vmatmul.mubr.f32.vlgmr.msra.gmra.mrb[12].mxu1 %v1758_v24  ;;  %v2245_v24 = vld [vmem:[%s9482_s1 + $0x8] sm:$0xff]  ;;  %v7146_v12 = vpack.c.bf16 %v2277_v9, %v2274_v6  ;;  %v2280_v19 = vld [vmem:[%s9482_s1 + $0x120] sm:$0xff]  ;;  %v2283_v20 = vld [vmem:[%s9482_s1 + $0x138] sm:$0xff] }
 0x675   : > { %7071 = vmatpush1.bf16.msra.mxu0 %v7070_v21  ;;  %7102 = vmatpush3.bf16.msra.mxu1 %v7101_v23  ;;  %v7098_v21 = vpack.c.bf16 %v2060_v18, %v2057_v14  ;;  %v8227_v23 = vld [vmem:[#allocation3] sm:$0xff]  ;;  %v2281_v14 = vld [vmem:[%s9482_s1 + $0x128] sm:$0xff] }
 0x676   : > { %7073 = vmatprep.subr.bf16.mxu0 %v7072_v25  ;;  %7103 = vmatprep.subr.bf16.mxu1 %v9455_v17  ;;  %v2248_v25 = vld [vmem:[%s9482_s1 + $0x20] sm:$0xff] }
 0x677   : > { %2144 = vmatprep.mubr.f32.mxu0 %v9453_v37  ;;  %6445 = vmatprep.mubr.msk.f32.mxu1 %vm7690_vm1, %v9453_v37  ;;  %v7124_v40 = vpack.c.bf16 %v2248_v25, %v2245_v24  ;;  %v2285_v24 = vld [vmem:[%s9482_s1 + $0x148] sm:$0xff]  ;;  %v2287_v25 = vld [vmem:[%s9482_s1 + $0x158] sm:$0xff] }
 0x679   : > { %7075 = vmatpush1.bf16.msra.mxu0 %v7074_v29  ;;  %7105 = vmatpush3.bf16.msra.mxu1 %v7104_v31  ;;  %v2249_v29 = vld [vmem:[%s9482_s1 + $0x28] sm:$0xff]  ;;  %v2251_v31 = vld [vmem:[%s9482_s1 + $0x38] sm:$0xff] }
 0x67a   : > { %7077 = vmatprep.subr.bf16.mxu0 %v7076_v32  ;;  %7106 = vmatprep.subr.bf16.mxu1 %v9455_v17  ;;  %v7157_v30 = vpack.c.bf16 %v2249_v29, %v2246_v28  ;;  %v2254_v32 = vld [vmem:[%s9482_s1 + $0x50] sm:$0xff]  ;;  %v2289_v28 = vld [vmem:[%s9482_s1 + $0x168] sm:$0xff]  ;;  %v2288_v29 = vld [vmem:[%s9482_s1 + $0x160] sm:$0xff] }
 0x67b   : > { %v7128_v7 = vpack.c.bf16 %v2254_v32, %v2251_v31  ;;  %v2451_v31 = vld [vmem:[%s9483_s27 + $0x8] sm:$0xff]  ;;  %v2454_v32 = vld [vmem:[%s9483_s27 + $0x20] sm:$0xff] }
 0x67c   : > { %v7180_v34 = vpack.c.bf16 %v2454_v32, %v2451_v31  ;;  %v2462_v31 = vld [vmem:[%s9483_s27 + $0x60] sm:$0xff] }
 0x67d   : > { %7079 = vmatpush1.bf16.msra.mxu0 %v7078_v8  ;;  %7108 = vmatpush3.bf16.msra.mxu1 %v7107_v41  ;;  %v2255_v8 = vld [vmem:[%s9482_s1 + $0x58] sm:$0xff]  ;;  %v2257_v41 = vld [vmem:[%s9482_s1 + $0x68] sm:$0xff] }
 0x67e   : > { %7081 = vmatprep.subr.bf16.mxu0 %v7080_v42  ;;  %7109 = vmatprep.subr.bf16.mxu1 %v9455_v17  ;;  %v7160_v39 = vpack.c.bf16 %v2255_v8, %v2252_v36  ;;  %v2260_v42 = vld [vmem:[%s9482_s1 + $0x80] sm:$0xff] }
 0x67f   : > { %v7132_v44 = vpack.c.bf16 %v2260_v42, %v2257_v41 }
 0x681   : > { %7083 = vmatpush1.bf16.msra.mxu0 %v7082_v48  ;;  %7111 = vmatpush3.bf16.msra.mxu1 %v7110_v50  ;;  %v7134_v48 = vpack.c.bf16 %v2259_v45, %v2256_v43  ;;  %v2263_v50 = vld [vmem:[%s9482_s1 + $0x98] sm:$0xff]  ;;  %v2063_v43 = vld [vmem:[%s9484_s4] sm:$0x7]  ;;  %s9501_s4 = scalar_lea.vmem %s7846_s24, %s7874_s12 }
 0x682   : > { %7085 = vmatprep.subr.bf16.mxu0 %v7084_v51  ;;  %7112 = vmatprep.subr.bf16.mxu1 %v9455_v17  ;;  %v2266_v51 = vld [vmem:[%s9482_s1 + $0xb0] sm:$0xff] }
 0x683   : > { %v7136_v52 = vpack.c.bf16 %v2266_v51, %v2263_v50 }
 0x685   : > { %7087 = vmatpush1.bf16.msra.mxu0 %v7086_v57  ;;  %7114 = vmatpush3.bf16.msra.mxu1 %v7113_v59  ;;  %v2267_v57 = vld [vmem:[%s9482_s1 + $0xb8] sm:$0xff]  ;;  %v2269_v59 = vld [vmem:[%s9482_s1 + $0xc8] sm:$0xff] }
 0x686   : > { %7089 = vmatprep.subr.bf16.mxu0 %v7088_v60  ;;  %7115 = vmatprep.subr.bf16.mxu1 %v9455_v17  ;;  %v7166_v58 = vpack.c.bf16 %v2267_v57, %v2264_v56  ;;  %v2272_v60 = vld [vmem:[%s9482_s1 + $0xe0] sm:$0xff] }
 0x687   : > { %v7140_v61 = vpack.c.bf16 %v2272_v60, %v2269_v59 }
 0x689   : > { %7091 = vmatpush1.bf16.msra.mxu0 %v7090_v2  ;;  %7117 = vmatpush3.bf16.msra.mxu1 %v7116_v10  ;;  %v2273_v2 = vld [vmem:[%s9482_s1 + $0xe8] sm:$0xff]  ;;  %v2275_v10 = vld [vmem:[%s9482_s1 + $0xf8] sm:$0xff] }
 0x68a   : > { %7093 = vmatprep.subr.bf16.mxu0 %v7092_v4  ;;  %7118 = vmatprep.subr.bf16.mxu1 %v9455_v17  ;;  %v7169_v3 = vpack.c.bf16 %v2273_v2, %v2270_v1  ;;  %v2278_v4 = vld [vmem:[%s9482_s1 + $0x110] sm:$0xff] }
 0x68b   : > { %v7144_v5 = vpack.c.bf16 %v2278_v4, %v2275_v10 }
 0x68d   : > { %7095 = vmatpush1.bf16.msra.mxu0 %v7094_v13  ;;  %7120 = vmatpush3.bf16.msra.mxu1 %v7119_v15  ;;  %v2279_v13 = vld [vmem:[%s9482_s1 + $0x118] sm:$0xff]  ;;  %v2284_v15 = vld [vmem:[%s9482_s1 + $0x140] sm:$0xff] }
 0x68e   : > { %7097 = vmatprep.subr.bf16.mxu0 %v7096_v16  ;;  %7121 = vmatprep.subr.bf16.mxu1 %v9455_v17  ;;  %v7172_v16 = vpack.c.bf16 %v2279_v13, %v2276_v11  ;;  %v7148_v18 = vpack.c.bf16 %v2284_v15, %v2281_v14  ;;  %v2450_v11 = vld [vmem:[%s9483_s27] sm:$0xff]  ;;  %v2453_v13 = vld [vmem:[%s9483_s27 + $0x18] sm:$0xff]  ;;  %v2452_v14 = vld [vmem:[%s9483_s27 + $0x10] sm:$0xff] }
 0x68f   : > { %v2455_v15 = vld [vmem:[%s9483_s27 + $0x28] sm:$0xff] }
 0x691   : > { %7099 = vmatpush1.bf16.msra.mxu0 %v7098_v21  ;;  %7123 = vmatpush3.bf16.msra.mxu1 %v7122_v22  ;;  %v2282_v21 = vld [vmem:[%s9482_s1 + $0x130] sm:$0xff]  ;;  %v7150_v22 = vpack.c.bf16 %v2283_v20, %v2280_v19 }
 0x692   : > { %7156 = vmatprep.subr.bf16.mxu0 %v9455_v17  ;;  %7125 = vmatprep.subr.bf16.mxu1 %v7124_v40  ;;  %v2290_v40 = vld [vmem:[%s9482_s1 + $0x170] sm:$0xff]  ;;  %v7175_v38 = vpack.c.bf16 %v2285_v24, %v2282_v21 }
 0x693   : > { %v7152_v26 = vpack.c.bf16 %v2290_v40, %v2287_v25  ;;  %v2460_v19 = vld [vmem:[%s9483_s27 + $0x50] sm:$0xff]  ;;  %v7213_v25 = vpack.c.bf16 %v2455_v15, %v2452_v14  ;;  %v2489_v14 = vld [vmem:[%s9483_s27 + $0x138] sm:$0xff] }
 0x694   : > { %2145 = vmatmul.mubr.f32.vlgmr.msra.gmra.mrb[18].mxu0 %v8227_v23  ;;  %6446 = vmatmul.mubr.f32.vlgmr.msra.gmra.mrb[14].mxu1 %v8227_v23  ;;  %v2456_v24 = vld [vmem:[%s9483_s27 + $0x30] sm:$0xff] }
 0x695   : > { %2373 = vmatprep.mubr.f32.mxu1 %v9453_v37  ;;  %6480 = vmatprep.mubr.msk.f32.mxu0 %vm7690_vm1, %v9453_v37  ;;  %v2488_v15 = vld [vmem:[%s9483_s27 + $0x130] sm:$0xff] }
 0x696   : > { %7127 = vmatpush1.bf16.msra.mxu1 %v7126_v27  ;;  %7158 = vmatpush3.bf16.msra.mxu0 %v7157_v30  ;;  %v2286_v27 = vld [vmem:[%s9482_s1 + $0x150] sm:$0xff]  ;;  %v2291_v30 = vld [vmem:[%s9482_s1 + $0x178] sm:$0xff] }
 0x697   : > { %7159 = vmatprep.subr.bf16.mxu0 %v9455_v17  ;;  %7129 = vmatprep.subr.bf16.mxu1 %v7128_v7  ;;  %v7154_v7 = vpack.c.bf16 %v2289_v28, %v2286_v27  ;;  %v7178_v33 = vpack.c.bf16 %v2291_v30, %v2288_v29  ;;  %v2458_v27 = vld [vmem:[%s9483_s27 + $0x40] sm:$0xff]  ;;  %v2461_v28 = vld [vmem:[%s9483_s27 + $0x58] sm:$0xff]  ;;  %v2463_v29 = vld [vmem:[%s9483_s27 + $0x68] sm:$0xff] }
 0x698   : > { %v2466_v30 = vld [vmem:[%s9483_s27 + $0x80] sm:$0xff]  ;;  %v7216_v32 = vpack.c.bf16 %v2461_v28, %v2458_v27 }
 0x699   : > { %v8370_v28 = vld [vmem:[#allocation4] sm:$0xff] }
 0x69a   : > { %7131 = vmatpush1.bf16.msra.mxu1 %v7130_v35  ;;  %7161 = vmatpush3.bf16.msra.mxu0 %v7160_v39  ;;  %v9452_v39 = vlaneseq }
 0x69b   : > { %7133 = vmatprep.subr.bf16.mxu1 %v7132_v44  ;;  %7162 = vmatprep.subr.bf16.mxu0 %v9455_v17  ;;  %v1857_v44 = vld [vmem:[%s9485_s15] sm:$0x7]  ;;  %s9503_s15 = sld [smem:[#allocation20_spill]] }
 0x69c   : > { %v8294_v41 = vshrl.u32 %v9452_v39, 7 }
 0x69e   : > { %7135 = vmatpush1.bf16.msra.mxu1 %v7134_v48  ;;  %7164 = vmatpush3.bf16.msra.mxu0 %v7163_v49  ;;  %9486 = vst [vmem:[#allocation26_spill] sm:$0xff] %v8294_v41  ;;  %v8297_v42 = vsub.s32 0, %v8294_v41  ;;  %v8302_v45 = vsub.s32 1, %v8294_v41  ;;  %v8309_v62 = vsub.s32 2, %v8294_v41 }
 0x69f   : > { %7165 = vmatprep.subr.bf16.mxu0 %v9455_v17  ;;  %7137 = vmatprep.subr.bf16.mxu1 %v7136_v52 }
 0x6a0   : > { %v1862_v46 = vrot.slane %v1857_v44, %v8297_v42  ;;  %v2068_v47 = vrot.slane %v2063_v43, %v8297_v42  ;;  %v1866_v48 = vrot.slane %v1857_v44, %v8302_v45  ;;  %v2072_v49 = vrot.slane %v2063_v43, %v8302_v45 }
 0x6a1   : > { %v2076_v63 = vrot.slane %v2063_v43, %v8309_v62  ;;  %v1870_v1 = vrot.slane %v1857_v44, %v8309_v62  ;;  %v2468_v44 = vld [vmem:[%s9483_s27 + $0x90] sm:$0xff] }
 0x6a2   : > { %7139 = vmatpush1.bf16.msra.mxu1 %v7138_v55  ;;  %7167 = vmatpush3.bf16.msra.mxu0 %v7166_v58  ;;  %v7452_v50 = vadd.f32 %v2068_v47, %v1862_v46  ;;  %v7454_v52 = vadd.f32 %v2072_v49, %v1866_v48  ;;  %v2471_v48 = vld [vmem:[%s9483_s27 + $0xa8] sm:$0xff]  ;;  %v2470_v49 = vld [vmem:[%s9483_s27 + $0xa0] sm:$0xff] }
 0x6a3   : > { %7168 = vmatprep.subr.bf16.mxu0 %v9455_v17  ;;  %7141 = vmatprep.subr.bf16.mxu1 %v7140_v61 }
 0x6a6   : > { %7143 = vmatpush1.bf16.msra.mxu1 %v7142_v0  ;;  %7170 = vmatpush3.bf16.msra.mxu0 %v7169_v3 }
 0x6a7   : > { %7171 = vmatprep.subr.bf16.mxu0 %v9455_v17  ;;  %7145 = vmatprep.subr.bf16.mxu1 %v7144_v5 }
 0x6aa   : > { %7147 = vmatpush1.bf16.msra.mxu1 %v7146_v12  ;;  %7173 = vmatpush3.bf16.msra.mxu0 %v7172_v16 }
 0x6ab   : > { %7149 = vmatprep.subr.bf16.mxu1 %v7148_v18  ;;  %7174 = vmatprep.subr.bf16.mxu0 %v9455_v17  ;;  %v2457_v18 = vld [vmem:[%s9483_s27 + $0x38] sm:$0xff] }
 0x6ae   : > { %7151 = vmatpush1.bf16.msra.mxu1 %v7150_v22  ;;  %7176 = vmatpush3.bf16.msra.mxu0 %v7175_v38  ;;  %v7182_v22 = vpack.c.bf16 %v2453_v13, %v2450_v11  ;;  %v7184_v38 = vpack.c.bf16 %v2460_v19, %v2457_v18  ;;  %v2486_v11 = vld [vmem:[%s9483_s27 + $0x120] sm:$0xff]  ;;  %v2493_v18 = vld [vmem:[%s9483_s27 + $0x158] sm:$0xff]  ;;  %v2496_v19 = vld [vmem:[%s9483_s27 + $0x170] sm:$0xff] }
 0x6af   : > { %7153 = vmatprep.subr.bf16.mxu1 %v7152_v26  ;;  %7177 = vmatprep.subr.bf16.mxu0 %v9455_v17  ;;  %v2459_v26 = vld [vmem:[%s9483_s27 + $0x48] sm:$0xff] }
 0x6b2   : > { %7155 = vmatpush1.bf16.msra.mxu1 %v7154_v7  ;;  %7179 = vmatpush3.bf16.msra.mxu0 %v7178_v33  ;;  %v7188_v7 = vpack.c.bf16 %v2466_v30, %v2463_v29  ;;  %v2465_v33 = vld [vmem:[%s9483_s27 + $0x78] sm:$0xff]  ;;  %v2686_v29 = vld [vmem:[#allocation5 + $0x8] sm:$0xff]  ;;  %v2685_v30 = vld [vmem:[#allocation5] sm:$0xff] }
 0x6b3   : > { %7181 = vmatprep.subr.bf16.mxu1 %v7180_v34  ;;  %7212 = vmatprep.subr.bf16.mxu0 %v9455_v17  ;;  %v2464_v34 = vld [vmem:[%s9483_s27 + $0x70] sm:$0xff]  ;;  %v7190_v43 = vpack.c.bf16 %v2465_v33, %v2462_v31  ;;  %v2677_v31 = vld [vmem:[%s7894_s5] sm:$0x7]  ;;  %v2679_v33 = vld [vmem:[%s7894_s5 + $0x8] sm:$0x7] }
 0x747   : > { %v6009_v35 = vpop.f32.mrb[12].mxu1 }
 0x748   : > { %v6010_v36 = vpop.f32.mrb[13].mxu1 }
 0x749   : > { %v6011_v8 = vadd.f32 %v6010_v36, %v6009_v35  ;;  %v2467_v35 = vld [vmem:[%s9483_s27 + $0x88] sm:$0xff]  ;;  %v2469_v36 = vld [vmem:[%s9483_s27 + $0x98] sm:$0xff] }
 0x74a   : > { %v7219_v46 = vpack.c.bf16 %v2467_v35, %v2464_v34  ;;  %v2684_v34 = vld [vmem:[%s7894_s5 + $0x1c] sm:$0x7]  ;;  %v2688_v35 = vld [vmem:[#allocation5 + $0x18] sm:$0xff] }
 0x74b   : > { %v2012_v4 = vadd.f32 %v6011_v8, %v1870_v1  ;;  %v2472_v8 = vld [vmem:[%s9483_s27 + $0xb0] sm:$0xff] }
 0x74c   : > { %v7192_v47 = vpack.c.bf16 %v2472_v8, %v2469_v36  ;;  %v2680_v36 = vld [vmem:[%s7894_s5 + $0xc] sm:$0x7] }
 0x74d   : > { %v2689_v8 = vld [vmem:[#allocation5 + $0x20] sm:$0xff] }
 0x767   : > { %v2146_v51 = vpop.f32.mrb[18].mxu0  ;;  %v2217_v53 = vpop.f32.mrb[14].mxu1 }
 0x768   : > { %v7453_v54 = vadd.f32 %v7452_v50, %v2146_v51  ;;  %v2148_v55 = vpop.f32.mrb[19].mxu0  ;;  %v6447_v56 = vpop.f32.mrb[15].mxu1  ;;  %v2218_v3 = vadd.f32 %v2217_v53, %v2076_v63  ;;  %v2473_v50 = vld [vmem:[%s9483_s27 + $0xb8] sm:$0xff]  ;;  %v2475_v51 = vld [vmem:[%s9483_s27 + $0xc8] sm:$0xff]  ;;  %v7194_v53 = vpack.c.bf16 %v2471_v48, %v2468_v44  ;;  %v2690_v44 = vld [vmem:[#allocation5 + $0x28] sm:$0xff] }
 0x769   : > { %v7455_v58 = vadd.f32 %v7454_v52, %v2148_v55  ;;  %v2478_v52 = vld [vmem:[%s9483_s27 + $0xe0] sm:$0xff]  ;;  %v7222_v55 = vpack.c.bf16 %v2473_v50, %v2470_v49  ;;  %v2683_v48 = vld [vmem:[%s7894_s5 + $0x18] sm:$0x7]  ;;  %v3280_v50 = vld [vmem:[%s9487_s18 + $0x8] sm:$0xff] }
 0x76a   : > { %v5858_v57 = vmul.f32 -1.442695, %v7453_v54  ;;  %v2474_v54 = vld [vmem:[%s9483_s27 + $0xc0] sm:$0xff]  ;;  %v7196_v56 = vpack.c.bf16 %v2478_v52, %v2475_v51  ;;  %v3281_v51 = vld [vmem:[%s9487_s18 + $0x10] sm:$0xff] }
 0x76b   : > { %v5859_v59 = vmul.f32 -1.442695, %v7455_v58  ;;  %v2476_v58 = vld [vmem:[%s9483_s27 + $0xd0] sm:$0xff]  ;;  %v3279_v49 = vld [vmem:[%s9487_s18] sm:$0xff] }
 0x76c   : > { %7520 = vpow2.f32 %v5858_v57  ;;  %v2477_v57 = vld [vmem:[%s9483_s27 + $0xd8] sm:$0xff]  ;;  %v7237_v52 = vpack.c.bf16 %v3280_v50, %v3279_v49  ;;  %v3582_v50 = vld [vmem:[%s9489_s22 + $0x50] sm:$0xff] }
 0x76d   : > { %7522 = vpow2.f32 %v5859_v59  ;;  %v2479_v59 = vld [vmem:[%s9483_s27 + $0xe8] sm:$0xff]  ;;  %v7198_v63 = vpack.c.bf16 %v2477_v57, %v2474_v54 }
 0x76e   : > { %v7225_v1 = vpack.c.bf16 %v2479_v59, %v2476_v58  ;;  %v3285_v58 = vld [vmem:[%s9487_s18 + $0x30] sm:$0xff]  ;;  %v3286_v59 = vld [vmem:[%s9487_s18 + $0x38] sm:$0xff] }
 0x776   : > { %v7521_v60 = vpop.eup %7520 }
 0x777   : > { %v2225_v61 = vadd.f32 1.0, %v7521_v60  ;;  %v7523_v0 = vpop.eup %7522  ;;  %v2481_v60 = vld [vmem:[%s9483_s27 + $0xf8] sm:$0xff] }
 0x778   : > { %v2232_v2 = vadd.f32 1.0, %v7523_v0  ;;  %v2480_v0 = vld [vmem:[%s9483_s27 + $0xf0] sm:$0xff] }
 0x779   : > { %7524 = vrcp.f32 %v2225_v61  ;;  %v2484_v61 = vld [vmem:[%s9483_s27 + $0x110] sm:$0xff] }
 0x77a   : > { %7526 = vrcp.f32 %v2232_v2  ;;  %v7200_v2 = vpack.c.bf16 %v2484_v61, %v2481_v60  ;;  %v7246_v60 = vpack.c.bf16 %v3286_v59, %v3285_v58  ;;  %v3287_v61 = vld [vmem:[%s9487_s18 + $0x40] sm:$0xff] }
 0x783   : > { %v7525_v10 = vpop.eup %7524 }
 0x784   : > { %v2235_v5 = vmul.f32 %v7525_v10, %v2218_v3  ;;  %v7527_v9 = vpop.eup %7526  ;;  %v2483_v3 = vld [vmem:[%s9483_s27 + $0x108] sm:$0xff]  ;;  %v2482_v10 = vld [vmem:[%s9483_s27 + $0x100] sm:$0xff] }
 0x785   : > { %v2238_v12 = vsub.f32 1.0, %v7527_v9  ;;  %v2240_v21 = vmul.f32 %v7527_v9, %v8227_v23  ;;  %v7186_v23 = vpack.c.bf16 %v2459_v26, %v2456_v24  ;;  %v7202_v9 = vpack.c.bf16 %v2483_v3, %v2480_v0 }
 0x786   : > { %v2236_v6 = vadd.f32 %v2235_v5, %v2012_v4  ;;  %v2485_v4 = vld [vmem:[%s9483_s27 + $0x118] sm:$0xff]  ;;  %v2487_v5 = vld [vmem:[%s9483_s27 + $0x128] sm:$0xff]  ;;  %v7208_v24 = vpack.c.bf16 %v2496_v19, %v2493_v18 }
 0x787   : > { %v3573_v18 = vld [vmem:[%s9489_s22 + $0x8] sm:$0xff] }
 0x788   : > { %7528 = vtanh.f32 %v2236_v6  ;;  %v2490_v6 = vld [vmem:[%s9483_s27 + $0x140] sm:$0xff] }
 0x789   : > { %v7204_v13 = vpack.c.bf16 %v2490_v6, %v2487_v5  ;;  %v3293_v6 = vld [vmem:[%s9487_s18 + $0x70] sm:$0xff] }
 0x792   : > { %v7529_v16 = vpop.eup %7528 }
 0x793   : > { %v2239_v20 = vmul.f32 %v7529_v16, %v2238_v12  ;;  %v7228_v12 = vpack.c.bf16 %v2485_v4, %v2482_v10  ;;  %v2491_v16 = vld [vmem:[%s9483_s27 + $0x148] sm:$0xff]  ;;  %v3291_v10 = vld [vmem:[%s9487_s18 + $0x60] sm:$0xff] }
 0x794   : > { %v3292_v4 = vld [vmem:[%s9487_s18 + $0x68] sm:$0xff] }
 0x795   : > { %v2241_v40 = vadd.f32 %v2240_v21, %v2239_v20  ;;  %v7206_v20 = vpack.c.bf16 %v2489_v14, %v2486_v11  ;;  %v2492_v21 = vld [vmem:[%s9483_s27 + $0x150] sm:$0xff]  ;;  %v7255_v5 = vpack.c.bf16 %v3292_v4, %v3291_v10  ;;  %v3572_v14 = vld [vmem:[%s9489_s22] sm:$0xff] }
 0x796   : > { %v8454_v19 = vpack.c.bf16 %v3573_v18, %v3572_v14  ;;  %v2498_v4 = vld [vmem:[%s9490_s26] sm:$0x7]  ;;  %s9504_s26 = sld [smem:[#allocation21_spill]] }
 0x797   : > { %2242 = vst [vmem:[#allocation3] sm:$0xff] %v2241_v40  ;;  %2374 = vmatmul.mubr.f32.vlgmr.msra.gmra.mrb[16].mxu1 %v2241_v40  ;;  %6481 = vmatmul.mubr.f32.vlgmr.msra.gmra.mrb[20].mxu0 %v2241_v40  ;;  %v2494_v40 = vld [vmem:[%s9483_s27 + $0x160] sm:$0xff] }
 0x798   : > { %7183 = vmatpush1.bf16.msra.mxu1 %v7182_v22  ;;  %7214 = vmatpush3.bf16.msra.mxu0 %v7213_v25  ;;  %v7231_v22 = vpack.c.bf16 %v2491_v16, %v2488_v15  ;;  %v2495_v25 = vld [vmem:[%s9483_s27 + $0x168] sm:$0xff]  ;;  %v8448_v15 = vld [vmem:[%s7887_s2] sm:$0xff] }
 0x799   : > { %7185 = vmatprep.subr.bf16.mxu1 %v7184_v38  ;;  %7215 = vmatprep.subr.bf16.mxu0 %v9455_v17  ;;  %v2497_v38 = vld [vmem:[%s9483_s27 + $0x178] sm:$0xff]  ;;  %v7210_v26 = vpack.c.bf16 %v2495_v25, %v2492_v21 }
 0x79a   : > { %2579 = vmatprep.mubr.f32.mxu1 %v9453_v37  ;;  %6515 = vmatprep.mubr.msk.f32.mxu0 %vm7690_vm1, %v9453_v37  ;;  %v7234_v27 = vpack.c.bf16 %v2497_v38, %v2494_v40  ;;  %v3575_v25 = vld [vmem:[%s9489_s22 + $0x18] sm:$0xff] }
 0x79c   : > { %7187 = vmatpush1.bf16.msra.mxu1 %v7186_v23  ;;  %7217 = vmatpush3.bf16.msra.mxu0 %v7216_v32  ;;  %v2678_v23 = vld [vmem:[%s7894_s5 + $0x4] sm:$0x7]  ;;  %v2687_v32 = vld [vmem:[#allocation5 + $0x10] sm:$0xff] }
 0x79d   : > { %7189 = vmatprep.subr.bf16.mxu1 %v7188_v7  ;;  %7218 = vmatprep.subr.bf16.mxu0 %v9455_v17  ;;  %v2692_v7 = vld [vmem:[#allocation5 + $0x38] sm:$0xff] }
 0x7a0   : > { %7191 = vmatpush1.bf16.msra.mxu1 %v7190_v43  ;;  %7220 = vmatpush3.bf16.msra.mxu0 %v7219_v46  ;;  %v2681_v43 = vld [vmem:[%s7894_s5 + $0x10] sm:$0x7]  ;;  %v2682_v46 = vld [vmem:[%s7894_s5 + $0x14] sm:$0x7]  ;;  %s9488_s5 = sld [smem:[#allocation23_spill]] }
 0x7a1   : > { %7193 = vmatprep.subr.bf16.mxu1 %v7192_v47  ;;  %7221 = vmatprep.subr.bf16.mxu0 %v9455_v17  ;;  %v2691_v47 = vld [vmem:[#allocation5 + $0x30] sm:$0xff] }
 0x7a4   : > { %7195 = vmatpush1.bf16.msra.mxu1 %v7194_v53  ;;  %7223 = vmatpush3.bf16.msra.mxu0 %v7222_v55  ;;  %v3282_v53 = vld [vmem:[%s9487_s18 + $0x18] sm:$0xff]  ;;  %v3283_v55 = vld [vmem:[%s9487_s18 + $0x20] sm:$0xff] }
 0x7a5   : > { %7197 = vmatprep.subr.bf16.mxu1 %v7196_v56  ;;  %7224 = vmatprep.subr.bf16.mxu0 %v9455_v17  ;;  %v7240_v54 = vpack.c.bf16 %v3282_v53, %v3281_v51  ;;  %v3284_v56 = vld [vmem:[%s9487_s18 + $0x28] sm:$0xff] }
 0x7a6   : > { %v7243_v57 = vpack.c.bf16 %v3284_v56, %v3283_v55  ;;  %v3386_v21 = vld [vmem:[%s9488_s5 + $0x18] sm:$0xff]  ;;  %v3387_v38 = vld [vmem:[%s9488_s5 + $0x20] sm:$0xff] }
 0x7a7   : > { %v3394_v49 = vld [vmem:[%s9488_s5 + $0x58] sm:$0xff]  ;;  %v3395_v53 = vld [vmem:[%s9488_s5 + $0x60] sm:$0xff] }
 0x7a8   : > { %7199 = vmatpush1.bf16.msra.mxu1 %v7198_v63  ;;  %7226 = vmatpush3.bf16.msra.mxu0 %v7225_v1  ;;  %v3288_v63 = vld [vmem:[%s9487_s18 + $0x48] sm:$0xff]  ;;  %v3289_v1 = vld [vmem:[%s9487_s18 + $0x50] sm:$0xff]  ;;  %v3584_v56 = vld [vmem:[%s9489_s22 + $0x60] sm:$0xff] }
 0x7a9   : > { %7201 = vmatprep.subr.bf16.mxu1 %v7200_v2  ;;  %7227 = vmatprep.subr.bf16.mxu0 %v9455_v17  ;;  %v7249_v0 = vpack.c.bf16 %v3288_v63, %v3287_v61  ;;  %v3290_v2 = vld [vmem:[%s9487_s18 + $0x58] sm:$0xff]  ;;  %v3586_v63 = vld [vmem:[%s9489_s22 + $0x70] sm:$0xff] }
 0x7aa   : > { %v7252_v3 = vpack.c.bf16 %v3290_v2, %v3289_v1  ;;  %v3398_v61 = vld [vmem:[%s9488_s5 + $0x78] sm:$0xff] }
 0x7ac   : > { %7203 = vmatpush1.bf16.msra.mxu1 %v7202_v9  ;;  %7229 = vmatpush3.bf16.msra.mxu0 %v7228_v12  ;;  %v3294_v9 = vld [vmem:[%s9487_s18 + $0x78] sm:$0xff]  ;;  %v3383_v12 = vld [vmem:[%s9488_s5] sm:$0xff] }
 0x7ad   : > { %7205 = vmatprep.subr.bf16.mxu1 %v7204_v13  ;;  %7230 = vmatprep.subr.bf16.mxu0 %v9455_v17  ;;  %v7258_v11 = vpack.c.bf16 %v3294_v9, %v3293_v6  ;;  %v3384_v13 = vld [vmem:[%s9488_s5 + $0x8] sm:$0xff]  ;;  %v2503_v9 = vrot.slane %v2498_v4, %v8297_v42 }
 0x7ae   : > { %v8450_v16 = vpack.c.bf16 %v3384_v13, %v3383_v12  ;;  %v2507_v12 = vrot.slane %v2498_v4, %v8302_v45 }
 0x7b0   : > { %7207 = vmatpush1.bf16.msra.mxu1 %v7206_v20  ;;  %7232 = vmatpush3.bf16.msra.mxu0 %v7231_v22  ;;  %v3385_v20 = vld [vmem:[%s9488_s5 + $0x10] sm:$0xff] }
 0x7b1   : > { %7209 = vmatprep.subr.bf16.mxu1 %v7208_v24  ;;  %7233 = vmatprep.subr.bf16.mxu0 %v9455_v17  ;;  %v3574_v22 = vld [vmem:[%s9489_s22 + $0x10] sm:$0xff]  ;;  %v8465_v24 = vpack.c.bf16 %v3386_v21, %v3385_v20 }
 0x7b2   : > { %v8468_v40 = vpack.c.bf16 %v3575_v25, %v3574_v22 }
 0x7b4   : > { %7211 = vmatpush1.bf16.msra.mxu1 %v7210_v26  ;;  %7235 = vmatpush3.bf16.msra.mxu0 %v7234_v27  ;;  %v3388_v26 = vld [vmem:[%s9488_s5 + $0x28] sm:$0xff]  ;;  %v3576_v27 = vld [vmem:[%s9489_s22 + $0x20] sm:$0xff] }
 0x7b5   : > { %6523 = vmatprep.subr.mxu1 %v9453_v37  ;;  %6518 = vmatprep.subr.mxu0 %v9453_v37 }
 0x7b7   : > { %2580 = vmatmul.mubr.f32.vlgmr.msra.gmra.mrb[16].mxu1 %v8370_v28  ;;  %6516 = vmatmul.mubr.f32.vlgmr.msra.gmra.mrb[22].mxu0 %v8370_v28 }
 0x7b8   : > { %6524 = vmatpush3.msra.mxu1 %v2686_v29  ;;  %6525 = vmatprep.mubr.msk.f32.mxu1 %vm7690_vm1, %v9453_v37  ;;  %v8474_v29 = vpack.c.bf16 %v3388_v26, %v3387_v38  ;;  %v2511_v38 = vrot.slane %v2498_v4, %v8309_v62 }
 0x7b9   : > { %6528 = vmatprep.subr.mxu1 %v9453_v37  ;;  %6519 = vmatpush3.msra.mxu0 %v2685_v30  ;;  %v3577_v30 = vld [vmem:[%s9489_s22 + $0x28] sm:$0xff] }
 0x7ba   : > { %6520 = vmatprep.mubr.msk.f32.mxu0 %vm7690_vm1, %v9453_v37  ;;  %6553 = vmatprep.subr.mxu0 %v9453_v37 }
 0x7bb   : > { %6526 = vmatmul.mubr.msk.f32.vlgmr.msra.gmra.mrb[18].mxu1 %vm1096_vm0, %v2678_v23  ;;  %6521 = vmatmul.mubr.msk.f32.vlgmr.msra.gmra.mrb[24].mxu0 %vm1096_vm0, %v2677_v31  ;;  %v8479_v23 = vpack.c.bf16 %v3577_v30, %v3576_v27  ;;  %v3389_v31 = vld [vmem:[%s9488_s5 + $0x30] sm:$0xff]  ;;  %v8555_v27 = vrot.slane %v8448_v15, 1  ;;  %v8558_v30 = vrot.slane %v8448_v15, 7 }
 0x7bc   : > { %6529 = vmatpush3.msra.mxu1 %v2687_v32  ;;  %6530 = vmatprep.mubr.msk.f32.mxu1 %vm7690_vm1, %v9453_v37  ;;  %v3390_v32 = vld [vmem:[%s9488_s5 + $0x38] sm:$0xff] }
 0x7bd   : > { %6533 = vmatprep.subr.mxu1 %v9453_v37  ;;  %6554 = vmatpush3.msra.mxu0 %v2692_v7  ;;  %v3578_v7 = vld [vmem:[%s9489_s22 + $0x30] sm:$0xff] }
 0x7be   : > { %6555 = vmatprep.mubr.msk.f32.mxu0 %vm7690_vm1, %v9453_v37  ;;  %7260 = vmatprep.subr.bf16.mxu0 %v9455_v17 }
 0x7bf   : > { %6531 = vmatmul.mubr.msk.f32.vlgmr.msra.gmra.mrb[20].mxu1 %vm1096_vm0, %v2679_v33  ;;  %6556 = vmatmul.mubr.msk.f32.vlgmr.msra.gmra.mrb[26].mxu0 %vm1096_vm0, %v2684_v34  ;;  %v8489_v33 = vpack.c.bf16 %v3390_v32, %v3389_v31  ;;  %v3579_v34 = vld [vmem:[%s9489_s22 + $0x38] sm:$0xff]  ;;  %v8561_v32 = vrot.slane %v8448_v15, 2 }
 0x7c0   : > { %6534 = vmatpush3.msra.mxu1 %v2688_v35  ;;  %6535 = vmatprep.mubr.msk.f32.mxu1 %vm7690_vm1, %v9453_v37  ;;  %v8492_v35 = vpack.c.bf16 %v3579_v34, %v3578_v7  ;;  %v8564_v7 = vrot.slane %v8448_v15, 3 }
 0x7c1   : > { %6538 = vmatprep.subr.mxu1 %v9453_v37  ;;  %6625 = vmatprep.mubr.msk.f32.mxu0 %vm7690_vm1, %v9453_v37 }
 0x7c2   : > { %7262 = vmatpush3.bf16.msra.mxu0 %v8450_v16 }
 0x7c3   : > { %6536 = vmatmul.mubr.msk.f32.vlgmr.msra.gmra.mrb[22].mxu1 %vm1096_vm0, %v2680_v36  ;;  %7263 = vmatprep.subr.bf16.mxu0 %v9455_v17  ;;  %v3391_v36 = vld [vmem:[%s9488_s5 + $0x40] sm:$0xff] }
 0x7c4   : > { %6539 = vmatpush3.msra.mxu1 %v2689_v8  ;;  %6540 = vmatprep.mubr.msk.f32.mxu1 %vm7690_vm1, %v9453_v37  ;;  %v3392_v8 = vld [vmem:[%s9488_s5 + $0x48] sm:$0xff] }
 0x7c5   : > { %6543 = vmatprep.subr.mxu1 %v9453_v37 }
 0x7c6   : > { %7265 = vmatpush3.bf16.msra.mxu0 %v8465_v24 }
 0x7c7   : > { %6541 = vmatmul.mubr.msk.f32.vlgmr.msra.gmra.mrb[24].mxu1 %vm1096_vm0, %v2681_v43  ;;  %7266 = vmatprep.subr.bf16.mxu0 %v9455_v17  ;;  %v3580_v43 = vld [vmem:[%s9489_s22 + $0x40] sm:$0xff] }
 0x7c8   : > { %6544 = vmatpush3.msra.mxu1 %v2690_v44  ;;  %6545 = vmatprep.mubr.msk.f32.mxu1 %vm7690_vm1, %v9453_v37  ;;  %v8501_v44 = vpack.c.bf16 %v3392_v8, %v3391_v36  ;;  %v8567_v36 = vrot.slane %v8448_v15, 6  ;;  %v8570_v8 = vrot.slane %v8448_v15, 4 }
 0x7c9   : > { %6548 = vmatprep.subr.mxu1 %v9453_v37 }
 0x7ca   : > { %7268 = vmatpush3.bf16.msra.mxu0 %v8474_v29 }
 0x7cb   : > { %6546 = vmatmul.mubr.msk.f32.vlgmr.msra.gmra.mrb[26].mxu1 %vm1096_vm0, %v2682_v46  ;;  %7269 = vmatprep.subr.bf16.mxu0 %v9455_v17  ;;  %v3581_v46 = vld [vmem:[%s9489_s22 + $0x48] sm:$0xff] }
 0x7cc   : > { %6549 = vmatpush3.msra.mxu1 %v2691_v47  ;;  %6550 = vmatprep.mubr.msk.f32.mxu1 %vm7690_vm1, %v9453_v37  ;;  %v8504_v47 = vpack.c.bf16 %v3581_v46, %v3580_v43 }
 0x7cd   : > { %7236 = vmatprep.subr.bf16.mxu1 %v9455_v17 }
 0x7ce   : > { %7271 = vmatpush3.bf16.msra.mxu0 %v8489_v33 }
 0x7cf   : > { %6551 = vmatmul.mubr.msk.f32.vlgmr.msra.gmra.mrb[28].mxu1 %vm1096_vm0, %v2683_v48  ;;  %7272 = vmatprep.subr.bf16.mxu0 %v9455_v17  ;;  %v3393_v48 = vld [vmem:[%s9488_s5 + $0x50] sm:$0xff]  ;;  %vm4572_vm0 = vcmask 1047554  }
 0x7d0   : > { %6590 = vmatprep.mubr.msk.f32.mxu1 %vm7690_vm1, %v9453_v37  ;;  %7238 = vmatpush3.bf16.msra.mxu1 %v7237_v52  ;;  %v8513_v51 = vpack.c.bf16 %v3394_v49, %v3393_v48  ;;  %v3583_v52 = vld [vmem:[%s9489_s22 + $0x58] sm:$0xff] }
 0x7d1   : > { %7239 = vmatprep.subr.bf16.mxu1 %v9455_v17  ;;  %v8518_v55 = vpack.c.bf16 %v3583_v52, %v3582_v50  ;;  %v8575_v50 = vrot.slane %v8448_v15, 5 }
 0x7d2   : > { %7274 = vmatpush3.bf16.msra.mxu0 %v8501_v44 }
 0x7d3   : > { %7275 = vmatprep.subr.bf16.mxu0 %v9455_v17 }
 0x7d4   : > { %7241 = vmatpush3.bf16.msra.mxu1 %v7240_v54  ;;  %v3396_v54 = vld [vmem:[%s9488_s5 + $0x68] sm:$0xff] }
 0x7d5   : > { %7242 = vmatprep.subr.bf16.mxu1 %v9455_v17  ;;  %v8523_v58 = vpack.c.bf16 %v3396_v54, %v3395_v53 }
 0x7d6   : > { %7277 = vmatpush3.bf16.msra.mxu0 %v8513_v51 }
 0x7d7   : > { %7278 = vmatprep.subr.bf16.mxu0 %v9455_v17 }
 0x7d8   : > { %7244 = vmatpush3.bf16.msra.mxu1 %v7243_v57  ;;  %v3585_v57 = vld [vmem:[%s9489_s22 + $0x68] sm:$0xff] }
 0x7d9   : > { %7245 = vmatprep.subr.bf16.mxu1 %v9455_v17  ;;  %v8527_v59 = vpack.c.bf16 %v3585_v57, %v3584_v56 }
 0x7da   : > { %7280 = vmatpush3.bf16.msra.mxu0 %v8523_v58 }
 0x7db   : > { %7281 = vmatprep.subr.bf16.mxu0 %v9455_v17 }
 0x7dc   : > { %7247 = vmatpush3.bf16.msra.mxu1 %v7246_v60  ;;  %v3397_v60 = vld [vmem:[%s9488_s5 + $0x70] sm:$0xff] }
 0x7dd   : > { %7248 = vmatprep.subr.bf16.mxu1 %v9455_v17  ;;  %v8535_v1 = vpack.c.bf16 %v3398_v61, %v3397_v60 }
 0x7df   : > { %7283 = vmatpush3.bf16.msra.mxu0 %v8535_v1 }
 0x7e0   : > { %7250 = vmatpush3.bf16.msra.mxu1 %v7249_v0  ;;  %v3587_v0 = vld [vmem:[%s9489_s22 + $0x78] sm:$0xff]  ;;  %7308 = vmatprep.subr.bf16.mxu0 %v9455_v17 }
 0x7e1   : > { %7251 = vmatprep.subr.bf16.mxu1 %v9455_v17  ;;  %v8539_v2 = vpack.c.bf16 %v3587_v0, %v3586_v63 }
 0x7e4   : > { %7253 = vmatpush3.bf16.msra.mxu1 %v7252_v3 }
 0x7e5   : > { %7254 = vmatprep.subr.bf16.mxu1 %v9455_v17 }
 0x7e8   : > { %7256 = vmatpush3.bf16.msra.mxu1 %v7255_v5  ;;  %v2292_v5 = vld [vmem:[%s9491_s28] sm:$0x7]  ;;  %s4931_s28 = scalar_select %p4930_p1, %s7868_s0, 3 }
 0x7e9   : > { %7257 = vmatprep.subr.bf16.mxu1 %v9455_v17  ;;  %v2297_v6 = vrot.slane %v2292_v5, %v8297_v42  ;;  %v2305_v18 = vrot.slane %v2292_v5, %v8309_v62 }
 0x7eb   : > { %v7456_v13 = vadd.f32 %v2503_v9, %v2297_v6 }
 0x7ec   : > { %7259 = vmatpush3.bf16.msra.mxu1 %v7258_v11  ;;  %v2301_v11 = vrot.slane %v2292_v5, %v8302_v45 }
 0x7ed   : > { %7284 = vmatprep.subr.bf16.mxu1 %v9455_v17 }
 0x7ee   : > { %v7458_v14 = vadd.f32 %v2507_v12, %v2301_v11 }
 0x7ef   : > { %6591 = vmatmul.mubr.f32.vlgmr.msra.gmra.mrb[30].mxu1 %v8448_v15 }
 0x7f0   : > { %6660 = vmatprep.mubr.msk.f32.mxu1 %vm7690_vm1, %v9453_v37  ;;  %7286 = vmatpush3.bf16.msra.mxu1 %v8454_v19 }
 0x7f1   : > { %7287 = vmatprep.subr.bf16.mxu1 %v9455_v17 }
 0x7f4   : > { %7289 = vmatpush3.bf16.msra.mxu1 %v8468_v40 }
 0x7f5   : > { %7290 = vmatprep.subr.bf16.mxu1 %v9455_v17 }
 0x7f8   : > { %7292 = vmatpush3.bf16.msra.mxu1 %v8479_v23 }
 0x7f9   : > { %7293 = vmatprep.subr.bf16.mxu1 %v9455_v17 }
 0x7fc   : > { %7295 = vmatpush3.bf16.msra.mxu1 %v8492_v35 }
 0x7fd   : > { %7296 = vmatprep.subr.bf16.mxu1 %v9455_v17 }
 0x800   : > { %7298 = vmatpush3.bf16.msra.mxu1 %v8504_v47 }
 0x801   : > { %7299 = vmatprep.subr.bf16.mxu1 %v9455_v17 }
 0x804   : > { %7301 = vmatpush3.bf16.msra.mxu1 %v8518_v55 }
 0x805   : > { %7302 = vmatprep.subr.bf16.mxu1 %v9455_v17 }
 0x808   : > { %7304 = vmatpush3.bf16.msra.mxu1 %v8527_v59 }
 0x809   : > { %7305 = vmatprep.subr.bf16.mxu1 %v9455_v17 }
 0x80c   : > { %7307 = vmatpush3.bf16.msra.mxu1 %v8539_v2 }
 0x80d   : > { %7332 = vmatprep.subr.bf16.mxu1 %v9455_v17 }
 0x86a   : > { %v2446_v3 = vpop.f32.mrb[20].mxu0 }
 0x86b   : > { %v6482_v10 = vpop.f32.mrb[21].mxu0  ;;  %v8572_v43 = vadd.f32 %v2446_v3, %v2305_v18 }
 0x88a   : > { %v2581_v20 = vpop.f32.mrb[16].mxu1  ;;  %v2652_v21 = vpop.f32.mrb[22].mxu0 }
 0x88b   : > { %v7457_v22 = vadd.f32 %v7456_v13, %v2581_v20  ;;  %v2583_v25 = vpop.f32.mrb[17].mxu1  ;;  %v6517_v26 = vpop.f32.mrb[23].mxu0  ;;  %v8581_v60 = vadd.f32 %v2652_v21, %v2511_v38 }
 0x88c   : > { %v7459_v31 = vadd.f32 %v7458_v14, %v2583_v25 }
 0x88d   : > { %v5860_v34 = vmul.f32 -1.442695, %v7457_v22 }
 0x88e   : > { %v5861_v46 = vmul.f32 -1.442695, %v7459_v31  ;;  %v2835_v48 = vpop.f32.mrb[18].mxu1  ;;  %v2762_v49 = vpop.f32.mrb[24].mxu0 }
 0x88f   : > { %7530 = vpow2.f32 %v5860_v34  ;;  %v3725_v52 = vrot.slane %v2835_v48, 7  ;;  %v8578_v53 = vmul.f32 %v8555_v27, %v2835_v48  ;;  %v4210_v54 = vmul.f32 %v8448_v15, %v2835_v48  ;;  %v6527_v56 = vpop.f32.mrb[19].mxu1  ;;  %v6522_v57 = vpop.f32.mrb[25].mxu0 }
 0x890   : > { %7532 = vpow2.f32 %v5861_v46  ;;  %v4406_v61 = vrot.slane %v2835_v48, 1  ;;  %v4542_v63 = vmul.f32 %v8558_v30, %v2835_v48  ;;  %v8587_v10 = vmul.f32 %v8448_v15, %v2762_v49 }
 0x891   : > { %v3727_v3 = vsel %vm3726_vm3, %v3725_v52, %v2762_v49  ;;  %v4073_v4 = vrot.slane %v2762_v49, 1  ;;  %v4225_v5 = vrot.slane %v4210_v54, 7  ;;  %v4209_v11 = vmul.f32 %v8558_v30, %v2762_v49 }
 0x892   : > { %v4557_v6 = vrot.slane %v4542_v63, 7  ;;  %v2908_v9 = vpop.f32.mrb[20].mxu1  ;;  %v4405_v12 = vrot.slane %v2762_v49, 2  ;;  %v8590_v13 = vpop.f32.mrb[26].mxu0  ;;  %v4541_v34 = vmul.f32 %v8567_v36, %v2762_v49 }
 0x893   : > { %v3728_v14 = vrot.slane %v2908_v9, 6  ;;  %v8593_v18 = vmul.f32 %v8561_v32, %v2908_v9  ;;  %v4075_v20 = vrot.slane %v2908_v9, 7  ;;  %v4211_v21 = vmul.f32 %v8555_v27, %v2908_v9  ;;  %v6532_v22 = vpop.f32.mrb[21].mxu1  ;;  %v6557_v25 = vpop.f32.mrb[27].mxu0 }
 0x894   : > { %v4543_v38 = vmul.f32 %v8448_v15, %v2908_v9  ;;  %v4074_v26 = vsel %vm3726_vm3, %v2835_v48, %v4073_v4  ;;  %v4407_v31 = vsel %vm3726_vm3, %v4406_v61, %v4405_v12  ;;  %v3743_v54 = vrot.slane %v8590_v13, 1 }
 0x895   : > { %v3730_v52 = vsel %vm3729_vm4, %v3728_v14, %v3727_v3  ;;  %v4076_v56 = vsel %vm3729_vm4, %v4075_v20, %v4074_v26  ;;  %v4227_v57 = vrot.slane %v4211_v21, 6  ;;  %v4085_v15 = vrot.slane %v8590_v13, 2 }
 0x896   : > { %v4559_v63 = vrot.slane %v4543_v38, 6  ;;  %v2981_v22 = vpop.f32.mrb[22].mxu1  ;;  %v4408_v48 = vsel %vm3729_vm4, %v2908_v9, %v4407_v31  ;;  %v4226_v20 = vsel %vm3729_vm4, %v4225_v5, %v4209_v11  ;;  %v4558_v21 = vsel %vm3732_vm5, %v4557_v6, %v4541_v34 }
 0x897   : > { %v3731_v4 = vrot.slane %v2981_v22, 5  ;;  %v8607_v61 = vmul.f32 %v8564_v7, %v2981_v22  ;;  %v4077_v49 = vrot.slane %v2981_v22, 6  ;;  %v4212_v12 = vmul.f32 %v8561_v32, %v2981_v22  ;;  %v6537_v3 = vpop.f32.mrb[23].mxu1 }
 0x898   : > { %v4409_v14 = vrot.slane %v2981_v22, 7  ;;  %v4544_v31 = vmul.f32 %v8555_v27, %v2981_v22  ;;  %v4228_v0 = vsel %vm3732_vm5, %v4227_v57, %v4226_v20  ;;  %v4560_v5 = vsel %vm3735_vm6, %v4559_v63, %v4558_v21 }
 0x899   : > { %v7531_v38 = vpop.eup %7530  ;;  %v4229_v26 = vrot.slane %v4212_v12, 5  ;;  %v3733_v39 = vsel %vm3732_vm5, %v3731_v4, %v3730_v52  ;;  %v4078_v9 = vsel %vm3732_vm5, %v4077_v49, %v4076_v56 }
 0x89a   : > { %v7533_v37 = vpop.eup %7532  ;;  %v2660_v17 = vadd.f32 1.0, %v7531_v38  ;;  %v3054_v46 = vpop.f32.mrb[24].mxu1  ;;  %v4410_v3 = vsel %vm3732_vm5, %v4409_v14, %v4408_v48  ;;  %v4561_v20 = vrot.slane %v4544_v31, 5 }
 0x89b   : > { %v2667_v11 = vadd.f32 1.0, %v7533_v37  ;;  %v3734_v34 = vrot.slane %v3054_v46, 4  ;;  %v4079_v12 = vrot.slane %v3054_v46, 5  ;;  %v6542_v52 = vpop.f32.mrb[25].mxu1  ;;  %v4411_v56 = vrot.slane %v3054_v46, 6 }
 0x89c   : > { %7534 = vrcp.f32 %v2660_v17  ;;  %v4213_v27 = vmul.f32 %v8564_v7, %v3054_v46  ;;  %v4230_v22 = vsel %vm3735_vm6, %v4229_v26, %v4228_v0  ;;  %v3888_v4 = vmul.f32 %v8570_v8, %v3054_v46 }
 0x89d   : > { %v3736_v48 = vsel %vm3735_vm6, %v3734_v34, %v3733_v39  ;;  %v4080_v57 = vsel %vm3735_vm6, %v4079_v12, %v4078_v9  ;;  %v4545_v37 = vmul.f32 %v8561_v32, %v3054_v46  ;;  %v4412_v49 = vsel %vm3735_vm6, %v4411_v56, %v4410_v3 }
 0x89e   : > { %v3127_v63 = vpop.f32.mrb[26].mxu1  ;;  %v4231_v14 = vrot.slane %v4213_v27, 4  ;;  %v4548_v17 = vmul.f32 %v8575_v50, %v8590_v13  ;;  %v4562_v32 = vsel %vm3738_vm7, %v4561_v20, %v4560_v5  ;;  %7536 = vrcp.f32 %v2667_v11 }
 0x89f   : > { %v3737_v21 = vrot.slane %v3127_v63, 3  ;;  %v4081_v38 = vrot.slane %v3127_v63, 4  ;;  %v4413_v52 = vrot.slane %v3127_v63, 5  ;;  %v6547_v0 = vpop.f32.mrb[27].mxu1  ;;  %v4214_v26 = vmul.f32 %v8570_v8, %v3127_v63 }
 0x8a0   : > { %v4232_v39 = vsel %vm3738_vm7, %v4231_v14, %v4230_v22  ;;  %v4546_v9 = vmul.f32 %v8564_v7, %v3127_v63  ;;  %v4563_v46 = vrot.slane %v4545_v37, 4  ;;  %v4568_v6 = vrot.slane %v4548_v17, 1 }
 0x8a1   : > { %v3739_v3 = vsel %vm3738_vm7, %v3737_v21, %v3736_v48  ;;  %v4082_v31 = vsel %vm3738_vm7, %v4081_v38, %v4080_v57  ;;  %v4414_v34 = vsel %vm3738_vm7, %v4413_v52, %v4412_v49  ;;  %v4233_v12 = vrot.slane %v4214_v26, 3 }
 0x8a2   : > { %v3200_v56 = vpop.f32.mrb[28].mxu1  ;;  %v4564_v27 = vsel %vm3741_vm8, %v4563_v46, %v4562_v32  ;;  %v4565_v0 = vrot.slane %v4546_v9, 3  ;;  %v3889_v11 = vmul.f32 %v8575_v50, %v3127_v63 }
 0x8a3   : > { %v3740_v25 = vrot.slane %v3200_v56, 2  ;;  %v6552_v22 = vpop.f32.mrb[29].mxu1  ;;  %v4083_v14 = vrot.slane %v3200_v56, 3  ;;  %v4415_v7 = vrot.slane %v3200_v56, 4  ;;  %v4215_v5 = vmul.f32 %v8575_v50, %v3200_v56 }
 0x8a4   : > { %v4234_v37 = vsel %vm3741_vm8, %v4233_v12, %v4232_v39  ;;  %v8640_v48 = vsel %vm3744_vm9, %v4565_v0, %v4564_v27  ;;  %v4547_v57 = vmul.f32 %v8570_v8, %v3200_v56  ;;  %v9492_v8 = vrot.slane %v8590_v13, 3 }
 0x8a5   : > { %v3742_v49 = vsel %vm3741_vm8, %v3740_v25, %v3739_v3  ;;  %v4084_v20 = vsel %vm3741_vm8, %v4083_v14, %v4082_v31  ;;  %v4416_v17 = vsel %vm3741_vm8, %v4415_v7, %v4414_v34  ;;  %v4235_v21 = vrot.slane %v4215_v5, 2 }
 0x8a6   : > { %v7535_v38 = vpop.eup %7534  ;;  %v8650_v52 = vsel %vm3744_vm9, %v3743_v54, %v3742_v49  ;;  %v8655_v26 = vsel %vm3744_vm9, %v4085_v15, %v4084_v20  ;;  %v8660_v50 = vsel %vm3744_vm9, %v9492_v8, %v4416_v17  ;;  %v3890_v25 = vmul.f32 %v8567_v36, %v3200_v56 }
 0x8a7   : > { %v2670_v63 = vmul.f32 %v7535_v38, %v8581_v60  ;;  %v8665_v39 = vsel %vm3744_vm9, %v4235_v21, %v4234_v37  ;;  %v4567_v9 = vrot.slane %v4547_v57, 2  ;;  %v3891_v54 = vmul.f32 %v8558_v30, %v8590_v13 }
 0x8a8   : > { %v9493_v15 = vrot.slane %v8578_v53, 7  ;;  %v9494_v31 = vrot.slane %v8593_v18, 6  ;;  %v3906_v34 = vrot.slane %v3888_v4, 4  ;;  %v9495_v12 = vrot.slane %v8607_v61, 5  ;;  %v7537_v0 = vpop.eup %7536 }
 0x8a9   : > { %v2671_v46 = vadd.f32 %v2670_v63, %v8572_v43  ;;  %v8675_v3 = vsel %vm3726_vm3, %v4568_v6, %v4567_v9  ;;  %v3908_v30 = vrot.slane %v3889_v11, 3  ;;  %v3910_v27 = vrot.slane %v3890_v25, 2 }
 0x8aa   : > { %v3901_v32 = vsel %vm3726_vm3, %v9493_v15, %v8587_v10  ;;  %v3912_v10 = vrot.slane %v3891_v54, 1  ;;  %v2673_v22 = vsub.f32 1.0, %v7537_v0  ;;  %v2675_v61 = vmul.f32 %v7537_v0, %v8370_v28 }
 0x8ab   : > { %v3903_v60 = vsel %vm3729_vm4, %v9494_v31, %v3901_v32  ;;  %7538 = vtanh.f32 %v2671_v46  ;;  %v9497_v5 = vmov 0.0|0.0   ;;  %v9498_v37 = vmov 0.0  }
 0x8ac   : > { %v3905_v56 = vsel %vm3732_vm5, %v9495_v12, %v3903_v60 }
 0x8ad   : > { %v3907_v53 = vsel %vm3735_vm6, %v3906_v34, %v3905_v56 }
 0x8ae   : > { %v3909_v43 = vsel %vm3738_vm7, %v3908_v30, %v3907_v53 }
 0x8af   : > { %v3911_v6 = vsel %vm3741_vm8, %v3910_v27, %v3909_v43 }
 0x8b0   : > { %v8687_v18 = vsel %vm3744_vm9, %v3912_v10, %v3911_v6 }
 0x8b5   : > { %v7539_v4 = vpop.eup %7538 }
 0x8b6   : > { %v2674_v14 = vmul.f32 %v7539_v4, %v2673_v22 }
 0x8b8   : > { %v8690_v7 = vadd.f32 %v2675_v61, %v2674_v14 }
 0x8ba   : > { %9496 = vst [vmem:[#allocation27_spill] sm:$0xff] %v8690_v7  ;;  %6626 = vmatmul.mubr.f32.vlgmr.msra.gmra.mrb[28].mxu0 %v8690_v7  ;;  %6661 = vmatmul.mubr.f32.vlgmr.msra.gmra.mrb[32].mxu1 %v8690_v7 }
 0x8bb   : > { %7310 = vmatpush3.bf16.msra.mxu0 %v8450_v16  ;;  %7334 = vmatpush3.bf16.msra.mxu1 %v8454_v19 }
 0x8bc   : > { %7311 = vmatprep.subr.bf16.mxu0 %v9497_v5  ;;  %7335 = vmatprep.subr.bf16.mxu1 %v9497_v5 }
 0x8bd   : > { %6695 = vmatprep.mubr.msk.f32.mxu0 %vm7690_vm1, %v9498_v37  ;;  %6730 = vmatprep.mubr.msk.f32.mxu1 %vm7690_vm1, %v9498_v37 }
 0x8bf   : > { %7313 = vmatpush3.bf16.msra.mxu0 %v8465_v24  ;;  %7337 = vmatpush3.bf16.msra.mxu1 %v8468_v40 }
 0x8c0   : > { %7314 = vmatprep.subr.bf16.mxu0 %v9497_v5  ;;  %7338 = vmatprep.subr.bf16.mxu1 %v9497_v5 }
 0x8c2   : > { %v8756_v28 = vpop.f32.mrb[30].mxu1 }
 0x8c3   : > { %7316 = vmatpush3.bf16.msra.mxu0 %v8474_v29  ;;  %7340 = vmatpush3.bf16.msra.mxu1 %v8479_v23  ;;  %v6592_v57 = vpop.f32.mrb[31].mxu1 }
 0x8c4   : > { %7317 = vmatprep.subr.bf16.mxu0 %v9497_v5  ;;  %7341 = vmatprep.subr.bf16.mxu1 %v9497_v5 }
 0x8c7   : > { %7319 = vmatpush3.bf16.msra.mxu0 %v8489_v33  ;;  %7343 = vmatpush3.bf16.msra.mxu1 %v8492_v35 }
 0x8c8   : > { %7320 = vmatprep.subr.bf16.mxu0 %v9497_v5  ;;  %7344 = vmatprep.subr.bf16.mxu1 %v9497_v5 }
 0x8cb   : > { %7322 = vmatpush3.bf16.msra.mxu0 %v8501_v44  ;;  %7346 = vmatpush3.bf16.msra.mxu1 %v8504_v47 }
 0x8cc   : > { %7323 = vmatprep.subr.bf16.mxu0 %v9497_v5  ;;  %7347 = vmatprep.subr.bf16.mxu1 %v9497_v5 }
 0x8cf   : > { %7325 = vmatpush3.bf16.msra.mxu0 %v8513_v51  ;;  %7349 = vmatpush3.bf16.msra.mxu1 %v8518_v55 }
 0x8d0   : > { %7326 = vmatprep.subr.bf16.mxu0 %v9497_v5  ;;  %7350 = vmatprep.subr.bf16.mxu1 %v9497_v5 }
 0x8d3   : > { %7328 = vmatpush3.bf16.msra.mxu0 %v8523_v58  ;;  %7352 = vmatpush3.bf16.msra.mxu1 %v8527_v59 }
 0x8d4   : > { %7329 = vmatprep.subr.bf16.mxu0 %v9497_v5  ;;  %7353 = vmatprep.subr.bf16.mxu1 %v9497_v5 }
 0x8d7   : > { %7331 = vmatpush3.bf16.msra.mxu0 %v8535_v1  ;;  %7355 = vmatpush3.bf16.msra.mxu1 %v8539_v2 }
 0x8d8   : > { %7356 = vmatprep.subr.bf16.mxu0 %v9497_v5  ;;  %7380 = vmatprep.subr.bf16.mxu1 %v9497_v5 }
 0x8da   : > { %6696 = vmatmul.mubr.f32.vlgmr.msra.gmra.mrb[30].mxu0 %v8650_v52  ;;  %6731 = vmatmul.mubr.f32.vlgmr.msra.gmra.mrb[34].mxu1 %v8650_v52 }
 0x8db   : > { %7358 = vmatpush3.bf16.msra.mxu0 %v8450_v16  ;;  %7382 = vmatpush3.bf16.msra.mxu1 %v8454_v19 }
 0x8dc   : > { %7359 = vmatprep.subr.bf16.mxu0 %v9497_v5  ;;  %7383 = vmatprep.subr.bf16.mxu1 %v9497_v5 }
 0x8dd   : > { %6765 = vmatprep.mubr.msk.f32.mxu0 %vm7690_vm1, %v9498_v37  ;;  %6800 = vmatprep.mubr.msk.f32.mxu1 %vm7690_vm1, %v9498_v37 }
 0x8df   : > { %7361 = vmatpush3.bf16.msra.mxu0 %v8465_v24  ;;  %7385 = vmatpush3.bf16.msra.mxu1 %v8468_v40 }
 0x8e0   : > { %7362 = vmatprep.subr.bf16.mxu0 %v9497_v5  ;;  %7386 = vmatprep.subr.bf16.mxu1 %v9497_v5 }
 0x8e3   : > { %7364 = vmatpush3.bf16.msra.mxu0 %v8474_v29  ;;  %7388 = vmatpush3.bf16.msra.mxu1 %v8479_v23 }
 0x8e4   : > { %7365 = vmatprep.subr.bf16.mxu0 %v9497_v5  ;;  %7389 = vmatprep.subr.bf16.mxu1 %v9497_v5 }
 0x8e7   : > { %7367 = vmatpush3.bf16.msra.mxu0 %v8489_v33  ;;  %7391 = vmatpush3.bf16.msra.mxu1 %v8492_v35 }
 0x8e8   : > { %7368 = vmatprep.subr.bf16.mxu0 %v9497_v5  ;;  %7392 = vmatprep.subr.bf16.mxu1 %v9497_v5 }
 0x8eb   : > { %7370 = vmatpush3.bf16.msra.mxu0 %v8501_v44  ;;  %7394 = vmatpush3.bf16.msra.mxu1 %v8504_v47 }
 0x8ec   : > { %7371 = vmatprep.subr.bf16.mxu0 %v9497_v5  ;;  %7395 = vmatprep.subr.bf16.mxu1 %v9497_v5 }
 0x8ef   : > { %7373 = vmatpush3.bf16.msra.mxu0 %v8513_v51  ;;  %7397 = vmatpush3.bf16.msra.mxu1 %v8518_v55 }
 0x8f0   : > { %7374 = vmatprep.subr.bf16.mxu0 %v9497_v5  ;;  %7398 = vmatprep.subr.bf16.mxu1 %v9497_v5 }
 0x8f3   : > { %7376 = vmatpush3.bf16.msra.mxu0 %v8523_v58  ;;  %7400 = vmatpush3.bf16.msra.mxu1 %v8527_v59 }
 0x8f4   : > { %7377 = vmatprep.subr.bf16.mxu0 %v9497_v5  ;;  %7401 = vmatprep.subr.bf16.mxu1 %v9497_v5 }
 0x8f7   : > { %7379 = vmatpush3.bf16.msra.mxu0 %v8535_v1  ;;  %7403 = vmatpush3.bf16.msra.mxu1 %v8539_v2 }
 0x8f8   : > { %7404 = vmatprep.subr.bf16.mxu0 %v9497_v5  ;;  %7428 = vmatprep.subr.bf16.mxu1 %v9497_v5 }
 0x8fa   : > { %6766 = vmatmul.mubr.f32.vlgmr.msra.gmra.mrb[32].mxu0 %v8655_v26  ;;  %6801 = vmatmul.mubr.f32.vlgmr.msra.gmra.mrb[36].mxu1 %v8655_v26 }
 0x8fb   : > { %7406 = vmatpush3.bf16.msra.mxu0 %v8450_v16  ;;  %7430 = vmatpush3.bf16.msra.mxu1 %v8454_v19  ;;  %v8809_v16 = vld [vmem:[%s9499_s7] ss:$0 sm:$0xff]  ;;  %s4932_s7 = sadd.s32 1, %s4931_s28 }
 0x8fc   : > { %7407 = vmatprep.subr.bf16.mxu0 %v9497_v5  ;;  %7431 = vmatprep.subr.bf16.mxu1 %v9497_v5 }
 0x8fd   : > { %6835 = vmatprep.mubr.msk.f32.mxu0 %vm7690_vm1, %v9498_v37  ;;  %6870 = vmatprep.mubr.msk.f32.mxu1 %vm7690_vm1, %v9498_v37  ;;  %vm5059_vm1 = vcmask 60416  }
 0x8ff   : > { %7409 = vmatpush3.bf16.msra.mxu0 %v8465_v24  ;;  %7433 = vmatpush3.bf16.msra.mxu1 %v8468_v40 }
 0x900   : > { %7410 = vmatprep.subr.bf16.mxu0 %v9497_v5  ;;  %7434 = vmatprep.subr.bf16.mxu1 %v9497_v5 }
 0x903   : > { %7412 = vmatpush3.bf16.msra.mxu0 %v8474_v29  ;;  %7436 = vmatpush3.bf16.msra.mxu1 %v8479_v23 }
 0x904   : > { %7413 = vmatprep.subr.bf16.mxu0 %v9497_v5  ;;  %7437 = vmatprep.subr.bf16.mxu1 %v9497_v5 }
 0x907   : > { %7415 = vmatpush3.bf16.msra.mxu0 %v8489_v33  ;;  %7439 = vmatpush3.bf16.msra.mxu1 %v8492_v35  ;;  %v8813_v33 = vld [vmem:[%s9500_s11] ss:$0 sm:$0xff]  ;;  %s9527_s11 = scalar_lea.vmem %s7856_s30, %s7874_s12 }
 0x908   : > { %7416 = vmatprep.subr.bf16.mxu0 %v9497_v5  ;;  %7440 = vmatprep.subr.bf16.mxu1 %v9497_v5 }
 0x90b   : > { %7418 = vmatpush3.bf16.msra.mxu0 %v8501_v44  ;;  %7442 = vmatpush3.bf16.msra.mxu1 %v8504_v47  ;;  %v7692_v47 = vmov 1966171168  }
 0x90c   : > { %7419 = vmatprep.subr.bf16.mxu0 %v9497_v5  ;;  %7443 = vmatprep.subr.bf16.mxu1 %v9497_v5 }
 0x90f   : > { %7421 = vmatpush3.bf16.msra.mxu0 %v8513_v51  ;;  %7445 = vmatpush3.bf16.msra.mxu1 %v8518_v55  ;;  %v3473_v51 = vunpack.c.l.s4 %v7692_v47  ;;  %v8819_v55 = vld [vmem:[%s9501_s4] sm:$0xff]  ;;  %s5886_s4 = scalar_lea.vmem (!%p5876_p2), [#allocation5], %s7651_s20 }
 0x910   : > { %7422 = vmatprep.subr.bf16.mxu0 %v9497_v5  ;;  %7446 = vmatprep.subr.bf16.mxu1 %v9497_v5 }
 0x913   : > { %7424 = vmatpush3.bf16.msra.mxu0 %v8523_v58  ;;  %7448 = vmatpush3.bf16.msra.mxu1 %v8527_v59  ;;  %v3474_v58 = vunpack.c.0.s8 %v3473_v51 }
 0x914   : > { %7425 = vmatprep.subr.bf16.mxu0 %v9497_v5  ;;  %7449 = vmatprep.subr.bf16.mxu1 %v9497_v5 }
 0x917   : > { %7427 = vmatpush3.bf16.msra.mxu0 %v8535_v1  ;;  %7451 = vmatpush3.bf16.msra.mxu1 %v8539_v2  ;;  %v8823_v1 = vsub.s32 %v3474_v58, %v8294_v41 }
 0x919   : > { %9502 = vst [vmem:[#allocation28_spill] sm:$0xff] %v8823_v1 }
 0x91a   : > { %6836 = vmatmul.mubr.f32.vlgmr.msra.gmra.mrb[34].mxu0 %v8660_v50  ;;  %6871 = vmatmul.mubr.f32.vlgmr.msra.gmra.mrb[38].mxu1 %v8660_v50 }
 0x98d   : > { %v3465_v19 = vpop.f32.mrb[28].mxu0  ;;  %v3661_v24 = vpop.f32.mrb[32].mxu1 }
 0x98e   : > { %v3662_v40 = vadd.f32 %v8809_v16, %v3661_v24  ;;  %v6627_v29 = vpop.f32.mrb[29].mxu0  ;;  %v6662_v23 = vpop.f32.mrb[33].mxu1  ;;  %v3469_v59 = vmul.f32 %v3465_v19, %v8819_v55 }
 0x990   : > { %7540 = vtanh.f32 %v3662_v40  ;;  %v3471_v2 = vcombine.high %v3469_v59, %v3469_v59  ;;  %v3478_v11 = vrot.slane %v3469_v59, %v8823_v1 }
 0x992   : > { %v3485_v49 = vrot.slane %v3471_v2, %v8823_v1  ;;  %v3486_v8 = vcombine.high %v3478_v11, %v3478_v11  ;;  %v3494_v9 = vrot.slane %v3478_v11, %v8823_v1 }
 0x994   : > { %v3487_v63 = vcombine.high %v3485_v49, %v3485_v49  ;;  %v3501_v54 = vrot.slane %v3485_v49, %v8823_v1  ;;  %v3508_v31 = vrot.slane %v3486_v8, %v8823_v1  ;;  %v3516_v27 = vcombine.high %v3494_v9, %v3494_v9  ;;  %v5870_v49 = vld [vmem:[%s9503_s15] ss:$0 sm:$0xff]  ;;  %s5887_s15 = scalar_lea.vmem (!%p5876_p2), %s5886_s4, 4294967295 [#allocation5] }
 0x996   : > { %v3515_v30 = vrot.slane %v3487_v63, %v8823_v1  ;;  %v3517_v53 = vcombine.high %v3501_v54, %v3501_v54  ;;  %v3518_v4 = vcombine.high %v3508_v31, %v3508_v31 }
 0x998   : > { %v3519_v40 = vcombine.high %v3515_v30, %v3515_v30 }
 0x99a   : > { %v7541_v35 = vpop.eup %7540 }
 0x99b   : > { %v3673_v44 = vmul.f32 %v7541_v35, %v8813_v33 }
 0x99d   : > { %3674 = vadd.xlane.f32.xlu1 %v3673_v44 }
 0x9ad   : > { %v3813_v20 = vpop.f32.mrb[30].mxu0  ;;  %v4024_v17 = vpop.f32.mrb[34].mxu1 }
 0x9ae   : > { %v3817_v21 = vmul.f32 %v3813_v20, %v8819_v55  ;;  %v4025_v38 = vadd.f32 %v8809_v16, %v4024_v17  ;;  %v6697_v52 = vpop.f32.mrb[31].mxu0  ;;  %v6732_v26 = vpop.f32.mrb[35].mxu1 }
 0x9b0   : > { %v3819_v50 = vcombine.high %v3817_v21, %v3817_v21  ;;  %v3826_v25 = vrot.slane %v3817_v21, %v8823_v1  ;;  %7542 = vtanh.f32 %v4025_v38  ;;  %v3369_v21 = vadd.f32 %v5870_v49, %v8756_v28 }
 0x9b2   : > { %v3833_v15 = vrot.slane %v3819_v50, %v8823_v1  ;;  %v3834_v32 = vcombine.high %v3826_v25, %v3826_v25  ;;  %v3842_v46 = vrot.slane %v3826_v25, %v8823_v1 }
 0x9b4   : > { %v3835_v60 = vcombine.high %v3833_v15, %v3833_v15  ;;  %v3849_v34 = vrot.slane %v3833_v15, %v8823_v1  ;;  %v3856_v12 = vrot.slane %v3834_v32, %v8823_v1  ;;  %v3864_v56 = vcombine.high %v3842_v46, %v3842_v46 }
 0x9b5   : > { %v4740_v10 = vrot.slane %v3842_v46, %v8297_v42 }
 0x9b6   : > { %v3863_v0 = vrot.slane %v3835_v60, %v8823_v1  ;;  %v3865_v43 = vcombine.high %v3849_v34, %v3849_v34  ;;  %v3866_v6 = vcombine.high %v3856_v12, %v3856_v12  ;;  %v4744_v22 = vrot.slane %v3856_v12, %v8297_v42 }
 0x9b7   : > { %v4748_v14 = vrot.slane %v3864_v56, %v8297_v42  ;;  %v4756_v61 = vrot.slane %v3849_v34, %v8297_v42  ;;  %v4857_v5 = vsel %vm4244_vm10, %v3494_v9, %v4740_v10 }
 0x9b8   : > { %v3867_v37 = vcombine.high %v3863_v0, %v3863_v0  ;;  %v4752_v57 = vrot.slane %v3866_v6, %v8297_v42  ;;  %v4760_v19 = vrot.slane %v3863_v0, %v8297_v42  ;;  %v4764_v24 = vrot.slane %v3865_v43, %v8297_v42 }
 0x9b9   : > { %v4858_v29 = vsel %vm4244_vm10, %v3508_v31, %v4744_v22  ;;  %v4859_v23 = vsel %vm4244_vm10, %v3516_v27, %v4748_v14  ;;  %v4861_v35 = vsel %vm4244_vm10, %v3501_v54, %v4756_v61 }
 0x9ba   : > { %v7543_v44 = vpop.eup %7542  ;;  %v4860_v47 = vsel %vm4244_vm10, %v3518_v4, %v4752_v57  ;;  %v4862_v51 = vsel %vm4244_vm10, %v3515_v30, %v4760_v19  ;;  %v4768_v58 = vrot.slane %v3867_v37, %v8297_v42  ;;  %v4863_v59 = vsel %vm4244_vm10, %v3517_v53, %v4764_v24 }
 0x9bb   : > { %v4029_v2 = vmul.f32 %v7543_v44, %v8813_v33 }
 0x9bc   : > { %v4864_v11 = vsel %vm4244_vm10, %v3519_v40, %v4768_v58 }
 0x9bd   : > { %4030 = vadd.xlane.f32.xlu0 %v4029_v2 }
 0x9cd   : > { %v4154_v20 = vpop.f32.mrb[32].mxu0  ;;  %v4356_v17 = vpop.f32.mrb[36].mxu1 }
 0x9ce   : > { %v4158_v38 = vmul.f32 %v4154_v20, %v8819_v55  ;;  %v4357_v52 = vadd.f32 %v8809_v16, %v4356_v17  ;;  %v6767_v26 = vpop.f32.mrb[33].mxu0  ;;  %v6802_v8 = vpop.f32.mrb[37].mxu1 }
 0x9d0   : > { %v4160_v50 = vcombine.high %v4158_v38, %v4158_v38  ;;  %v4167_v25 = vrot.slane %v4158_v38, %v8823_v1  ;;  %7544 = vtanh.f32 %v4357_v52 }
 0x9d1   : > { %7546 = vtanh.f32 %v3369_v21 }
 0x9d2   : > { %v4174_v63 = vrot.slane %v4160_v50, %v8823_v1  ;;  %v4175_v9 = vcombine.high %v4167_v25, %v4167_v25  ;;  %v4183_v54 = vrot.slane %v4167_v25, %v8823_v1 }
 0x9d4   : > { %v4176_v15 = vcombine.high %v4174_v63, %v4174_v63  ;;  %v4190_v32 = vrot.slane %v4174_v63, %v8823_v1  ;;  %v4197_v28 = vrot.slane %v4175_v9, %v8823_v1  ;;  %v4205_v46 = vcombine.high %v4183_v54, %v4183_v54 }
 0x9d5   : > { %v4780_v31 = vrot.slane %v4183_v54, %v8297_v42 }
 0x9d6   : > { %v4204_v60 = vrot.slane %v4176_v15, %v8823_v1  ;;  %v4206_v34 = vcombine.high %v4190_v32, %v4190_v32  ;;  %v4207_v12 = vcombine.high %v4197_v28, %v4197_v28  ;;  %v4784_v56 = vrot.slane %v4197_v28, %v8297_v42 }
 0x9d7   : > { %v4788_v30 = vrot.slane %v4205_v46, %v8297_v42  ;;  %v4796_v27 = vrot.slane %v4190_v32, %v8297_v42  ;;  %v4865_v53 = vsel %vm4576_vm11, %v4857_v5, %v4780_v31 }
 0x9d8   : > { %v4208_v10 = vcombine.high %v4204_v60, %v4204_v60  ;;  %v4866_v0 = vsel %vm4576_vm11, %v4858_v29, %v4784_v56  ;;  %v4792_v43 = vrot.slane %v4207_v12, %v8297_v42  ;;  %v4800_v6 = vrot.slane %v4204_v60, %v8297_v42  ;;  %v5871_v29 = vld [vmem:[%s9504_s26] ss:$0 sm:$0xff] }
 0x9d9   : > { %v4867_v22 = vsel %vm4576_vm11, %v4859_v23, %v4788_v30  ;;  %v4869_v4 = vsel %vm4576_vm11, %v4861_v35, %v4796_v27  ;;  %v4804_v14 = vrot.slane %v4206_v34, %v8297_v42 }
 0x9da   : > { %v7545_v61 = vpop.eup %7544  ;;  %v4868_v37 = vsel %vm4576_vm11, %v4860_v47, %v4792_v43  ;;  %v4870_v57 = vsel %vm4576_vm11, %v4862_v51, %v4800_v6  ;;  %v4808_v5 = vrot.slane %v4208_v10, %v8297_v42 }
 0x9db   : > { %v4361_v19 = vmul.f32 %v7545_v61, %v8813_v33  ;;  %v4871_v24 = vsel %vm4576_vm11, %v4863_v59, %v4804_v14  ;;  %v7547_v40 = vpop.eup %7546  ;;  %v8934_v14 = vsub.s32 4, %v8294_v41 }
 0x9dc   : > { %v4872_v44 = vsel %vm4576_vm11, %v4864_v11, %v4808_v5  ;;  %v3380_v23 = vmul.f32 %v7547_v40, %v5871_v29  ;;  %v4935_v5 = vstv %s4932_s7  ;;  %v8952_v40 = vsub.s32 7, %v8294_v41 }
 0x9dd   : > { %4362 = vadd.xlane.f32.xlu0 %v4361_v19  ;;  %vm9004_vm13 = vcmp.lt.s32.totalorder %v8294_v41, %v4935_v5 }
 0x9e1   : > { %3381 = vadd.xlane.f32.xlu0 %v3380_v23 }
 0x9ed   : > { %v4486_v35 = vpop.f32.mrb[34].mxu0  ;;  %v4688_v58 = vpop.f32.mrb[38].mxu1 }
 0x9ee   : > { %v4490_v2 = vmul.f32 %v4486_v35, %v8819_v55  ;;  %v4689_v47 = vadd.f32 %v8809_v16, %v4688_v58  ;;  %v6837_v51 = vpop.f32.mrb[35].mxu0  ;;  %v6872_v49 = vpop.f32.mrb[39].mxu1 }
 0x9f0   : > { %v4492_v20 = vcombine.high %v4490_v2, %v4490_v2  ;;  %v4499_v17 = vrot.slane %v4490_v2, %v8823_v1  ;;  %7548 = vtanh.f32 %v4689_v47 }
 0x9f2   : > { %v4506_v59 = vrot.slane %v4492_v20, %v8823_v1  ;;  %v4507_v21 = vcombine.high %v4499_v17, %v4499_v17  ;;  %v4515_v11 = vrot.slane %v4499_v17, %v8823_v1 }
 0x9f4   : > { %v4508_v38 = vcombine.high %v4506_v59, %v4506_v59  ;;  %v4522_v52 = vrot.slane %v4506_v59, %v8823_v1  ;;  %v4529_v26 = vrot.slane %v4507_v21, %v8823_v1  ;;  %v4537_v55 = vcombine.high %v4515_v11, %v4515_v11 }
 0x9f5   : > { %v4820_v16 = vrot.slane %v4515_v11, %v8297_v42 }
 0x9f6   : > { %v4536_v8 = vrot.slane %v4508_v38, %v8823_v1  ;;  %v4538_v50 = vcombine.high %v4522_v52, %v4522_v52  ;;  %v4539_v25 = vcombine.high %v4529_v26, %v4529_v26  ;;  %v4824_v63 = vrot.slane %v4529_v26, %v8297_v42 }
 0x9f7   : > { %v8895_v9 = vsel %vm4873_vm12, %v4865_v53, %v4820_v16  ;;  %v4828_v54 = vrot.slane %v4537_v55, %v8297_v42  ;;  %v4836_v15 = vrot.slane %v4522_v52, %v8297_v42 }
 0x9f8   : > { %9505 = vst [vmem:[#allocation29_spill] sm:$0xff] %v8895_v9  ;;  %v8900_v32 = vsel %vm4873_vm12, %v4866_v0, %v4824_v63  ;;  %v4832_v28 = vrot.slane %v4539_v25, %v8297_v42  ;;  %v4840_v46 = vrot.slane %v4536_v8, %v8297_v42  ;;  %v4540_v31 = vcombine.high %v4536_v8, %v4536_v8 }
 0x9f9   : > { %v8905_v60 = vsel %vm4873_vm12, %v4867_v22, %v4828_v54  ;;  %v8908_v34 = vsel %vm4873_vm12, %v4869_v4, %v4836_v15  ;;  %v4844_v12 = vrot.slane %v4538_v50, %v8297_v42 }
 0x9fa   : > { %9506 = vst [vmem:[#allocation30_spill] sm:$0xff] %v8905_v60  ;;  %9507 = vst [vmem:[#allocation31_spill] sm:$0xff] %v8908_v34  ;;  %v7549_v56 = vpop.eup %7548  ;;  %v8912_v30 = vsel %vm4873_vm12, %v4868_v37, %v4832_v28  ;;  %v8915_v27 = vsel %vm4873_vm12, %v4870_v57, %v4840_v46  ;;  %v4848_v53 = vrot.slane %v4540_v31, %v8297_v42  ;;  %v8944_v57 = vsub.s32 3, %v8294_v41 }
 0x9fb   : > { %v4693_v10 = vmul.f32 %v7549_v56, %v8813_v33  ;;  %v8920_v0 = vsel %vm4873_vm12, %v4871_v24, %v4844_v12  ;;  %v8937_v33 = vsub.s32 6, %v8294_v41  ;;  %v8949_v24 = vsub.s32 5, %v8294_v41 }
 0x9fc   : > { %9508 = vst [vmem:[#allocation32_spill] sm:$0xff] %v8920_v0  ;;  %v8923_v43 = vsel %vm4873_vm12, %v4872_v44, %v4848_v53 }
 0x9fd   : > { %9509 = vst [vmem:[#allocation33_spill] sm:$0xff] %v8923_v43  ;;  %4694 = vadd.xlane.f32.xlu1 %v4693_v10 }
 0xa2a   : > { %v8929_v22 = vpop.xlane.xlu1 %3674 }
 0xa2b   : > { %v3684_v29 = vrot.slane %v8929_v22, %v8302_v45  ;;  %v3680_v23 = vrot.slane %v8929_v22, %v8297_v42  ;;  %v3696_v58 = vrot.slane %v8929_v22, %v8934_v14  ;;  %v3688_v47 = vrot.slane %v8929_v22, %v8309_v62 }
 0xa2c   : > { %v3704_v51 = vrot.slane %v8929_v22, %v8937_v33 }
 0xa4a   : > { %v8927_v6 = vpop.xlane.xlu0 %4030 }
 0xa4b   : > { %v4040_v61 = vrot.slane %v8927_v6, %v8302_v45  ;;  %v4036_v37 = vrot.slane %v8927_v6, %v8297_v42  ;;  %v4060_v19 = vrot.slane %v8927_v6, %v8937_v33  ;;  %v4052_v2 = vrot.slane %v8927_v6, %v8934_v14 }
 0xa4c   : > { %v4044_v59 = vrot.slane %v8927_v6, %v8309_v62 }
 0xa4d   : > { %v4907_v20 = vsel %vm4244_vm10, %v3684_v29, %v4040_v61  ;;  %v4906_v17 = vsel %vm4244_vm10, %v3680_v23, %v4036_v37  ;;  %v4912_v55 = vsel %vm4244_vm10, %v3704_v51, %v4060_v19  ;;  %v4910_v56 = vsel %vm4244_vm10, %v3696_v58, %v4052_v2 }
 0xa4e   : > { %v4908_v53 = vsel %vm4244_vm10, %v3688_v47, %v4044_v59  ;;  %v4048_v61 = vrot.slane %v8927_v6, %v8944_v57  ;;  %v3700_v2 = vrot.slane %v8929_v22, %v8949_v24  ;;  %v3708_v47 = vrot.slane %v8929_v22, %v8952_v40 }
 0xa4f   : > { %v4064_v59 = vrot.slane %v8927_v6, %v8952_v40 }
 0xa6a   : > { %v8931_v4 = vpop.xlane.xlu0 %4362 }
 0xa6b   : > { %v4372_v44 = vrot.slane %v8931_v4, %v8302_v45  ;;  %v4368_v35 = vrot.slane %v8931_v4, %v8297_v42  ;;  %v4392_v21 = vrot.slane %v8931_v4, %v8937_v33  ;;  %v4384_v26 = vrot.slane %v8931_v4, %v8934_v14 }
 0xa6c   : > { %v4376_v50 = vrot.slane %v8931_v4, %v8309_v62  ;;  %v4380_v29 = vrot.slane %v8931_v4, %v8944_v57 }
 0xa6d   : > { %v4915_v16 = vsel %vm4576_vm11, %v4907_v20, %v4372_v44  ;;  %v4914_v8 = vsel %vm4576_vm11, %v4906_v17, %v4368_v35  ;;  %v4920_v31 = vsel %vm4576_vm11, %v4912_v55, %v4392_v21  ;;  %v4918_v37 = vsel %vm4576_vm11, %v4910_v56, %v4384_v26 }
 0xa6e   : > { %v8978_v11 = vpop.xlane.xlu0 %3381  ;;  %v4916_v5 = vsel %vm4576_vm11, %v4908_v53, %v4376_v50  ;;  %v3692_v35 = vrot.slane %v8929_v22, %v8944_v57  ;;  %v4056_v17 = vrot.slane %v8927_v6, %v8949_v24  ;;  %v4396_v22 = vrot.slane %v8931_v4, %v8952_v40 }
 0xa6f   : > { %v5030_v12 = vrot.slane %v8978_v11, %v8937_v33 }
 0xa70   : > { %v4909_v20 = vsel %vm4244_vm10, %v3692_v35, %v4048_v61  ;;  %v4911_v50 = vsel %vm4244_vm10, %v3700_v2, %v4056_v17 }
 0xa8a   : > { %v8970_v49 = vpop.xlane.xlu1 %4694 }
 0xa8b   : > { %v4704_v38 = vrot.slane %v8970_v49, %v8302_v45  ;;  %v4700_v52 = vrot.slane %v8970_v49, %v8297_v42  ;;  %v4724_v25 = vrot.slane %v8970_v49, %v8937_v33  ;;  %v4716_v15 = vrot.slane %v8970_v49, %v8934_v14 }
 0xa8c   : > { %v4708_v28 = vrot.slane %v8970_v49, %v8309_v62  ;;  %v4712_v58 = vrot.slane %v8970_v49, %v8944_v57  ;;  %v4728_v6 = vrot.slane %v8970_v49, %v8952_v40 }
 0xa8d   : > { %v8994_v63 = vsel %vm4873_vm12, %v4915_v16, %v4704_v38  ;;  %v8997_v54 = vsel %vm4873_vm12, %v4914_v8, %v4700_v52  ;;  %v4928_v10 = vsel %vm4873_vm12, %v4920_v31, %v4724_v25  ;;  %v9023_v44 = vsel %vm4873_vm12, %v4918_v37, %v4716_v15 }
 0xa8e   : > { %4951 = vperm.xlu0 %7512, %v8994_v63   ;;  %4946 = vperm.xlu1 %7513, %v8997_v54   ;;  %v5049_v19 = vadd.f32 %v5030_v12, %v4928_v10  ;;  %v9026_v23 = vsel %vm4873_vm12, %v4916_v5, %v4708_v28  ;;  %v4917_v38 = vsel %vm4576_vm11, %v4909_v20, %v4380_v29 }
 0xa8f   : > { %v4388_v52 = vrot.slane %v8931_v4, %v8949_v24  ;;  %v9052_v55 = vsel %vm4873_vm12, %v4917_v38, %v4712_v58  ;;  %v4720_v16 = vrot.slane %v8970_v49, %v8949_v24  ;;  %v4913_v25 = vsel %vm4244_vm10, %v3708_v47, %v4064_v59 }
 0xa90   : > { %v5057_v51 = vsel %vm9004_vm13, %v5049_v19, -1e+30  ;;  %v4921_v15 = vsel %vm4576_vm11, %v4913_v25, %v4396_v22  ;;  %v5034_v49 = vrot.slane %v8978_v11, %v8952_v40 }
 0xa91   : > { %v5255_v21 = vsel %vm5212_vm14, %v5057_v51, -inf  ;;  %v4919_v4 = vsel %vm4576_vm11, %v4911_v50, %v4388_v52  ;;  %v4929_v12 = vsel %vm4873_vm12, %v4921_v15, %v4728_v6 }
 0xa92   : > { %4966 = vperm.xlu0 %7512, %v9023_v44   ;;  %4956 = vperm.xlu1 %7513, %v9026_v23   ;;  %v5256_v26 = vrot.slane %v5255_v21, 4  ;;  %v9064_v31 = vsel %vm4873_vm12, %v4919_v4, %v4720_v16  ;;  %v5050_v53 = vadd.f32 %v5034_v49, %v4929_v12  ;;  %v4573_v4 = vsel %vm4572_vm0, %v8640_v48, 0.0 }
 0xa94   : > { %v5257_v8 = vmax.f32 %v5255_v21, %v5256_v26  ;;  %v5058_v61 = vsel %vm9004_vm13, %v5050_v53, -1e+30  ;;  %v7618_v26 = vld [vmem:[%s7887_s2] sm:$0xff]  ;;  %v4577_v53 = vsel %vm4576_vm11, %v8675_v3, 0.0  ;;  %v5010_v3 = vrot.slane %v8978_v11, %v8302_v45  ;;  %s9512_s2 = sld [smem:[#allocation24_spill]] }
 0xa95   : > { %v5262_v5 = vsel %vm5212_vm14, %v5058_v61, -inf  ;;  %v3528_v16 = vmul.f32 %v7618_v26, %v8690_v7 }
 0xa96   : > { %4976 = vperm.xlu0 %7512, %v4928_v10   ;;  %4961 = vperm.xlu1 %7513, %v9052_v55   ;;  %v5258_v28 = vrot.slane %v5257_v8, 2  ;;  %v5263_v29 = vrot.slane %v5262_v5, 4 }
 0xa98   : > { %v5259_v56 = vmax.f32 %v5257_v8, %v5258_v28  ;;  %v5264_v58 = vmax.f32 %v5262_v5, %v5263_v29  ;;  %v4241_v8 = vsel %vm4240_vm15, %v8665_v39, 0.0 }
 0xa9a   : > { %4971 = vperm.xlu1 %7513, %v9064_v31   ;;  %v5260_v10 = vrot.slane %v5259_v56, 1  ;;  %v5265_v2 = vrot.slane %v5264_v58, 2 }
 0xa9c   : > { %v5261_v37 = vmax.f32 %v5259_v56, %v5260_v10  ;;  %v5266_v47 = vmax.f32 %v5264_v58, %v5265_v2  ;;  %v5044_v58 = vadd.f32 %v5010_v3, %v8994_v63 }
 0xa9e   : > { %4981 = vperm.xlu1 %7513, %v4929_v12   ;;  %v5275_v19 = vsub.f32 %v5057_v51, %v5261_v37  ;;  %v5267_v20 = vrot.slane %v5266_v47, 1  ;;  %v4216_v12 = vmul.f32 %v8567_v36, %v8590_v13 }
 0xaa0   : > { %v5289_v35 = vmul.f32 1.442695, %v5275_v19  ;;  %v5268_v17 = vmax.f32 %v5266_v47, %v5267_v20  ;;  %v4237_v10 = vrot.slane %v4216_v12, 1  ;;  %v5052_v47 = vsel %vm9004_vm13, %v5044_v58, -1e+30 }
 0xaa1   : > { %v5022_v20 = vrot.slane %v8978_v11, %v8934_v14 }
 0xaa2   : > { %7550 = vpow2.f32 %v5289_v35  ;;  %v5276_v59 = vsub.f32 %v5058_v61, %v5268_v17  ;;  %v4245_v48 = vsel %vm4244_vm10, %v4237_v10, 0.0  ;;  %v5014_v17 = vrot.slane %v8978_v11, %v8309_v62 }
 0xaa4   : > { %v5291_v38 = vmul.f32 1.442695, %v5276_v59  ;;  %v5047_v59 = vadd.f32 %v5022_v20, %v9023_v44 }
 0xaa6   : > { %7552 = vpow2.f32 %v5291_v38  ;;  %v5045_v38 = vadd.f32 %v5014_v17, %v9026_v23 }
 0xaa8   : > { %v5053_v44 = vsel %vm9004_vm13, %v5045_v38, -1e+30 }
 0xaac   : > { %v7551_v21 = vpop.eup %7550 }
 0xaad   : > { %v5335_v52 = vsel %vm5212_vm14, %v7551_v21, 0.0 }
 0xaae   : > { %v5336_v22 = vrot.slane %v5335_v52, 4 }
 0xab0   : > { %v5337_v6 = vadd.f32 %v5336_v22, %v5335_v52  ;;  %v7553_v28 = vpop.eup %7552 }
 0xab1   : > { %v5342_v49 = vsel %vm5212_vm14, %v7553_v28, 0.0 }
 0xab2   : > { %v5338_v51 = vrot.slane %v5337_v6, 2  ;;  %v5343_v56 = vrot.slane %v5342_v49, 4 }
 0xab4   : > { %v5339_v50 = vadd.f32 %v5338_v51, %v5337_v6  ;;  %v5344_v39 = vadd.f32 %v5343_v56, %v5342_v49 }
 0xab5   : > { %3529 = vadd.xlane.f32.xlu0 %v3528_v16  ;;  %v5055_v16 = vsel %vm9004_vm13, %v5047_v59, -1e+30 }
 0xab6   : > { %v5340_v25 = vrot.slane %v5339_v50, 1  ;;  %v5345_v61 = vrot.slane %v5344_v39, 2  ;;  %v5241_v51 = vsel %vm5212_vm14, %v5055_v16, -inf }
 0xab8   : > { %v5341_v15 = vadd.f32 %v5340_v25, %v5339_v50  ;;  %v5346_v37 = vadd.f32 %v5345_v61, %v5344_v39  ;;  %v5227_v50 = vsel %vm5212_vm14, %v5053_v44, -inf  ;;  %v5242_v25 = vrot.slane %v5241_v51, 4 }
 0xab9   : > { %4242 = vadd.xlane.f32.xlu0 %v4241_v8 }
 0xaba   : > { %7554 = vrcp.f32 %v5341_v15  ;;  %v5347_v5 = vrot.slane %v5346_v37, 1 }
 0xabc   : > { %v5348_v13 = vadd.f32 %v5347_v5, %v5346_v37 }
 0xabd   : > { %4574 = vadd.xlane.f32.xlu0 %v4573_v4  ;;  %v5026_v4 = vrot.slane %v8978_v11, %v8949_v24 }
 0xabe   : > { %7556 = vrcp.f32 %v5348_v13 }
 0xabf   : > { %v5048_v49 = vadd.f32 %v5026_v4, %v9064_v31 }
 0xac1   : > { %4578 = vadd.xlane.f32.xlu0 %v4577_v53  ;;  %v5243_v53 = vmax.f32 %v5241_v51, %v5242_v25 }
 0xac2   : > { %3915 = vadd.xlane.f32.xlu1 %v8687_v18  ;;  %v5006_v18 = vrot.slane %v8978_v11, %v8297_v42 }
 0xac3   : > { %v5244_v5 = vrot.slane %v5243_v53, 2 }
 0xac4   : > { %v7555_v19 = vpop.eup %7554  ;;  %v5043_v2 = vadd.f32 %v5006_v18, %v8997_v54  ;;  %v5018_v54 = vrot.slane %v8978_v11, %v8944_v57 }
 0xac5   : > { %v9085_v36 = vmul.f32 %v7555_v19, %v7551_v21  ;;  %v5220_v21 = vsel %vm5212_vm14, %v5052_v47, -inf  ;;  %v5245_v58 = vmax.f32 %v5243_v53, %v5244_v5 }
 0xac6   : > { %4246 = vadd.xlane.f32.xlu1 %v4245_v48  ;;  %v5051_v63 = vsel %vm9004_vm13, %v5043_v2, -1e+30  ;;  %v5046_v52 = vadd.f32 %v5018_v54, %v9052_v55  ;;  %v5221_v22 = vrot.slane %v5220_v21, 4  ;;  %v9124_v48 = vsel %vm9004_vm13, %v5048_v49, -1e+30 }
 0xac7   : > { %v5213_v26 = vsel %vm5212_vm14, %v5051_v63, -inf  ;;  %v5248_v11 = vsel %vm5212_vm14, %v9124_v48, -inf  ;;  %v5246_v59 = vrot.slane %v5245_v58, 1  ;;  %v9129_v49 = vld [vmem:[%s9512_s2] ss:$0 sm:$0xff] }
 0xac8   : > { %v7557_v29 = vpop.eup %7556  ;;  %v5214_v6 = vrot.slane %v5213_v26, 4  ;;  %v5054_v23 = vsel %vm9004_vm13, %v5046_v52, -1e+30  ;;  %v5222_v8 = vmax.f32 %v5220_v21, %v5221_v22  ;;  %v5249_v31 = vrot.slane %v5248_v11, 4 }
 0xac9   : > { %v9087_v35 = vmul.f32 %v7557_v29, %v7553_v28  ;;  %v5234_v55 = vsel %vm5212_vm14, %v5054_v23, -inf  ;;  %v5228_v28 = vrot.slane %v5227_v50, 4 }
 0xaca   : > { %v5215_v15 = vmax.f32 %v5213_v26, %v5214_v6  ;;  %v5223_v12 = vrot.slane %v5222_v8, 2  ;;  %v5235_v56 = vrot.slane %v5234_v55, 4  ;;  %v5250_v21 = vmax.f32 %v5248_v11, %v5249_v31 }
 0xacb   : > { %v5229_v10 = vmax.f32 %v5227_v50, %v5228_v28  ;;  %v5247_v26 = vmax.f32 %v5245_v58, %v5246_v59 }
 0xacc   : > { %v5216_v39 = vrot.slane %v5215_v15, 2  ;;  %v5224_v61 = vmax.f32 %v5222_v8, %v5223_v12  ;;  %v5236_v37 = vmax.f32 %v5234_v55, %v5235_v56  ;;  %v5251_v6 = vrot.slane %v5250_v21, 2 }
 0xacd   : > { %v5230_v13 = vrot.slane %v5229_v10, 2  ;;  %v5273_v55 = vsub.f32 %v5055_v16, %v5247_v26 }
 0xace   : > { %v5217_v19 = vmax.f32 %v5215_v15, %v5216_v39  ;;  %v5225_v29 = vrot.slane %v5224_v61, 1  ;;  %v5237_v3 = vrot.slane %v5236_v37, 2  ;;  %v5252_v4 = vmax.f32 %v5250_v21, %v5251_v6 }
 0xacf   : > { %v5231_v2 = vmax.f32 %v5229_v10, %v5230_v13  ;;  %v5285_v56 = vmul.f32 1.442695, %v5273_v55 }
 0xad0   : > { %v5218_v18 = vrot.slane %v5217_v19, 1  ;;  %v5226_v20 = vmax.f32 %v5224_v61, %v5225_v29  ;;  %v5238_v17 = vmax.f32 %v5236_v37, %v5237_v3  ;;  %v5253_v53 = vrot.slane %v5252_v4, 1 }
 0xad1   : > { %v5232_v54 = vrot.slane %v5231_v2, 1 }
 0xad2   : > { %v5219_v38 = vmax.f32 %v5217_v19, %v5218_v18  ;;  %v5270_v52 = vsub.f32 %v5052_v47, %v5226_v20  ;;  %v5239_v22 = vrot.slane %v5238_v17, 1  ;;  %v5254_v37 = vmax.f32 %v5252_v4, %v5253_v53 }
 0xad3   : > { %v5233_v8 = vmax.f32 %v5231_v2, %v5232_v54 }
 0xad4   : > { %v5269_v51 = vsub.f32 %v5051_v63, %v5219_v38  ;;  %v5279_v50 = vmul.f32 1.442695, %v5270_v52  ;;  %v5240_v25 = vmax.f32 %v5238_v17, %v5239_v22  ;;  %v5274_v3 = vsub.f32 %v9124_v48, %v5254_v37 }
 0xad5   : > { %v5271_v28 = vsub.f32 %v5053_v44, %v5233_v8 }
 0xad6   : > { %v5277_v15 = vmul.f32 1.442695, %v5269_v51  ;;  %7558 = vpow2.f32 %v5279_v50  ;;  %v5272_v12 = vsub.f32 %v5054_v23, %v5240_v25  ;;  %v5287_v48 = vmul.f32 1.442695, %v5274_v3 }
 0xad7   : > { %v5281_v39 = vmul.f32 1.442695, %v5271_v28 }
 0xad8   : > { %7560 = vpow2.f32 %v5277_v15  ;;  %v5283_v61 = vmul.f32 1.442695, %v5272_v12 }
 0xad9   : > { %7562 = vpow2.f32 %v5285_v56 }
 0xada   : > { %7564 = vpow2.f32 %v5281_v39 }
 0xadb   : > { %7566 = vpow2.f32 %v5283_v61 }
 0xadc   : > { %7568 = vpow2.f32 %v5287_v48 }
 0xae0   : > { %v9140_v29 = vpop.eup %7558 }
 0xae1   : > { %v5300_v17 = vsel %vm5212_vm14, %v9140_v29, 0.0 }
 0xae2   : > { %v9148_v20 = vpop.eup %7560  ;;  %v5301_v51 = vrot.slane %v5300_v17, 4 }
 0xae3   : > { %v9167_v6 = vpop.eup %7562  ;;  %v5293_v8 = vsel %vm5212_vm14, %v9148_v20, 0.0 }
 0xae4   : > { %v9173_v25 = vpop.eup %7564  ;;  %v5321_v53 = vsel %vm5212_vm14, %v9167_v6, 0.0  ;;  %v5302_v37 = vadd.f32 %v5301_v51, %v5300_v17 }
 0xae5   : > { %v9180_v56 = vpop.eup %7566 }
 0xb0d   : > { %v4952_v47 = vpop.permute.xlu0 %4951  ;;  %v4947_v10 = vpop.permute.xlu1 %4946 }
 0xb0e   : > { %v4985_v63 = vadd.f32 %v9129_v49, %v4952_v47  ;;  %v4984_v23 = vadd.f32 %v9129_v49, %v4947_v10 }
 0xb10   : > { %v9134_v16 = vsel %vm9004_vm13, %v4985_v63, -1e+30  ;;  %v9146_v18 = vsel %vm9004_vm13, %v4984_v23, -1e+30  ;;  %v5307_v23 = vsel %vm5212_vm14, %v9173_v25, 0.0 }
 0xb11   : > { %v5067_v44 = vsel %vm5059_vm1, %v9134_v16, -inf  ;;  %v4967_v5 = vpop.permute.xlu0 %4966  ;;  %v4957_v19 = vpop.permute.xlu1 %4956  ;;  %v5060_v54 = vsel %vm5059_vm1, %v9146_v18, -inf  ;;  %v5308_v51 = vrot.slane %v5307_v23, 4 }
 0xb12   : > { %v5068_v13 = vrot.slane %v5067_v44, 4  ;;  %v4988_v11 = vadd.f32 %v9129_v49, %v4967_v5  ;;  %v4986_v31 = vadd.f32 %v9129_v49, %v4957_v19  ;;  %v5061_v55 = vrot.slane %v5060_v54, 4 }
 0xb14   : > { %v5069_v58 = vmax.f32 %v5067_v44, %v5068_v13  ;;  %v9154_v59 = vsel %vm9004_vm13, %v4988_v11, -1e+30  ;;  %v9161_v52 = vsel %vm9004_vm13, %v4986_v31, -1e+30  ;;  %v5294_v44 = vrot.slane %v5293_v8, 4 }
 0xb15   : > { %v4962_v2 = vpop.permute.xlu1 %4961  ;;  %v5088_v50 = vsel %vm5059_vm1, %v9154_v59, -inf  ;;  %v5074_v4 = vsel %vm5059_vm1, %v9161_v52, -inf  ;;  %v4977_v47 = vpop.permute.xlu0 %4976  ;;  %v5062_v19 = vmax.f32 %v5060_v54, %v5061_v55  ;;  %v5314_v31 = vsel %vm5212_vm14, %v9180_v56, 0.0 }
 0xb16   : > { %v4987_v21 = vadd.f32 %v9129_v49, %v4962_v2  ;;  %v5070_v38 = vrot.slane %v5069_v58, 2  ;;  %v5089_v39 = vrot.slane %v5088_v50, 4  ;;  %v5075_v5 = vrot.slane %v5074_v4, 4 }
 0xb17   : > { %v5295_v54 = vadd.f32 %v5294_v44, %v5293_v8  ;;  %v9206_v8 = vpop.eup %7568  ;;  %v5309_v44 = vadd.f32 %v5308_v51, %v5307_v23 }
 0xb18   : > { %v9165_v22 = vsel %vm9004_vm13, %v4987_v21, -1e+30  ;;  %v5071_v12 = vmax.f32 %v5069_v58, %v5070_v38  ;;  %v5322_v58 = vrot.slane %v5321_v53, 4  ;;  %v4990_v21 = vadd.f32 %v9129_v49, %v4977_v47 }
 0xb19   : > { %v4972_v26 = vpop.permute.xlu1 %4971  ;;  %v5081_v15 = vsel %vm5059_vm1, %v9165_v22, -inf  ;;  %v5090_v17 = vmax.f32 %v5088_v50, %v5089_v39  ;;  %v5076_v55 = vmax.f32 %v5074_v4, %v5075_v5  ;;  %v5303_v4 = vrot.slane %v5302_v37, 2 }
 0xb1a   : > { %v4989_v28 = vadd.f32 %v9129_v49, %v4972_v26  ;;  %v5082_v10 = vrot.slane %v5081_v15, 4  ;;  %v5072_v2 = vrot.slane %v5071_v12, 1  ;;  %v5323_v7 = vadd.f32 %v5322_v58, %v5321_v53 }
 0xb1b   : > { %v5091_v50 = vrot.slane %v5090_v17, 2  ;;  %v9204_v39 = vsel %vm9004_vm13, %v4990_v21, -1e+30  ;;  %v5077_v5 = vrot.slane %v5076_v55, 2  ;;  %v5296_v34 = vrot.slane %v5295_v54, 2 }
 0xb1c   : > { %v9186_v63 = vsel %vm9004_vm13, %v4989_v28, -1e+30  ;;  %v5083_v13 = vmax.f32 %v5081_v15, %v5082_v10  ;;  %v5315_v28 = vrot.slane %v5314_v31, 4  ;;  %v5063_v10 = vrot.slane %v5062_v19, 2 }
 0xb1d   : > { %v4982_v61 = vpop.permute.xlu1 %4981  ;;  %v5095_v11 = vsel %vm5059_vm1, %v9186_v63, -inf  ;;  %v5073_v41 = vmax.f32 %v5071_v12, %v5072_v2  ;;  %v5102_v53 = vsel %vm5059_vm1, %v9204_v39, -inf  ;;  %v5324_v2 = vrot.slane %v5323_v7, 2 }
 0xb1e   : > { %v4991_v3 = vadd.f32 %v9129_v49, %v4982_v61  ;;  %v5084_v48 = vrot.slane %v5083_v13, 2  ;;  %v5096_v38 = vrot.slane %v5095_v11, 4  ;;  %v5316_v60 = vadd.f32 %v5315_v28, %v5314_v31 }
 0xb1f   : > { %v5117_v12 = vsub.f32 %v9134_v16, %v5073_v41  ;;  %v5092_v21 = vmax.f32 %v5090_v17, %v5091_v50  ;;  %v5078_v9 = vmax.f32 %v5076_v55, %v5077_v5  ;;  %v5304_v43 = vadd.f32 %v5303_v4, %v5302_v37 }
 0xb20   : > { %v9198_v26 = vsel %vm9004_vm13, %v4991_v3, -1e+30  ;;  %v5085_v61 = vmax.f32 %v5083_v13, %v5084_v48  ;;  %v5097_v1 = vmax.f32 %v5095_v11, %v5096_v38  ;;  %v5064_v13 = vmax.f32 %v5062_v19, %v5063_v10 }
 0xb21   : > { %v5109_v15 = vsel %vm5059_vm1, %v9198_v26, -inf  ;;  %v5310_v38 = vrot.slane %v5309_v44, 2  ;;  %v5103_v51 = vrot.slane %v5102_v53, 4  ;;  %v5317_v31 = vrot.slane %v5316_v60, 2 }
 0xb22   : > { %v5110_v49 = vrot.slane %v5109_v15, 4  ;;  %v5086_v47 = vrot.slane %v5085_v61, 1  ;;  %v5098_v3 = vrot.slane %v5097_v1, 2  ;;  %v5065_v23 = vrot.slane %v5064_v13, 1 }
 0xb23   : > { %v5126_v19 = vmul.f32 1.442695, %v5117_v12  ;;  %v5093_v16 = vrot.slane %v5092_v21, 1  ;;  %v5325_v28 = vadd.f32 %v5324_v2, %v5323_v7  ;;  %v5328_v10 = vsel %vm5212_vm14, %v9206_v8, 0.0 }
 0xb24   : > { %v5111_v0 = vmax.f32 %v5109_v15, %v5110_v49  ;;  %v5099_v11 = vmax.f32 %v5097_v1, %v5098_v3  ;;  %v5087_v46 = vmax.f32 %v5085_v61, %v5086_v47  ;;  %v5297_v49 = vadd.f32 %v5296_v34, %v5295_v54 }
 0xb25   : > { %v5079_v61 = vrot.slane %v5078_v9, 1  ;;  %v5305_v17 = vrot.slane %v5304_v43, 1  ;;  %v5311_v50 = vadd.f32 %v5310_v38, %v5309_v44  ;;  %v5066_v47 = vmax.f32 %v5064_v13, %v5065_v23 }
 0xb26   : > { %v5112_v58 = vrot.slane %v5111_v0, 2  ;;  %v5100_v48 = vrot.slane %v5099_v11, 1  ;;  %v5119_v1 = vsub.f32 %v9165_v22, %v5087_v46  ;;  %v5104_v55 = vmax.f32 %v5102_v53, %v5103_v51 }
 0xb27   : > { %v5298_v3 = vrot.slane %v5297_v49, 1  ;;  %7570 = vpow2.f32 %v5126_v19  ;;  %v5318_v54 = vadd.f32 %v5317_v31, %v5316_v60  ;;  %v5329_v4 = vrot.slane %v5328_v10, 4 }
 0xb28   : > { %v5113_v15 = vmax.f32 %v5111_v0, %v5112_v58  ;;  %v5101_v41 = vmax.f32 %v5099_v11, %v5100_v48  ;;  %v5130_v0 = vmul.f32 1.442695, %v5119_v1  ;;  %v5094_v22 = vmax.f32 %v5092_v21, %v5093_v16 }
 0xb29   : > { %v5326_v5 = vrot.slane %v5325_v28, 1  ;;  %v5080_v11 = vmax.f32 %v5078_v9, %v5079_v61  ;;  %v5306_v7 = vadd.f32 %v5305_v17, %v5304_v43  ;;  %v5312_v12 = vrot.slane %v5311_v50, 1 }
 0xb2a   : > { %v5114_v37 = vrot.slane %v5113_v15, 1  ;;  %v5121_v34 = vsub.f32 %v9186_v63, %v5101_v41  ;;  %v5116_v46 = vsub.f32 %v9146_v18, %v5066_v47  ;;  %v5105_v58 = vrot.slane %v5104_v55, 2 }
 0xb2b   : > { %v5299_v44 = vadd.f32 %v5298_v3, %v5297_v49  ;;  %7572 = vpow2.f32 %v5130_v0  ;;  %v5319_v53 = vrot.slane %v5318_v54, 1  ;;  %v5330_v48 = vadd.f32 %v5329_v4, %v5328_v10 }
 0xb2c   : > { %v5115_v2 = vmax.f32 %v5113_v15, %v5114_v37  ;;  %v5134_v13 = vmul.f32 1.442695, %v5121_v34  ;;  %v5120_v38 = vsub.f32 %v9154_v59, %v5094_v22  ;;  %v5327_v23 = vadd.f32 %v5326_v5, %v5325_v28 }
 0xb2d   : > { %v5118_v60 = vsub.f32 %v9161_v52, %v5080_v11  ;;  %7574 = vrcp.f32 %v5306_v7  ;;  %v5313_v63 = vadd.f32 %v5312_v12, %v5311_v50  ;;  %v5124_v21 = vmul.f32 1.442695, %v5116_v46 }
 0xb2e   : > { %v5106_v9 = vmax.f32 %v5104_v55, %v5105_v58  ;;  %v5123_v43 = vsub.f32 %v9198_v26, %v5115_v2  ;;  %7576 = vrcp.f32 %v5299_v44  ;;  %v5320_v18 = vadd.f32 %v5319_v53, %v5318_v54 }
 0xb2f   : > { %7578 = vpow2.f32 %v5134_v13  ;;  %v5331_v51 = vrot.slane %v5330_v48, 2  ;;  %v5132_v15 = vmul.f32 1.442695, %v5120_v38  ;;  %v5128_v31 = vmul.f32 1.442695, %v5118_v60 }
 0xb30   : > { %7580 = vrcp.f32 %v5327_v23  ;;  %v5107_v59 = vrot.slane %v5106_v9, 1  ;;  %v5138_v19 = vmul.f32 1.442695, %v5123_v43 }
 0xb31   : > { %v9219_v49 = vpop.eup %7570  ;;  %7582 = vrcp.f32 %v5313_v63  ;;  %v5332_v1 = vadd.f32 %v5331_v51, %v5330_v48 }
 0xb32   : > { %7584 = vpow2.f32 %v5124_v21  ;;  %v5147_v52 = vsel %vm5059_vm1, %v9219_v49, 0.0  ;;  %v5108_v41 = vmax.f32 %v5106_v9, %v5107_v59 }
 0xb33   : > { %7586 = vrcp.f32 %v5320_v18  ;;  %v5148_v28 = vrot.slane %v5147_v52, 4  ;;  %v5333_v17 = vrot.slane %v5332_v1, 1 }
 0xb34   : > { %7588 = vpow2.f32 %v5132_v15  ;;  %v5122_v37 = vsub.f32 %v9204_v39, %v5108_v41 }
 0xb35   : > { %v9223_v26 = vpop.eup %7572  ;;  %7590 = vpow2.f32 %v5128_v31  ;;  %v5149_v0 = vadd.f32 %v5148_v28, %v5147_v52  ;;  %v5334_v22 = vadd.f32 %v5333_v17, %v5332_v1 }
 0xb36   : > { %7592 = vpow2.f32 %v5138_v19  ;;  %v5161_v61 = vsel %vm5059_vm1, %v9223_v26, 0.0  ;;  %v5136_v12 = vmul.f32 1.442695, %v5122_v37 }
 0xb37   : > { %v7575_v16 = vpop.eup %7574  ;;  %v5162_v34 = vrot.slane %v5161_v61, 4  ;;  %v5150_v58 = vrot.slane %v5149_v0, 2  ;;  %7594 = vrcp.f32 %v5334_v22 }
 0xb38   : > { %v7577_v10 = vpop.eup %7576  ;;  %v5352_v53 = vmul.f32 %v7575_v16, %v9140_v29  ;;  %7596 = vpow2.f32 %v5136_v12 }
 0xb39   : > { %v9227_v50 = vpop.eup %7578  ;;  %v9246_v2 = vadd.f32 %v5162_v34, %v5161_v61  ;;  %v5350_v48 = vmul.f32 %v7577_v10, %v9148_v20  ;;  %v9279_v9 = vadd.f32 %v5150_v58, %v5149_v0 }
 0xb3a   : > { %v7581_v55 = vpop.eup %7580  ;;  %v5175_v4 = vsel %vm5059_vm1, %v9227_v50, 0.0 }
 0xb3b   : > { %v7583_v3 = vpop.eup %7582  ;;  %v5176_v44 = vrot.slane %v5175_v4, 4  ;;  %v9253_v38 = vmul.f32 %v7581_v55, %v9167_v6  ;;  %v5164_v20 = vrot.slane %v9246_v2, 2 }
 0xb3c   : > { %v9232_v54 = vpop.eup %7584  ;;  %v9256_v23 = vmul.f32 %v7583_v3, %v9173_v25 }
 0xb3d   : > { %9513 = vst [vmem:[#allocation34_spill] sm:$0xff] %v9232_v54  ;;  %v7587_v5 = vpop.eup %7586  ;;  %v9244_v39 = vsel %vm5059_vm1, %v9232_v54, 0.0  ;;  %v9271_v6 = vadd.f32 %v5176_v44, %v5175_v4 }
 0xb3e   : > { %v9238_v7 = vpop.eup %7588  ;;  %v9259_v60 = vmul.f32 %v7587_v5, %v9180_v56 }
 0xb3f   : > { %9514 = vst [vmem:[#allocation35_spill] sm:$0xff] %v9238_v7  ;;  %v9240_v46 = vpop.eup %7590  ;;  %v9264_v21 = vsel %vm5059_vm1, %v9238_v7, 0.0 }
 0xb40   : > { %9515 = vst [vmem:[#allocation36_spill] sm:$0xff] %v9240_v46  ;;  %v9248_v13 = vpop.eup %7592  ;;  %v9268_v29 = vsel %vm5059_vm1, %v9240_v46, 0.0 }
 0xb41   : > { %v9275_v25 = vsel %vm5059_vm1, %v9248_v13, 0.0  ;;  %v7595_v44 = vpop.eup %7594 }
 0xb42   : > { %v9229_v47 = vpop.xlane.xlu0 %3529 }
 0xb43   : > { %v3563_v43 = vrot.slane %v9229_v47, %v8952_v40  ;;  %v3539_v18 = vrot.slane %v9229_v47, %v8302_v45  ;;  %v3535_v51 = vrot.slane %v9229_v47, %v8297_v42  ;;  %v3551_v15 = vrot.slane %v9229_v47, %v8934_v14 }
 0xb44   : > { %v3543_v19 = vrot.slane %v9229_v47, %v8309_v62  ;;  %v3547_v52 = vrot.slane %v9229_v47, %v8944_v57 }
 0xb46   : > { %v9236_v11 = vpop.xlane.xlu0 %4242 }
 0xb47   : > { %v4257_v31 = vrot.slane %v9236_v11, %v8309_v62  ;;  %v4253_v59 = vrot.slane %v9236_v11, %v8302_v45  ;;  %v4269_v28 = vrot.slane %v9236_v11, %v8949_v24  ;;  %v4261_v10 = vrot.slane %v9236_v11, %v8944_v57 }
 0xb4a   : > { %v9277_v56 = vpop.xlane.xlu0 %4574 }
 0xb4b   : > { %v4589_v41 = vrot.slane %v9277_v56, %v8944_v57  ;;  %v4585_v16 = vrot.slane %v9277_v56, %v8309_v62  ;;  %v4601_v3 = vrot.slane %v9277_v56, %v8937_v33  ;;  %v4593_v34 = vrot.slane %v9277_v56, %v8934_v14 }
 0xb4f   : > { %v3916_v1 = vpop.xlane.xlu1 %3915 }
 0xb50   : > { %v3949_v61 = vrot.slane %v3916_v1, %v8952_v40  ;;  %v3925_v17 = vrot.slane %v3916_v1, %v8302_v45  ;;  %v3921_v55 = vrot.slane %v3916_v1, %v8297_v42  ;;  %v3937_v37 = vrot.slane %v3916_v1, %v8934_v14 }
 0xb51   : > { %v3929_v0 = vrot.slane %v3916_v1, %v8309_v62  ;;  %v3933_v4 = vrot.slane %v3916_v1, %v8944_v57 }
 0xb52   : > { %v4889_v22 = vsel %vm4244_vm10, %v3563_v43, %v3949_v61  ;;  %v4883_v5 = vsel %vm4244_vm10, %v3539_v18, %v3925_v17  ;;  %v4882_v12 = vsel %vm4244_vm10, %v3535_v51, %v3921_v55  ;;  %v4886_v58 = vsel %vm4244_vm10, %v3551_v15, %v3937_v37  ;;  %v9327_v61 = vpop.eup %7596  ;;  %v4579_v15 = vpop.xlane.xlu0 %4578 }
 0xb53   : > { %v4247_v63 = vpop.xlane.xlu1 %4246  ;;  %v4891_v7 = vsel %vm4576_vm11, %v4883_v5, %v4257_v31  ;;  %v4890_v46 = vsel %vm4576_vm11, %v4882_v12, %v4253_v59  ;;  %v4894_v62 = vsel %vm4576_vm11, %v4886_v58, %v4269_v28  ;;  %v4884_v54 = vsel %vm4244_vm10, %v3543_v19, %v3929_v0 }
 0xb54   : > { %v4281_v57 = vrot.slane %v4247_v63, %v8297_v42  ;;  %v4899_v43 = vsel %vm4873_vm12, %v4891_v7, %v4589_v41  ;;  %v4898_v18 = vsel %vm4873_vm12, %v4890_v46, %v4585_v16  ;;  %v3941_v51 = vrot.slane %v3916_v1, %v8949_v24 }
 0xb55   : > { %v5452_v17 = vmul.f32 %v5352_v53, %v4899_v43  ;;  %v5451_v55 = vmul.f32 %v5350_v48, %v4898_v18  ;;  %v4892_v31 = vsel %vm4576_vm11, %v4884_v54, %v4261_v10  ;;  %v4265_v59 = vrot.slane %v9236_v11, %v8934_v14 }
 0xb56   : > { %v4902_v19 = vsel %vm4873_vm12, %v4894_v62, %v4601_v3  ;;  %v4900_v63 = vsel %vm4873_vm12, %v4892_v31, %v4593_v34  ;;  %v4885_v7 = vsel %vm4244_vm10, %v3547_v52, %v3933_v4  ;;  %v3555_v46 = vrot.slane %v9229_v47, %v8949_v24 }
 0xb57   : > { %v5190_v41 = vrot.slane %v9275_v25, 4  ;;  %v4897_v16 = vsel %vm4576_vm11, %v4889_v22, %v4281_v57  ;;  %5479 = vperm.xlu0 %7512, %v5452_v17   ;;  %5476 = vperm.xlu1 %7513, %v5451_v55   ;;  %v4893_v54 = vsel %vm4576_vm11, %v4885_v7, %v4265_v59  ;;  %v5165_v53 = vadd.f32 %v5164_v20, %v9246_v2 }
 0xb58   : > { %v4613_v14 = vrot.slane %v4579_v15, %v8302_v45  ;;  %v4597_v48 = vrot.slane %v9277_v56, %v8949_v24  ;;  %v4887_v52 = vsel %vm4244_vm10, %v3555_v46, %v3941_v51  ;;  %v3559_v28 = vrot.slane %v9229_v47, %v8937_v33 }
 0xb59   : > { %v5455_v10 = vmul.f32 %v9253_v38, %v4902_v19  ;;  %v5453_v37 = vmul.f32 %v9256_v23, %v4900_v63  ;;  %v4273_v3 = vrot.slane %v9236_v11, %v8937_v33  ;;  %v3945_v0 = vrot.slane %v3916_v1, %v8937_v33 }
 0xb5a   : > { %v4609_v2 = vrot.slane %v4579_v15, %v8297_v42  ;;  %v4901_v45 = vsel %vm4873_vm12, %v4893_v54, %v4597_v48  ;;  %v4277_v24 = vrot.slane %v9236_v11, %v8952_v40  ;;  %v4905_v20 = vsel %vm4873_vm12, %v4897_v16, %v4613_v14 }
 0xb5b   : > { %5488 = vperm.xlu0 %7512, %v5455_v10   ;;  %5482 = vperm.xlu1 %7513, %v5453_v37   ;;  %v4895_v47 = vsel %vm4576_vm11, %v4887_v52, %v4273_v3  ;;  %v5152_v38 = vrot.slane %v9279_v9, 1  ;;  %v4888_v23 = vsel %vm4244_vm10, %v3559_v28, %v3945_v0  ;;  %v9361_v34 = vmul.f32 %v9087_v35, %v4905_v20 }
 0xb5c   : > { %v5178_v42 = vrot.slane %v9271_v6, 2  ;;  %v5191_v33 = vadd.f32 %v5190_v41, %v9275_v25  ;;  %v4605_v11 = vrot.slane %v9277_v56, %v8952_v40  ;;  %v4896_v1 = vsel %vm4576_vm11, %v4888_v23, %v4277_v24 }
 0xb5d   : > { %v9516_v4 = vrot.slane %v9244_v39, 4  ;;  %v5155_v5 = vrot.slane %v9268_v29, 4  ;;  %v5454_v12 = vmul.f32 %v9259_v60, %v4901_v45  ;;  %v4904_v35 = vsel %vm4873_vm12, %v4896_v1, %v4609_v2 }
 0xb5e   : > { %v4903_v58 = vsel %vm4873_vm12, %v4895_v47, %v4605_v11  ;;  %v9376_v62 = vmul.f32 %v9085_v36, %v4904_v35  ;;  %v5169_v25 = vrot.slane %v9264_v21, 4  ;;  %v5360_v40 = vmul.f32 %v7595_v44, %v9206_v8  ;;  %v9520_v35 = vld [vmem:[#allocation36_spill] sm:$0xff] }
 0xb5f   : > { %v5142_v22 = vadd.f32 %v9516_v4, %v9244_v39  ;;  %5485 = vperm.xlu1 %7513, %v5454_v12   ;;  %v5192_v56 = vrot.slane %v5191_v33, 2  ;;  %v5153_v57 = vadd.f32 %v5152_v38, %v9279_v9  ;;  %v5166_v39 = vrot.slane %v5165_v53, 1 }
 0xb60   : > { %v5179_v43 = vadd.f32 %v5178_v42, %v9271_v6  ;;  %v5156_v60 = vadd.f32 %v5155_v5, %v9268_v29  ;;  %v5456_v51 = vmul.f32 %v5360_v40, %v4903_v58  ;;  %v5182_v15 = vsel %vm5059_vm1, %v9327_v61, 0.0  ;;  %v9519_v5 = vld [vmem:[#allocation29_spill] sm:$0xff] }
 0xb61   : > { %v5143_v18 = vrot.slane %v5142_v22, 2  ;;  %v5170_v36 = vadd.f32 %v5169_v25, %v9264_v21  ;;  %7598 = vrcp.f32 %v5153_v57  ;;  %v5167_v17 = vadd.f32 %v5166_v39, %v5165_v53 }
 0xb62   : > { %v5180_v55 = vrot.slane %v5179_v43, 1  ;;  %v5193_v8 = vadd.f32 %v5192_v56, %v5191_v33  ;;  %v5157_v44 = vrot.slane %v5156_v60, 2  ;;  %v5183_v31 = vrot.slane %v5182_v15, 4  ;;  %v9517_v33 = vld [vmem:[#allocation34_spill] sm:$0xff]  ;;  %v9522_v56 = vld [vmem:[#allocation35_spill] sm:$0xff] }
 0xb63   : > { %5491 = vperm.xlu1 %7513, %v5456_v51   ;;  %v5144_v9 = vadd.f32 %v5143_v18, %v5142_v22  ;;  %v5171_v59 = vrot.slane %v5170_v36, 2  ;;  %7600 = vrcp.f32 %v5167_v17  ;;  %v9523_v18 = vld [vmem:[#allocation31_spill] sm:$0xff] }
 0xb64   : > { %v5181_v6 = vadd.f32 %v5180_v55, %v5179_v43  ;;  %v5194_v19 = vrot.slane %v5193_v8, 1  ;;  %v5184_v63 = vadd.f32 %v5183_v31, %v5182_v15  ;;  %v5158_v7 = vadd.f32 %v5157_v44, %v5156_v60 }
 0xb65   : > { %v5145_v29 = vrot.slane %v5144_v9, 1  ;;  %v5172_v41 = vadd.f32 %v5171_v59, %v5170_v36  ;;  %v9524_v36 = vld [vmem:[#allocation32_spill] sm:$0xff] }
 0xb66   : > { %7602 = vrcp.f32 %v5181_v6  ;;  %v5195_v46 = vadd.f32 %v5194_v19, %v5193_v8  ;;  %v5185_v16 = vrot.slane %v5184_v63, 2  ;;  %v5159_v54 = vrot.slane %v5158_v7, 1 }
 0xb67   : > { %v5146_v21 = vadd.f32 %v5145_v29, %v5144_v9  ;;  %v5173_v53 = vrot.slane %v5172_v41, 1  ;;  %v9525_v19 = vlaneseq }
 0xb68   : > { %7604 = vrcp.f32 %v5195_v46  ;;  %v5160_v52 = vadd.f32 %v5159_v54, %v5158_v7  ;;  %v5186_v28 = vadd.f32 %v5185_v16, %v5184_v63  ;;  %v9526_v7 = vld [vmem:[#allocation26_spill] sm:$0xff] }
 0xb69   : > { %7606 = vrcp.f32 %v5146_v21  ;;  %v5174_v37 = vadd.f32 %v5173_v53, %v5172_v41  ;;  %v5406_v63 = vand.u32 127, %v9525_v19 }
 0xb6a   : > { %7608 = vrcp.f32 %v5160_v52  ;;  %v5187_v2 = vrot.slane %v5186_v28, 1 }
 0xb6b   : > { %v7599_v14 = vpop.eup %7598  ;;  %7610 = vrcp.f32 %v5174_v37  ;;  %v5409_v46 = vsub.s32 %v5406_v63, %v9526_v7 }
 0xb6c   : > { %v5199_v48 = vmul.f32 %v7599_v14, %v9219_v49  ;;  %v5188_v49 = vadd.f32 %v5187_v2, %v5186_v28 }
 0xb6d   : > { %v7601_v10 = vpop.eup %7600 }
 0xb6e   : > { %v5366_v3 = vmul.f32 %v5199_v48, %v8900_v32  ;;  %v5203_v0 = vmul.f32 %v7601_v10, %v9223_v26  ;;  %7612 = vrcp.f32 %v5188_v49 }
 0xb70   : > { %v7603_v45 = vpop.eup %7602  ;;  %v5376_v24 = vsel %vm5059_vm1, %v5366_v3, 0.0  ;;  %v5368_v20 = vmul.f32 %v5203_v0, %v8912_v30  ;;  %v9518_v30 = vld [vmem:[#allocation33_spill] sm:$0xff] }
 0xb71   : > { %v5207_v47 = vmul.f32 %v7603_v45, %v9227_v50 }
 0xb72   : > { %v7605_v38 = vpop.eup %7604  ;;  %v5382_v42 = vsel %vm5059_vm1, %v5368_v20, 0.0 }
 0xb73   : > { %v7607_v23 = vpop.eup %7606  ;;  %v5370_v32 = vmul.f32 %v5207_v47, %v8915_v27  ;;  %v5211_v26 = vmul.f32 %v7605_v38, %v9248_v13  ;;  %v9521_v13 = vld [vmem:[#allocation30_spill] sm:$0xff] }
 0xb74   : > { %v5197_v11 = vmul.f32 %v7607_v23, %v9517_v33  ;;  %v7609_v1 = vpop.eup %7608 }
 0xb75   : > { %v5388_v4 = vsel %vm5059_vm1, %v5370_v32, 0.0  ;;  %v5372_v22 = vmul.f32 %v5211_v26, %v9518_v30  ;;  %v7611_v50 = vpop.eup %7610  ;;  %v5201_v58 = vmul.f32 %v7609_v1, %v9520_v35 }
 0xb76   : > { %v5365_v12 = vmul.f32 %v5197_v11, %v9519_v5  ;;  %v5205_v57 = vmul.f32 %v7611_v50, %v9522_v56 }
 0xb77   : > { %v5394_v25 = vsel %vm5059_vm1, %v5372_v22, 0.0  ;;  %v5367_v40 = vmul.f32 %v5201_v58, %v9521_v13 }
 0xb78   : > { %v5373_v27 = vsel %vm5059_vm1, %v5365_v12, 0.0  ;;  %v7613_v39 = vpop.eup %7612  ;;  %v5369_v60 = vmul.f32 %v5205_v57, %v9523_v18 }
 0xb79   : > { %v5379_v43 = vsel %vm5059_vm1, %v5367_v40, 0.0  ;;  %v5209_v51 = vmul.f32 %v7613_v39, %v9327_v61 }
 0xb7a   : > { %5377 = vadd.xlane.f32.xlu0 %v5376_v24  ;;  %v5385_v15 = vsel %vm5059_vm1, %v5369_v60, 0.0 }
 0xb7b   : > { %v5371_v17 = vmul.f32 %v5209_v51, %v9524_v36  ;;  %v9528_v51 = vld [vmem:[#allocation27_spill] sm:$0xff] (!%p5876_p2) }
 0xb7c   : > { %5555 = vst [vmem:[#allocation4] sm:$0xff] (!%p5876_p2), %v9528_v51 }
 0xb7d   : > { %v5391_v55 = vsel %vm5059_vm1, %v5371_v17, 0.0  ;;  %v5557_v17 = vcombine.high (!%p5876_p2), %v9528_v51, %v9528_v51 }
 0xb7e   : > { %5383 = vadd.xlane.f32.xlu0 %v5382_v42 }
 0xb82   : > { %5389 = vadd.xlane.f32.xlu0 %v5388_v4 }
 0xb86   : > { %5395 = vadd.xlane.f32.xlu0 %v5394_v25 }
 0xb87   : > { %5374 = vadd.xlane.f32.xlu1 %v5373_v27 }
 0xb8b   : > { %5380 = vadd.xlane.f32.xlu1 %v5379_v43 }
 0xb8f   : > { %5386 = vadd.xlane.f32.xlu1 %v5385_v15  ;;  %v9529_v15 = vld [vmem:[#allocation28_spill] sm:$0xff] (!%p5876_p2) }
 0xb90   : > { %v5564_v36 = vrot.slane (!%p5876_p2), %v9528_v51, %v9529_v15 }
 0xb92   : > { %5878 = vst.sshfl [vmem:[%s5887_s15] sm:$0x1 pattern:$0x73625140] (!%p5876_p2), %v5564_v36 }
 0xb93   : > { %5392 = vadd.xlane.f32.xlu1 %v5391_v55  ;;  %v5572_v55 = vcombine.high (!%p5876_p2), %v5564_v36, %v5564_v36 }
 0xb95   : > { %5879 = vst.sshfl [vmem:[%s5887_s15 + $0x8] sm:$0x1 pattern:$0x73625140] (!%p5876_p2), %v5572_v55 }
 0xb9c   : > { %5494 = vperm.xlu0 %7512, %v9376_v62  }
 0xba4   : > { %5497 = vperm.xlu1 %7513, %v9361_v34  }
 0xbd6   : > { %v5477_v8 = vpop.permute.xlu1 %5476  ;;  %v5480_v44 = vpop.permute.xlu0 %5479 }
 0xbd7   : > { %v5502_v53 = vrot.slane %v5477_v8, %v5409_v46  ;;  %v5506_v48 = vrot.slane %v5480_v44, %v5409_v46  ;;  %v5580_v8 = vrot.slane (!%p5876_p2), %v5564_v36, %v9529_v15  ;;  %v5571_v44 = vrot.slane (!%p5876_p2), %v5557_v17, %v9529_v15 }
 0xbd9   : > { %v5531_v24 = vsel %vm3726_vm3, %v5506_v48, %v5502_v53  ;;  %5880 = vst.sshfl [vmem:[%s5887_s15 + $0x20] sm:$0x1 pattern:$0x73625140] (!%p5876_p2), %v5571_v44 }
 0xbda   : > { %v5483_v31 = vpop.permute.xlu1 %5482  ;;  %v5489_v9 = vpop.permute.xlu0 %5488 }
 0xbdb   : > { %v5510_v10 = vrot.slane %v5483_v31, %v5409_v46  ;;  %v5518_v33 = vrot.slane %v5489_v9, %v5409_v46  ;;  %v5602_v31 = vcombine.high (!%p5876_p2), %v5580_v8, %v5580_v8  ;;  %v5594_v9 = vrot.slane (!%p5876_p2), %v5572_v55, %v9529_v15 }
 0xbdd   : > { %v5532_v49 = vsel %vm3729_vm4, %v5510_v10, %v5531_v24  ;;  %5888 = vst [vmem:[%s5886_s4 + $0xf] sm:$0x1] (!%p5876_p2), %v5602_v31 }
 0xbde   : > { %v5486_v6 = vpop.permute.xlu1 %5485 }
 0xbdf   : > { %v5514_v0 = vrot.slane %v5486_v6, %v5409_v46  ;;  %v5587_v6 = vrot.slane (!%p5876_p2), %v5571_v44, %v9529_v15 }
 0xbe1   : > { %v5533_v42 = vsel %vm3732_vm5, %v5514_v0, %v5532_v49  ;;  %v5603_v19 = vcombine.high (!%p5876_p2), %v5587_v6, %v5587_v6 }
 0xbe2   : > { %v5492_v29 = vpop.permute.xlu1 %5491  ;;  %v5534_v22 = vsel %vm3735_vm6, %v5518_v33, %v5533_v42 }
 0xbe3   : > { %v5522_v32 = vrot.slane %v5492_v29, %v5409_v46  ;;  %5890 = vst [vmem:[%s5886_s4 + $0x2f] sm:$0x1] (!%p5876_p2), %v5603_v19 }
 0xbe5   : > { %v5535_v12 = vsel %vm3738_vm7, %v5522_v32, %v5534_v22 }
 0xc07   : > { %v5378_v59 = vpop.xlane.xlu0 %5377 }
 0xc08   : > { %v5414_v54 = vrot.slane %v5378_v59, %v5409_v46  ;;  %v5573_v59 = vcombine.high (!%p5876_p2), %v5571_v44, %v5571_v44 }
 0xc0a   : > { %5881 = vst.sshfl [vmem:[%s5887_s15 + $0x28] sm:$0x1 pattern:$0x73625140] (!%p5876_p2), %v5573_v59  ;;  %v5601_v63 = vrot.slane (!%p5876_p2), %v5573_v59, %v9529_v15 }
 0xc0b   : > { %v5384_v61 = vpop.xlane.xlu0 %5383 }
 0xc0c   : > { %v5422_v37 = vrot.slane %v5384_v61, %v5409_v46  ;;  %v5604_v61 = vcombine.high (!%p5876_p2), %v5594_v9, %v5594_v9  ;;  %v5605_v29 = vcombine.high (!%p5876_p2), %v5601_v63, %v5601_v63 }
 0xc0e   : > { %5889 = vst [vmem:[%s5886_s4 + $0x17] sm:$0x1] (!%p5876_p2), %v5604_v61  ;;  %5891 = vst [vmem:[%s5886_s4 + $0x37] sm:$0x1] (!%p5876_p2), %v5605_v29 }
 0xc0f   : > { %v5390_v16 = vpop.xlane.xlu0 %5389 }
 0xc10   : > { %v5430_v38 = vrot.slane %v5390_v16, %v5409_v46 }
 0xc13   : > { %v5396_v52 = vpop.xlane.xlu0 %5395 }
 0xc14   : > { %v5375_v41 = vpop.xlane.xlu1 %5374  ;;  %v5438_v11 = vrot.slane %v5396_v52, %v5409_v46 }
 0xc15   : > { %v5410_v21 = vrot.slane %v5375_v41, %v5409_v46 }
 0xc17   : > { %v5439_v34 = vsel %vm3726_vm3, %v5414_v54, %v5410_v21  ;;  %vm5549_vm3 = vcmask 7168  }
 0xc18   : > { %v5381_v14 = vpop.xlane.xlu1 %5380 }
 0xc19   : > { %v5418_v62 = vrot.slane %v5381_v14, %v5409_v46 }
 0xc1b   : > { %v5440_v28 = vsel %vm3729_vm4, %v5418_v62, %v5439_v34  ;;  %v5495_v20 = vpop.permute.xlu0 %5494 }
 0xc1c   : > { %v5387_v3 = vpop.xlane.xlu1 %5386  ;;  %v5441_v45 = vsel %vm3732_vm5, %v5422_v37, %v5440_v28  ;;  %v5526_v1 = vrot.slane %v5495_v20, %v5409_v46 }
 0xc1d   : > { %v5426_v2 = vrot.slane %v5387_v3, %v5409_v46 }
 0xc1e   : > { %v5536_v25 = vsel %vm3741_vm8, %v5526_v1, %v5535_v12 }
 0xc1f   : > { %v5442_v47 = vsel %vm3735_vm6, %v5426_v2, %v5441_v45 }
 0xc20   : > { %v5393_v23 = vpop.xlane.xlu1 %5392  ;;  %v5443_v4 = vsel %vm3738_vm7, %v5430_v38, %v5442_v47 }
 0xc21   : > { %v5434_v26 = vrot.slane %v5393_v23, %v5409_v46 }
 0xc23   : > { %v5444_v30 = vsel %vm3741_vm8, %v5434_v26, %v5443_v4 }
 0xc24   : > { %v5498_v50 = vpop.permute.xlu1 %5497  ;;  %v5445_v5 = vsel %vm3744_vm9, %v5438_v11, %v5444_v30 }
 0xc25   : > { %v5530_v35 = vrot.slane %v5498_v50, %v5409_v46  ;;  %v5448_v58 = vsel %vm5447_vm2, %v5445_v5, 0.0 }
 0xc26   : > { %5449 = vadd.xlane.f32.xlu0 %v5448_v58 }
 0xc27   : > { %v5537_v27 = vsel %vm3744_vm9, %v5530_v35, %v5536_v25 }
 0xc28   : > { %v5539_v13 = vsel %vm5447_vm2, %v5537_v27, 0.0 }
 0xc29   : > { %5540 = vadd.xlane.f32.xlu1 %v5539_v13 }
 0xcb3   : > { %v5450_v40 = vpop.xlane.xlu0 %5449 }
 0xcb6   : > { %v5541_v56 = vpop.xlane.xlu1 %5540 }
 0xcb7   : > { %v5542_v57 = vadd.f32 %v5541_v56, %v5450_v40 }
 0xcb9   : > { %v5875_v39 = vmul.f32 -1.442695, %v5542_v57 }
 0xcbb   : > { %7614 = vpow2.f32 %v5875_v39 }
 0xcc5   : > { %v7615_v43 = vpop.eup %7614 }
 0xcc6   : > { %v5546_v18 = vadd.f32 1.0, %v7615_v43 }
 0xcc8   : > { %7616 = vrcp.f32 %v5546_v18 }
 0xccd   : > { %5554 = sbr.rel (%p5876_p2) target bundleno = 3284 (0xcd4), region = 148 }
 0xcd2   : > { %v7617_v60 = vpop.eup %7616 }
 0xcd3   : > { %5550 = vst.msk [vmem:[%s9527_s11] sm:$0xff] %vm5549_vm3, %v7617_v60 }
 0xcd4 PF: > { %s85_s20 = sadd.s32 1, %s7651_s20  }
 0xcd5   : > { %p82_p3 = scmp.ge.s32.totalorder %s85_s20, 9  }
 0xcd7   :  { %84 = sbr.rel (!%p82_p3) target bundleno = 78 (0x4e), region = 234 }

</bundles_post_ra>
